<compile_context>
chip_gen: v6e
topology: v6e:2x2x1
jax: 0.10.0
libtpu: 0.0.40
codegen_flags: <defaults>
</compile_context>

<pallas_src>
import functools
import math
from typing import NamedTuple

import jax
import jax.numpy as jnp
from jax.experimental import pallas as pl
from jax.experimental.pallas import tpu as pltpu

NEG_SLOPE = 0.2
SQRT2 = math.sqrt(2.0)

_SMALL_INPUT_BYTES = 256 * 1024          # below this, XLA's fused op is already at roofline
_WIDTH_CANDIDATES = (4096, 2048, 1024, 512, 256, 128)


class _Config(NamedTuple):
    target_block_bytes: int
    min_block_bytes: int
    min_steps: int
    vmem_limit_bytes: int


@functools.lru_cache(maxsize=1)
def _device_config() -> _Config:
    """Generation-aware block / VMEM budgets."""
    kind = ""
    try:
        kind = jax.devices()[0].device_kind.lower()
    except Exception:
        pass
    if "7" in kind:
        # v7x: only 64 MiB VMEM per TensorCore, 2 TCs, ~3.2 TB/s HBM.
        return _Config(target_block_bytes=4 << 20, min_block_bytes=2 << 20,
                       min_steps=6, vmem_limit_bytes=32 << 20)
    if any(v in kind for v in ("v2", "v3", "v4", "v5", "v6")):
        # Single TensorCore, 128 MiB physical VMEM -> bigger blocks, fewer steps.
        return _Config(target_block_bytes=8 << 20, min_block_bytes=1 << 20,
                       min_steps=3, vmem_limit_bytes=64 << 20)
    # Unknown device: settings that are safe on every generation.
    return _Config(target_block_bytes=4 << 20, min_block_bytes=2 << 20,
                   min_steps=4, vmem_limit_bytes=32 << 20)


def _sublane_multiple(dtype) -> int:
    """Row-tile multiple that keeps loads/stores unmasked for the dtype."""
    itemsize = jnp.dtype(dtype).itemsize
    if itemsize >= 4:
        return 8
    if itemsize == 2:
        return 16     # bf16 packs two rows per sublane
    return 32         # int8 / fp8


def _scaled_leaky_relu_kernel(x_ref, o_ref):
    x = x_ref[...]
    # leaky_relu(x, 0.2) * sqrt(2) -- pure VPU elementwise work.
    o_ref[...] = jnp.where(x >= 0, x, x * NEG_SLOPE) * jnp.asarray(SQRT2, x.dtype)


def _choose_row_tile(rows: int, row_bytes: int, sublane: int, cfg: _Config) -> int:
    """Pick a row tile: sublane-multiple blocks near cfg.target_block_bytes,
    split into ~cfg.min_steps steps when the slab is small, but never
    fragmented below cfg.min_block_bytes (per-step overhead would dominate)."""
    if rows <= sublane:
        return rows                       # block dim == full array dim -> always legal
    target = max(sublane, (cfg.target_block_bytes // row_bytes) // sublane * sublane)
    if target >= rows:
        return rows                       # one full-extent block
    if rows >= cfg.min_steps * target:
        return target                     # plenty of full-size steps
    # Split evenly into ~min_steps blocks if that keeps blocks big enough.
    by_steps = pl.cdiv(pl.cdiv(rows, cfg.min_steps), sublane) * sublane
    if by_steps * row_bytes >= cfg.min_block_bytes:
        return min(target, by_steps)
    # Otherwise floor at min_block_bytes worth of rows.
    floor_rows = max(sublane, pl.cdiv(cfg.min_block_bytes, row_bytes * sublane) * sublane)
    tile = min(target, floor_rows)
    return rows if tile >= rows else tile


def _run_slab(slab: jax.Array) -> jax.Array:
    rows, width = slab.shape
    dtype = slab.dtype
    itemsize = jnp.dtype(dtype).itemsize
    cfg = _device_config()
    tile = _choose_row_tile(rows, width * itemsize, _sublane_multiple(dtype), cfg)
    grid = pl.cdiv(rows, tile)
    n = rows * width
    return pl.pallas_call(
        _scaled_leaky_relu_kernel,
        out_shape=jax.ShapeDtypeStruct((rows, width), dtype),
        grid=(grid,),
        in_specs=[pl.BlockSpec((tile, width), lambda i: (i, 0))],
        out_specs=pl.BlockSpec((tile, width), lambda i: (i, 0)),
        # NOTE: no input_output_aliases -- aliasing a non-donated input makes
        # XLA insert a defensive full-tensor copy, doubling HBM traffic.
        cost_estimate=pl.CostEstimate(
            flops=3 * n, transcendentals=0, bytes_accessed=2 * n * itemsize),
        compiler_params=pltpu.CompilerParams(
            dimension_semantics=("parallel",),
            vmem_limit_bytes=cfg.vmem_limit_bytes),
    )(slab)


def _reference(x: jax.Array) -> jax.Array:
    return jnp.where(x >= 0, x, x * NEG_SLOPE) * jnp.asarray(SQRT2, x.dtype)


@jax.jit
def scaled_leaky_relu(x: jax.Array) -> jax.Array:
    """F.leaky_relu(x, 0.2) * sqrt(2), matching the PyTorch module's activation."""
    orig_shape = x.shape
    n = x.size
    itemsize = jnp.dtype(x.dtype).itemsize

    # Tiny activations (4x4 / 8x8 layers): custom-call launch + pipeline
    # fill/drain dominate; XLA's fused elementwise is already at roofline.
    if n * itemsize < _SMALL_INPUT_BYTES:
        return _reference(x)

    n_tail = n % 128
    n_main = n - n_tail
    # Widest lane multiple dividing the 128-aligned prefix -> lane-dense stores.
    width = next(w for w in _WIDTH_CANDIDATES if n_main % w == 0)
    rows = n_main // width

    if n_tail == 0:
        out = _run_slab(x.reshape(rows, width))
        return out.reshape(orig_shape)

    # Rare odd-sized input: kernel on the aligned prefix, tiny (<128 element)
    # tail in plain jnp -- no full-tensor pad/slice round trip.
    flat = x.reshape(-1)
    out_main = _run_slab(flat[:n_main].reshape(rows, width))
    out_tail = _reference(flat[n_main:])
    return jnp.concatenate([out_main.reshape(-1), out_tail]).reshape(orig_shape)


if __name__ == "__main__":
    key = jax.random.PRNGKey(0)
    k0, k1, k2, k3 = jax.random.split(key, 4)

    # Mid-size StyleGAN2 feature map (batch=2, 256ch, 32x32): runs the Pallas kernel.
    x = jax.random.normal(k0, (2, 256, 32, 32), dtype=jnp.float32)
    y = scaled_leaky_relu(x)
    jax.block_until_ready(y)
    assert y.shape == x.shape and y.dtype == x.dtype
    assert jnp.allclose(y, _reference(x), atol=1e-6, rtol=1e-6)

    # Tiny early-layer feature map: takes the small-input XLA bailout path.
    x_small = jax.random.normal(k1, (2, 4, 16, 16), dtype=jnp.float32)
    y_small = scaled_leaky_relu(x_small)
    jax.block_until_ready(y_small)
    assert y_small.shape == x_small.shape
    assert jnp.allclose(y_small, _reference(x_small), atol=1e-6, rtol=1e-6)

    # bf16 (common serving dtype): exercises the 16-row sublane-multiple path.
    x_bf16 = jax.random.normal(k2, (2, 256, 32, 32), dtype=jnp.bfloat16)
    y_bf16 = scaled_leaky_relu(x_bf16)
    jax.block_until_ready(y_bf16)
    assert y_bf16.dtype == jnp.bfloat16
    assert jnp.allclose(y_bf16.astype(jnp.float32),
                        _reference(x_bf16).astype(jnp.float32),
                        atol=1e-2, rtol=1e-2)

    # Odd-sized input: kernel on the 128-aligned prefix + jnp tail (no padding).
    x_odd = jax.random.normal(k3, (3, 64, 33, 35), dtype=jnp.float32)
    y_odd = scaled_leaky_relu(x_odd)
    jax.block_until_ready(y_odd)
    assert y_odd.shape == x_odd.shape
    assert jnp.allclose(y_odd, _reference(x_odd), atol=1e-6, rtol=1e-6)

    print("KERNEL_OK")
</pallas_src>

<mosaic_0001>
module attributes {stable_mosaic.version = 11 : i64} {
  func.func @_scaled_leaky_relu_kernel(%arg0: i32, %arg1: memref<128x4096xf32, #tpu.memory_space<vmem>>, %arg2: memref<128x4096xf32, #tpu.memory_space<vmem>>) attributes {dimension_semantics = [#tpu.dimension_semantics<parallel>], iteration_bounds = array<i64: 1>, scalar_prefetch = 0 : i64, scratch_operands = 0 : i64, tpu.core_type = #tpu.core_type<tc>, window_params = [{transform_indices = @transform_0, window_bounds = array<i64: 128, 4096>}, {transform_indices = @transform_1, window_bounds = array<i64: 128, 4096>}]} {
    %c0 = arith.constant 0 : index
    %c0_0 = arith.constant 0 : index
    %0 = vector.load %arg1[%c0, %c0_0] : memref<128x4096xf32, #tpu.memory_space<vmem>>, vector<128x4096xf32>
    %cst = arith.constant 0.000000e+00 : f32
    %1 = vector.broadcast %cst : f32 to vector<128x4096xf32>
    %2 = arith.cmpf oge, %0, %1 : vector<128x4096xf32>
    %cst_1 = arith.constant 2.000000e-01 : f32
    %3 = vector.broadcast %cst_1 : f32 to vector<128x4096xf32>
    %4 = arith.mulf %0, %3 : vector<128x4096xf32>
    %5 = arith.select %2, %0, %4 : vector<128x4096xi1>, vector<128x4096xf32>
    %cst_2 = arith.constant 1.41421354 : f32
    %6 = vector.broadcast %cst_2 : f32 to vector<128x4096xf32>
    %7 = arith.mulf %5, %6 : vector<128x4096xf32>
    %c0_3 = arith.constant 0 : index
    %c0_4 = arith.constant 0 : index
    %8 = vector.load %arg2[%c0_3, %c0_4] : memref<128x4096xf32, #tpu.memory_space<vmem>>, vector<128x4096xf32>
    tpu.vector_store %arg2[%c0_3, %c0_4], %7 {strides = array<i32>} : memref<128x4096xf32, #tpu.memory_space<vmem>>, vector<128x4096xf32>,
    return
  }
  func.func @transform_0(%arg0: i32) -> (i32, i32) {
    %c0_i32 = arith.constant 0 : i32
    %c0_i32_0 = arith.constant 0 : i32
    return %arg0, %c0_i32 : i32, i32
  }
  func.func @transform_1(%arg0: i32) -> (i32, i32) {
    %c0_i32 = arith.constant 0 : i32
    %c0_i32_0 = arith.constant 0 : i32
    return %arg0, %c0_i32 : i32, i32
  }
}

</mosaic_0001>

<bundles_post_ra>
// kernel: scaled_leaky_relu.1
= control target key start
LH: loop header
LB: loop body
LE: loop exit
PB: predicated region body
PF: predicated region fallthrough
CT: control target
= control target key end

     0   :  { %s6417_s0 = inlined_call_operand.vmem [shape: f32[128,4096], index: 0, kind: input, shape index: {}]   ;;  %s6418_s1 = inlined_call_operand.vmem [shape: f32[128,4096], index: 1, kind: output, shape index: {}]  }
   0x1   :  { %v8_v0 = vld [vmem:[%s6417_s0] sm:$0xff]  ;;  %v9_v1 = vld [vmem:[%s6417_s0 + $0x8] sm:$0xff]  ;;  %v10_v2 = vld [vmem:[%s6417_s0 + $0x10] sm:$0xff] }
   0x2   :  { %vm520_vm0 = vcmp.ge.f32.partialorder %v8_v0, 0.0  ;;  %v1032_v3 = vmul.f32 0.2, %v8_v0  ;;  %vm521_vm1 = vcmp.ge.f32.partialorder %v9_v1, 0.0  ;;  %v1033_v4 = vmul.f32 0.2, %v9_v1 }
   0x3   :  { %vm522_vm2 = vcmp.ge.f32.partialorder %v10_v2, 0.0  ;;  %v1034_v5 = vmul.f32 0.2, %v10_v2  ;;  %v11_v6 = vld [vmem:[%s6417_s0 + $0x18] sm:$0xff]  ;;  %v12_v7 = vld [vmem:[%s6417_s0 + $0x20] sm:$0xff]  ;;  %v13_v8 = vld [vmem:[%s6417_s0 + $0x28] sm:$0xff] }
   0x4   :  { %v1544_v9 = vsel %vm520_vm0, %v8_v0, %v1032_v3  ;;  %v1545_v10 = vsel %vm521_vm1, %v9_v1, %v1033_v4  ;;  %vm523_vm3 = vcmp.ge.f32.partialorder %v11_v6, 0.0  ;;  %v1035_v11 = vmul.f32 0.2, %v11_v6  ;;  %v14_v12 = vld [vmem:[%s6417_s0 + $0x30] sm:$0xff]  ;;  %v15_v13 = vld [vmem:[%s6417_s0 + $0x38] sm:$0xff]  ;;  %v16_v17 = vld [vmem:[%s6417_s0 + $0x40] sm:$0xff] }
   0x5   :  { %v2056_v14 = vmul.f32 1.4142135, %v1544_v9  ;;  %v2057_v15 = vmul.f32 1.4142135, %v1545_v10  ;;  %v1546_v16 = vsel %vm522_vm2, %v10_v2, %v1034_v5  ;;  %vm524_vm4 = vcmp.ge.f32.partialorder %v12_v7, 0.0  ;;  %v17_v21 = vld [vmem:[%s6417_s0 + $0x48] sm:$0xff] }
   0x6   :  { %v2058_v18 = vmul.f32 1.4142135, %v1546_v16  ;;  %v1547_v19 = vsel %vm523_vm3, %v11_v6, %v1035_v11  ;;  %v1036_v20 = vmul.f32 0.2, %v12_v7  ;;  %vm525_vm5 = vcmp.ge.f32.partialorder %v13_v8, 0.0  ;;  %v18_v27 = vld [vmem:[%s6417_s0 + $0x50] sm:$0xff] }
   0x7   :  { %2568 = vst [vmem:[%s6418_s1] sm:$0xff] %v2056_v14  ;;  %2569 = vst [vmem:[%s6418_s1 + $0x8] sm:$0xff] %v2057_v15  ;;  %v2059_v22 = vmul.f32 1.4142135, %v1547_v19  ;;  %v1037_v23 = vmul.f32 0.2, %v13_v8  ;;  %vm526_vm6 = vcmp.ge.f32.partialorder %v14_v12, 0.0 }
   0x8   :  { %vm527_vm7 = vcmp.ge.f32.partialorder %v15_v13, 0.0  ;;  %2570 = vst [vmem:[%s6418_s1 + $0x10] sm:$0xff] %v2058_v18  ;;  %v1548_v24 = vsel %vm524_vm4, %v12_v7, %v1036_v20  ;;  %v1038_v25 = vmul.f32 0.2, %v14_v12  ;;  %v1039_v26 = vmul.f32 0.2, %v15_v13 }
   0x9   :  { %vm528_vm8 = vcmp.ge.f32.partialorder %v16_v17, 0.0  ;;  %2571 = vst [vmem:[%s6418_s1 + $0x18] sm:$0xff] %v2059_v22  ;;  %v2060_v28 = vmul.f32 1.4142135, %v1548_v24  ;;  %v1549_v29 = vsel %vm525_vm5, %v13_v8, %v1037_v23  ;;  %v1040_v30 = vmul.f32 0.2, %v16_v17 }
   0xa   :  { %vm529_vm9 = vcmp.ge.f32.partialorder %v17_v21, 0.0  ;;  %v19_v31 = vld [vmem:[%s6417_s0 + $0x58] sm:$0xff]  ;;  %v2061_v32 = vmul.f32 1.4142135, %v1549_v29  ;;  %v1550_v33 = vsel %vm526_vm6, %v14_v12, %v1038_v25  ;;  %v1551_v34 = vsel %vm527_vm7, %v15_v13, %v1039_v26  ;;  %v20_v36 = vld [vmem:[%s6417_s0 + $0x60] sm:$0xff]  ;;  %v21_v37 = vld [vmem:[%s6417_s0 + $0x68] sm:$0xff] }
   0xb   :  { %v1041_v35 = vmul.f32 0.2, %v17_v21  ;;  %2572 = vst [vmem:[%s6418_s1 + $0x20] sm:$0xff] %v2060_v28  ;;  %v2062_v38 = vmul.f32 1.4142135, %v1550_v33  ;;  %v1552_v40 = vsel %vm528_vm8, %v16_v17, %v1040_v30  ;;  %vm530_vm10 = vcmp.ge.f32.partialorder %v18_v27, 0.0 }
   0xc   :  { %v2063_v39 = vmul.f32 1.4142135, %v1551_v34  ;;  %v22_v41 = vld [vmem:[%s6417_s0 + $0x70] sm:$0xff]  ;;  %2573 = vst [vmem:[%s6418_s1 + $0x28] sm:$0xff] %v2061_v32  ;;  %v2064_v42 = vmul.f32 1.4142135, %v1552_v40 }
   0xd   :  { %v1553_v43 = vsel %vm529_vm9, %v17_v21, %v1041_v35  ;;  %v1042_v44 = vmul.f32 0.2, %v18_v27  ;;  %vm531_vm11 = vcmp.ge.f32.partialorder %v19_v31, 0.0  ;;  %v23_v45 = vld [vmem:[%s6417_s0 + $0x78] sm:$0xff]  ;;  %2574 = vst [vmem:[%s6418_s1 + $0x30] sm:$0xff] %v2062_v38  ;;  %vm532_vm12 = vcmp.ge.f32.partialorder %v20_v36, 0.0 }
   0xe   :  { %2575 = vst [vmem:[%s6418_s1 + $0x38] sm:$0xff] %v2063_v39  ;;  %v2065_v46 = vmul.f32 1.4142135, %v1553_v43  ;;  %v1043_v47 = vmul.f32 0.2, %v19_v31  ;;  %vm533_vm13 = vcmp.ge.f32.partialorder %v21_v37, 0.0 }
   0xf   :  { %2576 = vst [vmem:[%s6418_s1 + $0x40] sm:$0xff] %v2064_v42  ;;  %v1554_v48 = vsel %vm530_vm10, %v18_v27, %v1042_v44  ;;  %v1044_v49 = vmul.f32 0.2, %v20_v36  ;;  %v1045_v50 = vmul.f32 0.2, %v21_v37  ;;  %vm534_vm14 = vcmp.ge.f32.partialorder %v22_v41, 0.0 }
  0x10   :  { %v24_v51 = vld [vmem:[%s6417_s0 + $0x80] sm:$0xff]  ;;  %2577 = vst [vmem:[%s6418_s1 + $0x48] sm:$0xff] %v2065_v46  ;;  %v2066_v52 = vmul.f32 1.4142135, %v1554_v48  ;;  %v1555_v53 = vsel %vm531_vm11, %v19_v31, %v1043_v47  ;;  %v1046_v54 = vmul.f32 0.2, %v22_v41 }
  0x11   :  { %vm535_vm15 = vcmp.ge.f32.partialorder %v23_v45, 0.0  ;;  %v25_v55 = vld [vmem:[%s6417_s0 + $0x88] sm:$0xff]  ;;  %v2067_v56 = vmul.f32 1.4142135, %v1555_v53  ;;  %v1556_v57 = vsel %vm532_vm12, %v20_v36, %v1044_v49  ;;  %v1557_v58 = vsel %vm533_vm13, %v21_v37, %v1045_v50  ;;  %v26_v60 = vld [vmem:[%s6417_s0 + $0x90] sm:$0xff]  ;;  %v27_v61 = vld [vmem:[%s6417_s0 + $0x98] sm:$0xff] }
  0x12   :  { %v1047_v59 = vmul.f32 0.2, %v23_v45  ;;  %2578 = vst [vmem:[%s6418_s1 + $0x50] sm:$0xff] %v2066_v52  ;;  %v2068_v62 = vmul.f32 1.4142135, %v1556_v57  ;;  %v1558_v0 = vsel %vm534_vm14, %v22_v41, %v1046_v54  ;;  %vm536_vm0 = vcmp.ge.f32.partialorder %v24_v51, 0.0 }
  0x13   :  { %v2069_v63 = vmul.f32 1.4142135, %v1557_v58  ;;  %v28_v1 = vld [vmem:[%s6417_s0 + $0xa0] sm:$0xff]  ;;  %2579 = vst [vmem:[%s6418_s1 + $0x58] sm:$0xff] %v2067_v56  ;;  %v2070_v2 = vmul.f32 1.4142135, %v1558_v0 }
  0x14   :  { %v1559_v3 = vsel %vm535_vm15, %v23_v45, %v1047_v59  ;;  %v1048_v4 = vmul.f32 0.2, %v24_v51  ;;  %vm537_vm1 = vcmp.ge.f32.partialorder %v25_v55, 0.0  ;;  %v29_v5 = vld [vmem:[%s6417_s0 + $0xa8] sm:$0xff]  ;;  %2580 = vst [vmem:[%s6418_s1 + $0x60] sm:$0xff] %v2068_v62  ;;  %vm538_vm2 = vcmp.ge.f32.partialorder %v26_v60, 0.0 }
  0x15   :  { %2581 = vst [vmem:[%s6418_s1 + $0x68] sm:$0xff] %v2069_v63  ;;  %v2071_v6 = vmul.f32 1.4142135, %v1559_v3  ;;  %v1049_v7 = vmul.f32 0.2, %v25_v55  ;;  %vm539_vm3 = vcmp.ge.f32.partialorder %v27_v61, 0.0 }
  0x16   :  { %2582 = vst [vmem:[%s6418_s1 + $0x70] sm:$0xff] %v2070_v2  ;;  %v1560_v8 = vsel %vm536_vm0, %v24_v51, %v1048_v4  ;;  %v1050_v9 = vmul.f32 0.2, %v26_v60  ;;  %v1051_v10 = vmul.f32 0.2, %v27_v61  ;;  %vm540_vm4 = vcmp.ge.f32.partialorder %v28_v1, 0.0 }
  0x17   :  { %v30_v11 = vld [vmem:[%s6417_s0 + $0xb0] sm:$0xff]  ;;  %2583 = vst [vmem:[%s6418_s1 + $0x78] sm:$0xff] %v2071_v6  ;;  %v2072_v12 = vmul.f32 1.4142135, %v1560_v8  ;;  %v1561_v13 = vsel %vm537_vm1, %v25_v55, %v1049_v7  ;;  %v1052_v14 = vmul.f32 0.2, %v28_v1 }
  0x18   :  { %vm541_vm5 = vcmp.ge.f32.partialorder %v29_v5, 0.0  ;;  %v31_v15 = vld [vmem:[%s6417_s0 + $0xb8] sm:$0xff]  ;;  %v2073_v16 = vmul.f32 1.4142135, %v1561_v13  ;;  %v1562_v17 = vsel %vm538_vm2, %v26_v60, %v1050_v9  ;;  %v1563_v18 = vsel %vm539_vm3, %v27_v61, %v1051_v10  ;;  %v32_v20 = vld [vmem:[%s6417_s0 + $0xc0] sm:$0xff]  ;;  %v33_v21 = vld [vmem:[%s6417_s0 + $0xc8] sm:$0xff] }
  0x19   :  { %v1053_v19 = vmul.f32 0.2, %v29_v5  ;;  %2584 = vst [vmem:[%s6418_s1 + $0x80] sm:$0xff] %v2072_v12  ;;  %v2074_v22 = vmul.f32 1.4142135, %v1562_v17  ;;  %v1564_v24 = vsel %vm540_vm4, %v28_v1, %v1052_v14  ;;  %vm542_vm6 = vcmp.ge.f32.partialorder %v30_v11, 0.0 }
  0x1a   :  { %v2075_v23 = vmul.f32 1.4142135, %v1563_v18  ;;  %v34_v25 = vld [vmem:[%s6417_s0 + $0xd0] sm:$0xff]  ;;  %2585 = vst [vmem:[%s6418_s1 + $0x88] sm:$0xff] %v2073_v16  ;;  %v2076_v26 = vmul.f32 1.4142135, %v1564_v24 }
  0x1b   :  { %v1565_v27 = vsel %vm541_vm5, %v29_v5, %v1053_v19  ;;  %v1054_v28 = vmul.f32 0.2, %v30_v11  ;;  %vm543_vm7 = vcmp.ge.f32.partialorder %v31_v15, 0.0  ;;  %v35_v29 = vld [vmem:[%s6417_s0 + $0xd8] sm:$0xff]  ;;  %2586 = vst [vmem:[%s6418_s1 + $0x90] sm:$0xff] %v2074_v22  ;;  %vm544_vm8 = vcmp.ge.f32.partialorder %v32_v20, 0.0 }
  0x1c   :  { %2587 = vst [vmem:[%s6418_s1 + $0x98] sm:$0xff] %v2075_v23  ;;  %v2077_v30 = vmul.f32 1.4142135, %v1565_v27  ;;  %v1055_v31 = vmul.f32 0.2, %v31_v15  ;;  %vm545_vm9 = vcmp.ge.f32.partialorder %v33_v21, 0.0 }
  0x1d   :  { %2588 = vst [vmem:[%s6418_s1 + $0xa0] sm:$0xff] %v2076_v26  ;;  %v1566_v32 = vsel %vm542_vm6, %v30_v11, %v1054_v28  ;;  %v1056_v33 = vmul.f32 0.2, %v32_v20  ;;  %v1057_v34 = vmul.f32 0.2, %v33_v21  ;;  %vm546_vm10 = vcmp.ge.f32.partialorder %v34_v25, 0.0 }
  0x1e   :  { %v36_v35 = vld [vmem:[%s6417_s0 + $0xe0] sm:$0xff]  ;;  %2589 = vst [vmem:[%s6418_s1 + $0xa8] sm:$0xff] %v2077_v30  ;;  %v2078_v36 = vmul.f32 1.4142135, %v1566_v32  ;;  %v1567_v37 = vsel %vm543_vm7, %v31_v15, %v1055_v31  ;;  %v1058_v38 = vmul.f32 0.2, %v34_v25 }
  0x1f   :  { %vm547_vm11 = vcmp.ge.f32.partialorder %v35_v29, 0.0  ;;  %v37_v39 = vld [vmem:[%s6417_s0 + $0xe8] sm:$0xff]  ;;  %v2079_v40 = vmul.f32 1.4142135, %v1567_v37  ;;  %v1568_v41 = vsel %vm544_vm8, %v32_v20, %v1056_v33  ;;  %v1569_v42 = vsel %vm545_vm9, %v33_v21, %v1057_v34  ;;  %v38_v44 = vld [vmem:[%s6417_s0 + $0xf0] sm:$0xff]  ;;  %v39_v45 = vld [vmem:[%s6417_s0 + $0xf8] sm:$0xff] }
  0x20   :  { %v1059_v43 = vmul.f32 0.2, %v35_v29  ;;  %2590 = vst [vmem:[%s6418_s1 + $0xb0] sm:$0xff] %v2078_v36  ;;  %v2080_v46 = vmul.f32 1.4142135, %v1568_v41  ;;  %v1570_v48 = vsel %vm546_vm10, %v34_v25, %v1058_v38  ;;  %vm548_vm12 = vcmp.ge.f32.partialorder %v36_v35, 0.0 }
  0x21   :  { %v2081_v47 = vmul.f32 1.4142135, %v1569_v42  ;;  %v40_v49 = vld [vmem:[%s6417_s0 + $0x100] sm:$0xff]  ;;  %2591 = vst [vmem:[%s6418_s1 + $0xb8] sm:$0xff] %v2079_v40  ;;  %v2082_v50 = vmul.f32 1.4142135, %v1570_v48 }
  0x22   :  { %v1571_v51 = vsel %vm547_vm11, %v35_v29, %v1059_v43  ;;  %v1060_v52 = vmul.f32 0.2, %v36_v35  ;;  %vm549_vm13 = vcmp.ge.f32.partialorder %v37_v39, 0.0  ;;  %v41_v53 = vld [vmem:[%s6417_s0 + $0x108] sm:$0xff]  ;;  %2592 = vst [vmem:[%s6418_s1 + $0xc0] sm:$0xff] %v2080_v46  ;;  %vm550_vm14 = vcmp.ge.f32.partialorder %v38_v44, 0.0 }
  0x23   :  { %2593 = vst [vmem:[%s6418_s1 + $0xc8] sm:$0xff] %v2081_v47  ;;  %v2083_v54 = vmul.f32 1.4142135, %v1571_v51  ;;  %v1061_v55 = vmul.f32 0.2, %v37_v39  ;;  %vm551_vm15 = vcmp.ge.f32.partialorder %v39_v45, 0.0 }
  0x24   :  { %2594 = vst [vmem:[%s6418_s1 + $0xd0] sm:$0xff] %v2082_v50  ;;  %v1572_v56 = vsel %vm548_vm12, %v36_v35, %v1060_v52  ;;  %v1062_v57 = vmul.f32 0.2, %v38_v44  ;;  %v1063_v58 = vmul.f32 0.2, %v39_v45  ;;  %vm552_vm0 = vcmp.ge.f32.partialorder %v40_v49, 0.0 }
  0x25   :  { %v42_v59 = vld [vmem:[%s6417_s0 + $0x110] sm:$0xff]  ;;  %2595 = vst [vmem:[%s6418_s1 + $0xd8] sm:$0xff] %v2083_v54  ;;  %v2084_v60 = vmul.f32 1.4142135, %v1572_v56  ;;  %v1573_v61 = vsel %vm549_vm13, %v37_v39, %v1061_v55  ;;  %v1064_v62 = vmul.f32 0.2, %v40_v49 }
  0x26   :  { %vm553_vm1 = vcmp.ge.f32.partialorder %v41_v53, 0.0  ;;  %v43_v63 = vld [vmem:[%s6417_s0 + $0x118] sm:$0xff]  ;;  %v2085_v0 = vmul.f32 1.4142135, %v1573_v61  ;;  %v1574_v1 = vsel %vm550_vm14, %v38_v44, %v1062_v57  ;;  %v1575_v2 = vsel %vm551_vm15, %v39_v45, %v1063_v58  ;;  %v44_v4 = vld [vmem:[%s6417_s0 + $0x120] sm:$0xff]  ;;  %v45_v5 = vld [vmem:[%s6417_s0 + $0x128] sm:$0xff] }
  0x27   :  { %v1065_v3 = vmul.f32 0.2, %v41_v53  ;;  %2596 = vst [vmem:[%s6418_s1 + $0xe0] sm:$0xff] %v2084_v60  ;;  %v2086_v6 = vmul.f32 1.4142135, %v1574_v1  ;;  %v1576_v8 = vsel %vm552_vm0, %v40_v49, %v1064_v62  ;;  %vm554_vm2 = vcmp.ge.f32.partialorder %v42_v59, 0.0 }
  0x28   :  { %v2087_v7 = vmul.f32 1.4142135, %v1575_v2  ;;  %v46_v9 = vld [vmem:[%s6417_s0 + $0x130] sm:$0xff]  ;;  %2597 = vst [vmem:[%s6418_s1 + $0xe8] sm:$0xff] %v2085_v0  ;;  %v2088_v10 = vmul.f32 1.4142135, %v1576_v8 }
  0x29   :  { %v1577_v11 = vsel %vm553_vm1, %v41_v53, %v1065_v3  ;;  %v1066_v12 = vmul.f32 0.2, %v42_v59  ;;  %vm555_vm3 = vcmp.ge.f32.partialorder %v43_v63, 0.0  ;;  %v47_v13 = vld [vmem:[%s6417_s0 + $0x138] sm:$0xff]  ;;  %2598 = vst [vmem:[%s6418_s1 + $0xf0] sm:$0xff] %v2086_v6  ;;  %vm556_vm4 = vcmp.ge.f32.partialorder %v44_v4, 0.0 }
  0x2a   :  { %2599 = vst [vmem:[%s6418_s1 + $0xf8] sm:$0xff] %v2087_v7  ;;  %v2089_v14 = vmul.f32 1.4142135, %v1577_v11  ;;  %v1067_v15 = vmul.f32 0.2, %v43_v63  ;;  %vm557_vm5 = vcmp.ge.f32.partialorder %v45_v5, 0.0 }
  0x2b   :  { %2600 = vst [vmem:[%s6418_s1 + $0x100] sm:$0xff] %v2088_v10  ;;  %v1578_v16 = vsel %vm554_vm2, %v42_v59, %v1066_v12  ;;  %v1068_v17 = vmul.f32 0.2, %v44_v4  ;;  %v1069_v18 = vmul.f32 0.2, %v45_v5  ;;  %vm558_vm6 = vcmp.ge.f32.partialorder %v46_v9, 0.0 }
  0x2c   :  { %v48_v19 = vld [vmem:[%s6417_s0 + $0x140] sm:$0xff]  ;;  %2601 = vst [vmem:[%s6418_s1 + $0x108] sm:$0xff] %v2089_v14  ;;  %v2090_v20 = vmul.f32 1.4142135, %v1578_v16  ;;  %v1579_v21 = vsel %vm555_vm3, %v43_v63, %v1067_v15  ;;  %v1070_v22 = vmul.f32 0.2, %v46_v9 }
  0x2d   :  { %vm559_vm7 = vcmp.ge.f32.partialorder %v47_v13, 0.0  ;;  %v49_v23 = vld [vmem:[%s6417_s0 + $0x148] sm:$0xff]  ;;  %v2091_v24 = vmul.f32 1.4142135, %v1579_v21  ;;  %v1580_v25 = vsel %vm556_vm4, %v44_v4, %v1068_v17  ;;  %v1581_v26 = vsel %vm557_vm5, %v45_v5, %v1069_v18  ;;  %v50_v28 = vld [vmem:[%s6417_s0 + $0x150] sm:$0xff]  ;;  %v51_v29 = vld [vmem:[%s6417_s0 + $0x158] sm:$0xff] }
  0x2e   :  { %v1071_v27 = vmul.f32 0.2, %v47_v13  ;;  %2602 = vst [vmem:[%s6418_s1 + $0x110] sm:$0xff] %v2090_v20  ;;  %v2092_v30 = vmul.f32 1.4142135, %v1580_v25  ;;  %v1582_v32 = vsel %vm558_vm6, %v46_v9, %v1070_v22  ;;  %vm560_vm8 = vcmp.ge.f32.partialorder %v48_v19, 0.0 }
  0x2f   :  { %v2093_v31 = vmul.f32 1.4142135, %v1581_v26  ;;  %v52_v33 = vld [vmem:[%s6417_s0 + $0x160] sm:$0xff]  ;;  %2603 = vst [vmem:[%s6418_s1 + $0x118] sm:$0xff] %v2091_v24  ;;  %v2094_v34 = vmul.f32 1.4142135, %v1582_v32 }
  0x30   :  { %v1583_v35 = vsel %vm559_vm7, %v47_v13, %v1071_v27  ;;  %v1072_v36 = vmul.f32 0.2, %v48_v19  ;;  %vm561_vm9 = vcmp.ge.f32.partialorder %v49_v23, 0.0  ;;  %v53_v37 = vld [vmem:[%s6417_s0 + $0x168] sm:$0xff]  ;;  %2604 = vst [vmem:[%s6418_s1 + $0x120] sm:$0xff] %v2092_v30  ;;  %vm562_vm10 = vcmp.ge.f32.partialorder %v50_v28, 0.0 }
  0x31   :  { %2605 = vst [vmem:[%s6418_s1 + $0x128] sm:$0xff] %v2093_v31  ;;  %v2095_v38 = vmul.f32 1.4142135, %v1583_v35  ;;  %v1073_v39 = vmul.f32 0.2, %v49_v23  ;;  %vm563_vm11 = vcmp.ge.f32.partialorder %v51_v29, 0.0 }
  0x32   :  { %2606 = vst [vmem:[%s6418_s1 + $0x130] sm:$0xff] %v2094_v34  ;;  %v1584_v40 = vsel %vm560_vm8, %v48_v19, %v1072_v36  ;;  %v1074_v41 = vmul.f32 0.2, %v50_v28  ;;  %v1075_v42 = vmul.f32 0.2, %v51_v29  ;;  %vm564_vm12 = vcmp.ge.f32.partialorder %v52_v33, 0.0 }
  0x33   :  { %v54_v43 = vld [vmem:[%s6417_s0 + $0x170] sm:$0xff]  ;;  %2607 = vst [vmem:[%s6418_s1 + $0x138] sm:$0xff] %v2095_v38  ;;  %v2096_v44 = vmul.f32 1.4142135, %v1584_v40  ;;  %v1585_v45 = vsel %vm561_vm9, %v49_v23, %v1073_v39  ;;  %v1076_v46 = vmul.f32 0.2, %v52_v33 }
  0x34   :  { %vm565_vm13 = vcmp.ge.f32.partialorder %v53_v37, 0.0  ;;  %v55_v47 = vld [vmem:[%s6417_s0 + $0x178] sm:$0xff]  ;;  %v2097_v48 = vmul.f32 1.4142135, %v1585_v45  ;;  %v1586_v49 = vsel %vm562_vm10, %v50_v28, %v1074_v41  ;;  %v1587_v50 = vsel %vm563_vm11, %v51_v29, %v1075_v42  ;;  %v56_v52 = vld [vmem:[%s6417_s0 + $0x180] sm:$0xff]  ;;  %v57_v53 = vld [vmem:[%s6417_s0 + $0x188] sm:$0xff] }
  0x35   :  { %v1077_v51 = vmul.f32 0.2, %v53_v37  ;;  %2608 = vst [vmem:[%s6418_s1 + $0x140] sm:$0xff] %v2096_v44  ;;  %v2098_v54 = vmul.f32 1.4142135, %v1586_v49  ;;  %v1588_v56 = vsel %vm564_vm12, %v52_v33, %v1076_v46  ;;  %vm566_vm14 = vcmp.ge.f32.partialorder %v54_v43, 0.0 }
  0x36   :  { %v2099_v55 = vmul.f32 1.4142135, %v1587_v50  ;;  %v58_v57 = vld [vmem:[%s6417_s0 + $0x190] sm:$0xff]  ;;  %2609 = vst [vmem:[%s6418_s1 + $0x148] sm:$0xff] %v2097_v48  ;;  %v2100_v58 = vmul.f32 1.4142135, %v1588_v56 }
  0x37   :  { %v1589_v59 = vsel %vm565_vm13, %v53_v37, %v1077_v51  ;;  %v1078_v60 = vmul.f32 0.2, %v54_v43  ;;  %vm567_vm15 = vcmp.ge.f32.partialorder %v55_v47, 0.0  ;;  %v59_v61 = vld [vmem:[%s6417_s0 + $0x198] sm:$0xff]  ;;  %2610 = vst [vmem:[%s6418_s1 + $0x150] sm:$0xff] %v2098_v54  ;;  %vm568_vm0 = vcmp.ge.f32.partialorder %v56_v52, 0.0 }
  0x38   :  { %2611 = vst [vmem:[%s6418_s1 + $0x158] sm:$0xff] %v2099_v55  ;;  %v2101_v62 = vmul.f32 1.4142135, %v1589_v59  ;;  %v1079_v63 = vmul.f32 0.2, %v55_v47  ;;  %vm569_vm1 = vcmp.ge.f32.partialorder %v57_v53, 0.0 }
  0x39   :  { %2612 = vst [vmem:[%s6418_s1 + $0x160] sm:$0xff] %v2100_v58  ;;  %v1590_v0 = vsel %vm566_vm14, %v54_v43, %v1078_v60  ;;  %v1080_v1 = vmul.f32 0.2, %v56_v52  ;;  %v1081_v2 = vmul.f32 0.2, %v57_v53  ;;  %vm570_vm2 = vcmp.ge.f32.partialorder %v58_v57, 0.0 }
  0x3a   :  { %v60_v3 = vld [vmem:[%s6417_s0 + $0x1a0] sm:$0xff]  ;;  %2613 = vst [vmem:[%s6418_s1 + $0x168] sm:$0xff] %v2101_v62  ;;  %v2102_v4 = vmul.f32 1.4142135, %v1590_v0  ;;  %v1591_v5 = vsel %vm567_vm15, %v55_v47, %v1079_v63  ;;  %v1082_v6 = vmul.f32 0.2, %v58_v57 }
  0x3b   :  { %vm571_vm3 = vcmp.ge.f32.partialorder %v59_v61, 0.0  ;;  %v61_v7 = vld [vmem:[%s6417_s0 + $0x1a8] sm:$0xff]  ;;  %v2103_v8 = vmul.f32 1.4142135, %v1591_v5  ;;  %v1592_v9 = vsel %vm568_vm0, %v56_v52, %v1080_v1  ;;  %v1593_v10 = vsel %vm569_vm1, %v57_v53, %v1081_v2  ;;  %v62_v12 = vld [vmem:[%s6417_s0 + $0x1b0] sm:$0xff]  ;;  %v63_v13 = vld [vmem:[%s6417_s0 + $0x1b8] sm:$0xff] }
  0x3c   :  { %v1083_v11 = vmul.f32 0.2, %v59_v61  ;;  %2614 = vst [vmem:[%s6418_s1 + $0x170] sm:$0xff] %v2102_v4  ;;  %v2104_v14 = vmul.f32 1.4142135, %v1592_v9  ;;  %v1594_v16 = vsel %vm570_vm2, %v58_v57, %v1082_v6  ;;  %vm572_vm4 = vcmp.ge.f32.partialorder %v60_v3, 0.0 }
  0x3d   :  { %v2105_v15 = vmul.f32 1.4142135, %v1593_v10  ;;  %v64_v17 = vld [vmem:[%s6417_s0 + $0x1c0] sm:$0xff]  ;;  %2615 = vst [vmem:[%s6418_s1 + $0x178] sm:$0xff] %v2103_v8  ;;  %v2106_v18 = vmul.f32 1.4142135, %v1594_v16 }
  0x3e   :  { %v1595_v19 = vsel %vm571_vm3, %v59_v61, %v1083_v11  ;;  %v1084_v20 = vmul.f32 0.2, %v60_v3  ;;  %vm573_vm5 = vcmp.ge.f32.partialorder %v61_v7, 0.0  ;;  %v65_v21 = vld [vmem:[%s6417_s0 + $0x1c8] sm:$0xff]  ;;  %2616 = vst [vmem:[%s6418_s1 + $0x180] sm:$0xff] %v2104_v14  ;;  %vm574_vm6 = vcmp.ge.f32.partialorder %v62_v12, 0.0 }
  0x3f   :  { %2617 = vst [vmem:[%s6418_s1 + $0x188] sm:$0xff] %v2105_v15  ;;  %v2107_v22 = vmul.f32 1.4142135, %v1595_v19  ;;  %v1085_v23 = vmul.f32 0.2, %v61_v7  ;;  %vm575_vm7 = vcmp.ge.f32.partialorder %v63_v13, 0.0 }
  0x40   :  { %2618 = vst [vmem:[%s6418_s1 + $0x190] sm:$0xff] %v2106_v18  ;;  %v1596_v24 = vsel %vm572_vm4, %v60_v3, %v1084_v20  ;;  %v1086_v25 = vmul.f32 0.2, %v62_v12  ;;  %v1087_v26 = vmul.f32 0.2, %v63_v13  ;;  %vm576_vm8 = vcmp.ge.f32.partialorder %v64_v17, 0.0 }
  0x41   :  { %v66_v27 = vld [vmem:[%s6417_s0 + $0x1d0] sm:$0xff]  ;;  %2619 = vst [vmem:[%s6418_s1 + $0x198] sm:$0xff] %v2107_v22  ;;  %v2108_v28 = vmul.f32 1.4142135, %v1596_v24  ;;  %v1597_v29 = vsel %vm573_vm5, %v61_v7, %v1085_v23  ;;  %v1088_v30 = vmul.f32 0.2, %v64_v17 }
  0x42   :  { %vm577_vm9 = vcmp.ge.f32.partialorder %v65_v21, 0.0  ;;  %v67_v31 = vld [vmem:[%s6417_s0 + $0x1d8] sm:$0xff]  ;;  %v2109_v32 = vmul.f32 1.4142135, %v1597_v29  ;;  %v1598_v33 = vsel %vm574_vm6, %v62_v12, %v1086_v25  ;;  %v1599_v34 = vsel %vm575_vm7, %v63_v13, %v1087_v26  ;;  %v68_v36 = vld [vmem:[%s6417_s0 + $0x1e0] sm:$0xff]  ;;  %v69_v37 = vld [vmem:[%s6417_s0 + $0x1e8] sm:$0xff] }
  0x43   :  { %v1089_v35 = vmul.f32 0.2, %v65_v21  ;;  %2620 = vst [vmem:[%s6418_s1 + $0x1a0] sm:$0xff] %v2108_v28  ;;  %v2110_v38 = vmul.f32 1.4142135, %v1598_v33  ;;  %v1600_v40 = vsel %vm576_vm8, %v64_v17, %v1088_v30  ;;  %vm578_vm10 = vcmp.ge.f32.partialorder %v66_v27, 0.0 }
  0x44   :  { %v2111_v39 = vmul.f32 1.4142135, %v1599_v34  ;;  %v70_v41 = vld [vmem:[%s6417_s0 + $0x1f0] sm:$0xff]  ;;  %2621 = vst [vmem:[%s6418_s1 + $0x1a8] sm:$0xff] %v2109_v32  ;;  %v2112_v42 = vmul.f32 1.4142135, %v1600_v40 }
  0x45   :  { %v1601_v43 = vsel %vm577_vm9, %v65_v21, %v1089_v35  ;;  %v1090_v44 = vmul.f32 0.2, %v66_v27  ;;  %vm579_vm11 = vcmp.ge.f32.partialorder %v67_v31, 0.0  ;;  %v71_v45 = vld [vmem:[%s6417_s0 + $0x1f8] sm:$0xff]  ;;  %2622 = vst [vmem:[%s6418_s1 + $0x1b0] sm:$0xff] %v2110_v38  ;;  %vm580_vm12 = vcmp.ge.f32.partialorder %v68_v36, 0.0 }
  0x46   :  { %2623 = vst [vmem:[%s6418_s1 + $0x1b8] sm:$0xff] %v2111_v39  ;;  %v2113_v46 = vmul.f32 1.4142135, %v1601_v43  ;;  %v1091_v47 = vmul.f32 0.2, %v67_v31  ;;  %vm581_vm13 = vcmp.ge.f32.partialorder %v69_v37, 0.0 }
  0x47   :  { %2624 = vst [vmem:[%s6418_s1 + $0x1c0] sm:$0xff] %v2112_v42  ;;  %v1602_v48 = vsel %vm578_vm10, %v66_v27, %v1090_v44  ;;  %v1092_v49 = vmul.f32 0.2, %v68_v36  ;;  %v1093_v50 = vmul.f32 0.2, %v69_v37  ;;  %vm582_vm14 = vcmp.ge.f32.partialorder %v70_v41, 0.0 }
  0x48   :  { %v72_v51 = vld [vmem:[%s6417_s0 + $0x200] sm:$0xff]  ;;  %2625 = vst [vmem:[%s6418_s1 + $0x1c8] sm:$0xff] %v2113_v46  ;;  %v2114_v52 = vmul.f32 1.4142135, %v1602_v48  ;;  %v1603_v53 = vsel %vm579_vm11, %v67_v31, %v1091_v47  ;;  %v1094_v54 = vmul.f32 0.2, %v70_v41 }
  0x49   :  { %vm583_vm15 = vcmp.ge.f32.partialorder %v71_v45, 0.0  ;;  %v73_v55 = vld [vmem:[%s6417_s0 + $0x208] sm:$0xff]  ;;  %v2115_v56 = vmul.f32 1.4142135, %v1603_v53  ;;  %v1604_v57 = vsel %vm580_vm12, %v68_v36, %v1092_v49  ;;  %v1605_v58 = vsel %vm581_vm13, %v69_v37, %v1093_v50  ;;  %v74_v60 = vld [vmem:[%s6417_s0 + $0x210] sm:$0xff]  ;;  %v75_v61 = vld [vmem:[%s6417_s0 + $0x218] sm:$0xff] }
  0x4a   :  { %v1095_v59 = vmul.f32 0.2, %v71_v45  ;;  %2626 = vst [vmem:[%s6418_s1 + $0x1d0] sm:$0xff] %v2114_v52  ;;  %v2116_v62 = vmul.f32 1.4142135, %v1604_v57  ;;  %v1606_v0 = vsel %vm582_vm14, %v70_v41, %v1094_v54  ;;  %vm584_vm0 = vcmp.ge.f32.partialorder %v72_v51, 0.0 }
  0x4b   :  { %v2117_v63 = vmul.f32 1.4142135, %v1605_v58  ;;  %v76_v1 = vld [vmem:[%s6417_s0 + $0x220] sm:$0xff]  ;;  %2627 = vst [vmem:[%s6418_s1 + $0x1d8] sm:$0xff] %v2115_v56  ;;  %v2118_v2 = vmul.f32 1.4142135, %v1606_v0 }
  0x4c   :  { %v1607_v3 = vsel %vm583_vm15, %v71_v45, %v1095_v59  ;;  %v1096_v4 = vmul.f32 0.2, %v72_v51  ;;  %vm585_vm1 = vcmp.ge.f32.partialorder %v73_v55, 0.0  ;;  %v77_v5 = vld [vmem:[%s6417_s0 + $0x228] sm:$0xff]  ;;  %2628 = vst [vmem:[%s6418_s1 + $0x1e0] sm:$0xff] %v2116_v62  ;;  %vm586_vm2 = vcmp.ge.f32.partialorder %v74_v60, 0.0 }
  0x4d   :  { %2629 = vst [vmem:[%s6418_s1 + $0x1e8] sm:$0xff] %v2117_v63  ;;  %v2119_v6 = vmul.f32 1.4142135, %v1607_v3  ;;  %v1097_v7 = vmul.f32 0.2, %v73_v55  ;;  %vm587_vm3 = vcmp.ge.f32.partialorder %v75_v61, 0.0 }
  0x4e   :  { %2630 = vst [vmem:[%s6418_s1 + $0x1f0] sm:$0xff] %v2118_v2  ;;  %v1608_v8 = vsel %vm584_vm0, %v72_v51, %v1096_v4  ;;  %v1098_v9 = vmul.f32 0.2, %v74_v60  ;;  %v1099_v10 = vmul.f32 0.2, %v75_v61  ;;  %vm588_vm4 = vcmp.ge.f32.partialorder %v76_v1, 0.0 }
  0x4f   :  { %v78_v11 = vld [vmem:[%s6417_s0 + $0x230] sm:$0xff]  ;;  %2631 = vst [vmem:[%s6418_s1 + $0x1f8] sm:$0xff] %v2119_v6  ;;  %v2120_v12 = vmul.f32 1.4142135, %v1608_v8  ;;  %v1609_v13 = vsel %vm585_vm1, %v73_v55, %v1097_v7  ;;  %v1100_v14 = vmul.f32 0.2, %v76_v1 }
  0x50   :  { %vm589_vm5 = vcmp.ge.f32.partialorder %v77_v5, 0.0  ;;  %v79_v15 = vld [vmem:[%s6417_s0 + $0x238] sm:$0xff]  ;;  %v2121_v16 = vmul.f32 1.4142135, %v1609_v13  ;;  %v1610_v17 = vsel %vm586_vm2, %v74_v60, %v1098_v9  ;;  %v1611_v18 = vsel %vm587_vm3, %v75_v61, %v1099_v10  ;;  %v80_v20 = vld [vmem:[%s6417_s0 + $0x240] sm:$0xff]  ;;  %v81_v21 = vld [vmem:[%s6417_s0 + $0x248] sm:$0xff] }
  0x51   :  { %v1101_v19 = vmul.f32 0.2, %v77_v5  ;;  %2632 = vst [vmem:[%s6418_s1 + $0x200] sm:$0xff] %v2120_v12  ;;  %v2122_v22 = vmul.f32 1.4142135, %v1610_v17  ;;  %v1612_v24 = vsel %vm588_vm4, %v76_v1, %v1100_v14  ;;  %vm590_vm6 = vcmp.ge.f32.partialorder %v78_v11, 0.0 }
  0x52   :  { %v2123_v23 = vmul.f32 1.4142135, %v1611_v18  ;;  %v82_v25 = vld [vmem:[%s6417_s0 + $0x250] sm:$0xff]  ;;  %2633 = vst [vmem:[%s6418_s1 + $0x208] sm:$0xff] %v2121_v16  ;;  %v2124_v26 = vmul.f32 1.4142135, %v1612_v24 }
  0x53   :  { %v1613_v27 = vsel %vm589_vm5, %v77_v5, %v1101_v19  ;;  %v1102_v28 = vmul.f32 0.2, %v78_v11  ;;  %vm591_vm7 = vcmp.ge.f32.partialorder %v79_v15, 0.0  ;;  %v83_v29 = vld [vmem:[%s6417_s0 + $0x258] sm:$0xff]  ;;  %2634 = vst [vmem:[%s6418_s1 + $0x210] sm:$0xff] %v2122_v22  ;;  %vm592_vm8 = vcmp.ge.f32.partialorder %v80_v20, 0.0 }
  0x54   :  { %2635 = vst [vmem:[%s6418_s1 + $0x218] sm:$0xff] %v2123_v23  ;;  %v2125_v30 = vmul.f32 1.4142135, %v1613_v27  ;;  %v1103_v31 = vmul.f32 0.2, %v79_v15  ;;  %vm593_vm9 = vcmp.ge.f32.partialorder %v81_v21, 0.0 }
  0x55   :  { %2636 = vst [vmem:[%s6418_s1 + $0x220] sm:$0xff] %v2124_v26  ;;  %v1614_v32 = vsel %vm590_vm6, %v78_v11, %v1102_v28  ;;  %v1104_v33 = vmul.f32 0.2, %v80_v20  ;;  %v1105_v34 = vmul.f32 0.2, %v81_v21  ;;  %vm594_vm10 = vcmp.ge.f32.partialorder %v82_v25, 0.0 }
  0x56   :  { %v84_v35 = vld [vmem:[%s6417_s0 + $0x260] sm:$0xff]  ;;  %2637 = vst [vmem:[%s6418_s1 + $0x228] sm:$0xff] %v2125_v30  ;;  %v2126_v36 = vmul.f32 1.4142135, %v1614_v32  ;;  %v1615_v37 = vsel %vm591_vm7, %v79_v15, %v1103_v31  ;;  %v1106_v38 = vmul.f32 0.2, %v82_v25 }
  0x57   :  { %vm595_vm11 = vcmp.ge.f32.partialorder %v83_v29, 0.0  ;;  %v85_v39 = vld [vmem:[%s6417_s0 + $0x268] sm:$0xff]  ;;  %v2127_v40 = vmul.f32 1.4142135, %v1615_v37  ;;  %v1616_v41 = vsel %vm592_vm8, %v80_v20, %v1104_v33  ;;  %v1617_v42 = vsel %vm593_vm9, %v81_v21, %v1105_v34  ;;  %v86_v44 = vld [vmem:[%s6417_s0 + $0x270] sm:$0xff]  ;;  %v87_v45 = vld [vmem:[%s6417_s0 + $0x278] sm:$0xff] }
  0x58   :  { %v1107_v43 = vmul.f32 0.2, %v83_v29  ;;  %2638 = vst [vmem:[%s6418_s1 + $0x230] sm:$0xff] %v2126_v36  ;;  %v2128_v46 = vmul.f32 1.4142135, %v1616_v41  ;;  %v1618_v48 = vsel %vm594_vm10, %v82_v25, %v1106_v38  ;;  %vm596_vm12 = vcmp.ge.f32.partialorder %v84_v35, 0.0 }
  0x59   :  { %v2129_v47 = vmul.f32 1.4142135, %v1617_v42  ;;  %v88_v49 = vld [vmem:[%s6417_s0 + $0x280] sm:$0xff]  ;;  %2639 = vst [vmem:[%s6418_s1 + $0x238] sm:$0xff] %v2127_v40  ;;  %v2130_v50 = vmul.f32 1.4142135, %v1618_v48 }
  0x5a   :  { %v1619_v51 = vsel %vm595_vm11, %v83_v29, %v1107_v43  ;;  %v1108_v52 = vmul.f32 0.2, %v84_v35  ;;  %vm597_vm13 = vcmp.ge.f32.partialorder %v85_v39, 0.0  ;;  %v89_v53 = vld [vmem:[%s6417_s0 + $0x288] sm:$0xff]  ;;  %2640 = vst [vmem:[%s6418_s1 + $0x240] sm:$0xff] %v2128_v46  ;;  %vm598_vm14 = vcmp.ge.f32.partialorder %v86_v44, 0.0 }
  0x5b   :  { %2641 = vst [vmem:[%s6418_s1 + $0x248] sm:$0xff] %v2129_v47  ;;  %v2131_v54 = vmul.f32 1.4142135, %v1619_v51  ;;  %v1109_v55 = vmul.f32 0.2, %v85_v39  ;;  %vm599_vm15 = vcmp.ge.f32.partialorder %v87_v45, 0.0 }
  0x5c   :  { %2642 = vst [vmem:[%s6418_s1 + $0x250] sm:$0xff] %v2130_v50  ;;  %v1620_v56 = vsel %vm596_vm12, %v84_v35, %v1108_v52  ;;  %v1110_v57 = vmul.f32 0.2, %v86_v44  ;;  %v1111_v58 = vmul.f32 0.2, %v87_v45  ;;  %vm600_vm0 = vcmp.ge.f32.partialorder %v88_v49, 0.0 }
  0x5d   :  { %v90_v59 = vld [vmem:[%s6417_s0 + $0x290] sm:$0xff]  ;;  %2643 = vst [vmem:[%s6418_s1 + $0x258] sm:$0xff] %v2131_v54  ;;  %v2132_v60 = vmul.f32 1.4142135, %v1620_v56  ;;  %v1621_v61 = vsel %vm597_vm13, %v85_v39, %v1109_v55  ;;  %v1112_v62 = vmul.f32 0.2, %v88_v49 }
  0x5e   :  { %vm601_vm1 = vcmp.ge.f32.partialorder %v89_v53, 0.0  ;;  %v91_v63 = vld [vmem:[%s6417_s0 + $0x298] sm:$0xff]  ;;  %v2133_v0 = vmul.f32 1.4142135, %v1621_v61  ;;  %v1622_v1 = vsel %vm598_vm14, %v86_v44, %v1110_v57  ;;  %v1623_v2 = vsel %vm599_vm15, %v87_v45, %v1111_v58  ;;  %v92_v4 = vld [vmem:[%s6417_s0 + $0x2a0] sm:$0xff]  ;;  %v93_v5 = vld [vmem:[%s6417_s0 + $0x2a8] sm:$0xff] }
  0x5f   :  { %v1113_v3 = vmul.f32 0.2, %v89_v53  ;;  %2644 = vst [vmem:[%s6418_s1 + $0x260] sm:$0xff] %v2132_v60  ;;  %v2134_v6 = vmul.f32 1.4142135, %v1622_v1  ;;  %v1624_v8 = vsel %vm600_vm0, %v88_v49, %v1112_v62  ;;  %vm602_vm2 = vcmp.ge.f32.partialorder %v90_v59, 0.0 }
  0x60   :  { %v2135_v7 = vmul.f32 1.4142135, %v1623_v2  ;;  %v94_v9 = vld [vmem:[%s6417_s0 + $0x2b0] sm:$0xff]  ;;  %2645 = vst [vmem:[%s6418_s1 + $0x268] sm:$0xff] %v2133_v0  ;;  %v2136_v10 = vmul.f32 1.4142135, %v1624_v8 }
  0x61   :  { %v1625_v11 = vsel %vm601_vm1, %v89_v53, %v1113_v3  ;;  %v1114_v12 = vmul.f32 0.2, %v90_v59  ;;  %vm603_vm3 = vcmp.ge.f32.partialorder %v91_v63, 0.0  ;;  %v95_v13 = vld [vmem:[%s6417_s0 + $0x2b8] sm:$0xff]  ;;  %2646 = vst [vmem:[%s6418_s1 + $0x270] sm:$0xff] %v2134_v6  ;;  %vm604_vm4 = vcmp.ge.f32.partialorder %v92_v4, 0.0 }
  0x62   :  { %2647 = vst [vmem:[%s6418_s1 + $0x278] sm:$0xff] %v2135_v7  ;;  %v2137_v14 = vmul.f32 1.4142135, %v1625_v11  ;;  %v1115_v15 = vmul.f32 0.2, %v91_v63  ;;  %vm605_vm5 = vcmp.ge.f32.partialorder %v93_v5, 0.0 }
  0x63   :  { %2648 = vst [vmem:[%s6418_s1 + $0x280] sm:$0xff] %v2136_v10  ;;  %v1626_v16 = vsel %vm602_vm2, %v90_v59, %v1114_v12  ;;  %v1116_v17 = vmul.f32 0.2, %v92_v4  ;;  %v1117_v18 = vmul.f32 0.2, %v93_v5  ;;  %vm606_vm6 = vcmp.ge.f32.partialorder %v94_v9, 0.0 }
  0x64   :  { %v96_v19 = vld [vmem:[%s6417_s0 + $0x2c0] sm:$0xff]  ;;  %2649 = vst [vmem:[%s6418_s1 + $0x288] sm:$0xff] %v2137_v14  ;;  %v2138_v20 = vmul.f32 1.4142135, %v1626_v16  ;;  %v1627_v21 = vsel %vm603_vm3, %v91_v63, %v1115_v15  ;;  %v1118_v22 = vmul.f32 0.2, %v94_v9 }
  0x65   :  { %vm607_vm7 = vcmp.ge.f32.partialorder %v95_v13, 0.0  ;;  %v97_v23 = vld [vmem:[%s6417_s0 + $0x2c8] sm:$0xff]  ;;  %v2139_v24 = vmul.f32 1.4142135, %v1627_v21  ;;  %v1628_v25 = vsel %vm604_vm4, %v92_v4, %v1116_v17  ;;  %v1629_v26 = vsel %vm605_vm5, %v93_v5, %v1117_v18  ;;  %v98_v28 = vld [vmem:[%s6417_s0 + $0x2d0] sm:$0xff]  ;;  %v99_v29 = vld [vmem:[%s6417_s0 + $0x2d8] sm:$0xff] }
  0x66   :  { %v1119_v27 = vmul.f32 0.2, %v95_v13  ;;  %2650 = vst [vmem:[%s6418_s1 + $0x290] sm:$0xff] %v2138_v20  ;;  %v2140_v30 = vmul.f32 1.4142135, %v1628_v25  ;;  %v1630_v32 = vsel %vm606_vm6, %v94_v9, %v1118_v22  ;;  %vm608_vm8 = vcmp.ge.f32.partialorder %v96_v19, 0.0 }
  0x67   :  { %v2141_v31 = vmul.f32 1.4142135, %v1629_v26  ;;  %v100_v33 = vld [vmem:[%s6417_s0 + $0x2e0] sm:$0xff]  ;;  %2651 = vst [vmem:[%s6418_s1 + $0x298] sm:$0xff] %v2139_v24  ;;  %v2142_v34 = vmul.f32 1.4142135, %v1630_v32 }
  0x68   :  { %v1631_v35 = vsel %vm607_vm7, %v95_v13, %v1119_v27  ;;  %v1120_v36 = vmul.f32 0.2, %v96_v19  ;;  %vm609_vm9 = vcmp.ge.f32.partialorder %v97_v23, 0.0  ;;  %v101_v37 = vld [vmem:[%s6417_s0 + $0x2e8] sm:$0xff]  ;;  %2652 = vst [vmem:[%s6418_s1 + $0x2a0] sm:$0xff] %v2140_v30  ;;  %vm610_vm10 = vcmp.ge.f32.partialorder %v98_v28, 0.0 }
  0x69   :  { %2653 = vst [vmem:[%s6418_s1 + $0x2a8] sm:$0xff] %v2141_v31  ;;  %v2143_v38 = vmul.f32 1.4142135, %v1631_v35  ;;  %v1121_v39 = vmul.f32 0.2, %v97_v23  ;;  %vm611_vm11 = vcmp.ge.f32.partialorder %v99_v29, 0.0 }
  0x6a   :  { %2654 = vst [vmem:[%s6418_s1 + $0x2b0] sm:$0xff] %v2142_v34  ;;  %v1632_v40 = vsel %vm608_vm8, %v96_v19, %v1120_v36  ;;  %v1122_v41 = vmul.f32 0.2, %v98_v28  ;;  %v1123_v42 = vmul.f32 0.2, %v99_v29  ;;  %vm612_vm12 = vcmp.ge.f32.partialorder %v100_v33, 0.0 }
  0x6b   :  { %v102_v43 = vld [vmem:[%s6417_s0 + $0x2f0] sm:$0xff]  ;;  %2655 = vst [vmem:[%s6418_s1 + $0x2b8] sm:$0xff] %v2143_v38  ;;  %v2144_v44 = vmul.f32 1.4142135, %v1632_v40  ;;  %v1633_v45 = vsel %vm609_vm9, %v97_v23, %v1121_v39  ;;  %v1124_v46 = vmul.f32 0.2, %v100_v33 }
  0x6c   :  { %vm613_vm13 = vcmp.ge.f32.partialorder %v101_v37, 0.0  ;;  %v103_v47 = vld [vmem:[%s6417_s0 + $0x2f8] sm:$0xff]  ;;  %v2145_v48 = vmul.f32 1.4142135, %v1633_v45  ;;  %v1634_v49 = vsel %vm610_vm10, %v98_v28, %v1122_v41  ;;  %v1635_v50 = vsel %vm611_vm11, %v99_v29, %v1123_v42  ;;  %v104_v52 = vld [vmem:[%s6417_s0 + $0x300] sm:$0xff]  ;;  %v105_v53 = vld [vmem:[%s6417_s0 + $0x308] sm:$0xff] }
  0x6d   :  { %v1125_v51 = vmul.f32 0.2, %v101_v37  ;;  %2656 = vst [vmem:[%s6418_s1 + $0x2c0] sm:$0xff] %v2144_v44  ;;  %v2146_v54 = vmul.f32 1.4142135, %v1634_v49  ;;  %v1636_v56 = vsel %vm612_vm12, %v100_v33, %v1124_v46  ;;  %vm614_vm14 = vcmp.ge.f32.partialorder %v102_v43, 0.0 }
  0x6e   :  { %v2147_v55 = vmul.f32 1.4142135, %v1635_v50  ;;  %v106_v57 = vld [vmem:[%s6417_s0 + $0x310] sm:$0xff]  ;;  %2657 = vst [vmem:[%s6418_s1 + $0x2c8] sm:$0xff] %v2145_v48  ;;  %v2148_v58 = vmul.f32 1.4142135, %v1636_v56 }
  0x6f   :  { %v1637_v59 = vsel %vm613_vm13, %v101_v37, %v1125_v51  ;;  %v1126_v60 = vmul.f32 0.2, %v102_v43  ;;  %vm615_vm15 = vcmp.ge.f32.partialorder %v103_v47, 0.0  ;;  %v107_v61 = vld [vmem:[%s6417_s0 + $0x318] sm:$0xff]  ;;  %2658 = vst [vmem:[%s6418_s1 + $0x2d0] sm:$0xff] %v2146_v54  ;;  %vm616_vm0 = vcmp.ge.f32.partialorder %v104_v52, 0.0 }
  0x70   :  { %2659 = vst [vmem:[%s6418_s1 + $0x2d8] sm:$0xff] %v2147_v55  ;;  %v2149_v62 = vmul.f32 1.4142135, %v1637_v59  ;;  %v1127_v63 = vmul.f32 0.2, %v103_v47  ;;  %vm617_vm1 = vcmp.ge.f32.partialorder %v105_v53, 0.0 }
  0x71   :  { %2660 = vst [vmem:[%s6418_s1 + $0x2e0] sm:$0xff] %v2148_v58  ;;  %v1638_v0 = vsel %vm614_vm14, %v102_v43, %v1126_v60  ;;  %v1128_v1 = vmul.f32 0.2, %v104_v52  ;;  %v1129_v2 = vmul.f32 0.2, %v105_v53  ;;  %vm618_vm2 = vcmp.ge.f32.partialorder %v106_v57, 0.0 }
  0x72   :  { %v108_v3 = vld [vmem:[%s6417_s0 + $0x320] sm:$0xff]  ;;  %2661 = vst [vmem:[%s6418_s1 + $0x2e8] sm:$0xff] %v2149_v62  ;;  %v2150_v4 = vmul.f32 1.4142135, %v1638_v0  ;;  %v1639_v5 = vsel %vm615_vm15, %v103_v47, %v1127_v63  ;;  %v1130_v6 = vmul.f32 0.2, %v106_v57 }
  0x73   :  { %vm619_vm3 = vcmp.ge.f32.partialorder %v107_v61, 0.0  ;;  %v109_v7 = vld [vmem:[%s6417_s0 + $0x328] sm:$0xff]  ;;  %v2151_v8 = vmul.f32 1.4142135, %v1639_v5  ;;  %v1640_v9 = vsel %vm616_vm0, %v104_v52, %v1128_v1  ;;  %v1641_v10 = vsel %vm617_vm1, %v105_v53, %v1129_v2  ;;  %v110_v12 = vld [vmem:[%s6417_s0 + $0x330] sm:$0xff]  ;;  %v111_v13 = vld [vmem:[%s6417_s0 + $0x338] sm:$0xff] }
  0x74   :  { %v1131_v11 = vmul.f32 0.2, %v107_v61  ;;  %2662 = vst [vmem:[%s6418_s1 + $0x2f0] sm:$0xff] %v2150_v4  ;;  %v2152_v14 = vmul.f32 1.4142135, %v1640_v9  ;;  %v1642_v16 = vsel %vm618_vm2, %v106_v57, %v1130_v6  ;;  %vm620_vm4 = vcmp.ge.f32.partialorder %v108_v3, 0.0 }
  0x75   :  { %v2153_v15 = vmul.f32 1.4142135, %v1641_v10  ;;  %v112_v17 = vld [vmem:[%s6417_s0 + $0x340] sm:$0xff]  ;;  %2663 = vst [vmem:[%s6418_s1 + $0x2f8] sm:$0xff] %v2151_v8  ;;  %v2154_v18 = vmul.f32 1.4142135, %v1642_v16 }
  0x76   :  { %v1643_v19 = vsel %vm619_vm3, %v107_v61, %v1131_v11  ;;  %v1132_v20 = vmul.f32 0.2, %v108_v3  ;;  %vm621_vm5 = vcmp.ge.f32.partialorder %v109_v7, 0.0  ;;  %v113_v21 = vld [vmem:[%s6417_s0 + $0x348] sm:$0xff]  ;;  %2664 = vst [vmem:[%s6418_s1 + $0x300] sm:$0xff] %v2152_v14  ;;  %vm622_vm6 = vcmp.ge.f32.partialorder %v110_v12, 0.0 }
  0x77   :  { %2665 = vst [vmem:[%s6418_s1 + $0x308] sm:$0xff] %v2153_v15  ;;  %v2155_v22 = vmul.f32 1.4142135, %v1643_v19  ;;  %v1133_v23 = vmul.f32 0.2, %v109_v7  ;;  %vm623_vm7 = vcmp.ge.f32.partialorder %v111_v13, 0.0 }
  0x78   :  { %2666 = vst [vmem:[%s6418_s1 + $0x310] sm:$0xff] %v2154_v18  ;;  %v1644_v24 = vsel %vm620_vm4, %v108_v3, %v1132_v20  ;;  %v1134_v25 = vmul.f32 0.2, %v110_v12  ;;  %v1135_v26 = vmul.f32 0.2, %v111_v13  ;;  %vm624_vm8 = vcmp.ge.f32.partialorder %v112_v17, 0.0 }
  0x79   :  { %v114_v27 = vld [vmem:[%s6417_s0 + $0x350] sm:$0xff]  ;;  %2667 = vst [vmem:[%s6418_s1 + $0x318] sm:$0xff] %v2155_v22  ;;  %v2156_v28 = vmul.f32 1.4142135, %v1644_v24  ;;  %v1645_v29 = vsel %vm621_vm5, %v109_v7, %v1133_v23  ;;  %v1136_v30 = vmul.f32 0.2, %v112_v17 }
  0x7a   :  { %vm625_vm9 = vcmp.ge.f32.partialorder %v113_v21, 0.0  ;;  %v115_v31 = vld [vmem:[%s6417_s0 + $0x358] sm:$0xff]  ;;  %v2157_v32 = vmul.f32 1.4142135, %v1645_v29  ;;  %v1646_v33 = vsel %vm622_vm6, %v110_v12, %v1134_v25  ;;  %v1647_v34 = vsel %vm623_vm7, %v111_v13, %v1135_v26  ;;  %v116_v36 = vld [vmem:[%s6417_s0 + $0x360] sm:$0xff]  ;;  %v117_v37 = vld [vmem:[%s6417_s0 + $0x368] sm:$0xff] }
  0x7b   :  { %v1137_v35 = vmul.f32 0.2, %v113_v21  ;;  %2668 = vst [vmem:[%s6418_s1 + $0x320] sm:$0xff] %v2156_v28  ;;  %v2158_v38 = vmul.f32 1.4142135, %v1646_v33  ;;  %v1648_v40 = vsel %vm624_vm8, %v112_v17, %v1136_v30  ;;  %vm626_vm10 = vcmp.ge.f32.partialorder %v114_v27, 0.0 }
  0x7c   :  { %v2159_v39 = vmul.f32 1.4142135, %v1647_v34  ;;  %v118_v41 = vld [vmem:[%s6417_s0 + $0x370] sm:$0xff]  ;;  %2669 = vst [vmem:[%s6418_s1 + $0x328] sm:$0xff] %v2157_v32  ;;  %v2160_v42 = vmul.f32 1.4142135, %v1648_v40 }
  0x7d   :  { %v1649_v43 = vsel %vm625_vm9, %v113_v21, %v1137_v35  ;;  %v1138_v44 = vmul.f32 0.2, %v114_v27  ;;  %vm627_vm11 = vcmp.ge.f32.partialorder %v115_v31, 0.0  ;;  %v119_v45 = vld [vmem:[%s6417_s0 + $0x378] sm:$0xff]  ;;  %2670 = vst [vmem:[%s6418_s1 + $0x330] sm:$0xff] %v2158_v38  ;;  %vm628_vm12 = vcmp.ge.f32.partialorder %v116_v36, 0.0 }
  0x7e   :  { %2671 = vst [vmem:[%s6418_s1 + $0x338] sm:$0xff] %v2159_v39  ;;  %v2161_v46 = vmul.f32 1.4142135, %v1649_v43  ;;  %v1139_v47 = vmul.f32 0.2, %v115_v31  ;;  %vm629_vm13 = vcmp.ge.f32.partialorder %v117_v37, 0.0 }
  0x7f   :  { %2672 = vst [vmem:[%s6418_s1 + $0x340] sm:$0xff] %v2160_v42  ;;  %v1650_v48 = vsel %vm626_vm10, %v114_v27, %v1138_v44  ;;  %v1140_v49 = vmul.f32 0.2, %v116_v36  ;;  %v1141_v50 = vmul.f32 0.2, %v117_v37  ;;  %vm630_vm14 = vcmp.ge.f32.partialorder %v118_v41, 0.0 }
  0x80   :  { %v120_v51 = vld [vmem:[%s6417_s0 + $0x380] sm:$0xff]  ;;  %2673 = vst [vmem:[%s6418_s1 + $0x348] sm:$0xff] %v2161_v46  ;;  %v2162_v52 = vmul.f32 1.4142135, %v1650_v48  ;;  %v1651_v53 = vsel %vm627_vm11, %v115_v31, %v1139_v47  ;;  %v1142_v54 = vmul.f32 0.2, %v118_v41 }
  0x81   :  { %vm631_vm15 = vcmp.ge.f32.partialorder %v119_v45, 0.0  ;;  %v121_v55 = vld [vmem:[%s6417_s0 + $0x388] sm:$0xff]  ;;  %v2163_v56 = vmul.f32 1.4142135, %v1651_v53  ;;  %v1652_v57 = vsel %vm628_vm12, %v116_v36, %v1140_v49  ;;  %v1653_v58 = vsel %vm629_vm13, %v117_v37, %v1141_v50  ;;  %v122_v60 = vld [vmem:[%s6417_s0 + $0x390] sm:$0xff]  ;;  %v123_v61 = vld [vmem:[%s6417_s0 + $0x398] sm:$0xff] }
  0x82   :  { %v1143_v59 = vmul.f32 0.2, %v119_v45  ;;  %2674 = vst [vmem:[%s6418_s1 + $0x350] sm:$0xff] %v2162_v52  ;;  %v2164_v62 = vmul.f32 1.4142135, %v1652_v57  ;;  %v1654_v0 = vsel %vm630_vm14, %v118_v41, %v1142_v54  ;;  %vm632_vm0 = vcmp.ge.f32.partialorder %v120_v51, 0.0 }
  0x83   :  { %v2165_v63 = vmul.f32 1.4142135, %v1653_v58  ;;  %v124_v1 = vld [vmem:[%s6417_s0 + $0x3a0] sm:$0xff]  ;;  %2675 = vst [vmem:[%s6418_s1 + $0x358] sm:$0xff] %v2163_v56  ;;  %v2166_v2 = vmul.f32 1.4142135, %v1654_v0 }
  0x84   :  { %v1655_v3 = vsel %vm631_vm15, %v119_v45, %v1143_v59  ;;  %v1144_v4 = vmul.f32 0.2, %v120_v51  ;;  %vm633_vm1 = vcmp.ge.f32.partialorder %v121_v55, 0.0  ;;  %v125_v5 = vld [vmem:[%s6417_s0 + $0x3a8] sm:$0xff]  ;;  %2676 = vst [vmem:[%s6418_s1 + $0x360] sm:$0xff] %v2164_v62  ;;  %vm634_vm2 = vcmp.ge.f32.partialorder %v122_v60, 0.0 }
  0x85   :  { %2677 = vst [vmem:[%s6418_s1 + $0x368] sm:$0xff] %v2165_v63  ;;  %v2167_v6 = vmul.f32 1.4142135, %v1655_v3  ;;  %v1145_v7 = vmul.f32 0.2, %v121_v55  ;;  %vm635_vm3 = vcmp.ge.f32.partialorder %v123_v61, 0.0 }
  0x86   :  { %2678 = vst [vmem:[%s6418_s1 + $0x370] sm:$0xff] %v2166_v2  ;;  %v1656_v8 = vsel %vm632_vm0, %v120_v51, %v1144_v4  ;;  %v1146_v9 = vmul.f32 0.2, %v122_v60  ;;  %v1147_v10 = vmul.f32 0.2, %v123_v61  ;;  %vm636_vm4 = vcmp.ge.f32.partialorder %v124_v1, 0.0 }
  0x87   :  { %v126_v11 = vld [vmem:[%s6417_s0 + $0x3b0] sm:$0xff]  ;;  %2679 = vst [vmem:[%s6418_s1 + $0x378] sm:$0xff] %v2167_v6  ;;  %v2168_v12 = vmul.f32 1.4142135, %v1656_v8  ;;  %v1657_v13 = vsel %vm633_vm1, %v121_v55, %v1145_v7  ;;  %v1148_v14 = vmul.f32 0.2, %v124_v1 }
  0x88   :  { %vm637_vm5 = vcmp.ge.f32.partialorder %v125_v5, 0.0  ;;  %v127_v15 = vld [vmem:[%s6417_s0 + $0x3b8] sm:$0xff]  ;;  %v2169_v16 = vmul.f32 1.4142135, %v1657_v13  ;;  %v1658_v17 = vsel %vm634_vm2, %v122_v60, %v1146_v9  ;;  %v1659_v18 = vsel %vm635_vm3, %v123_v61, %v1147_v10  ;;  %v128_v20 = vld [vmem:[%s6417_s0 + $0x3c0] sm:$0xff]  ;;  %v129_v21 = vld [vmem:[%s6417_s0 + $0x3c8] sm:$0xff] }
  0x89   :  { %v1149_v19 = vmul.f32 0.2, %v125_v5  ;;  %2680 = vst [vmem:[%s6418_s1 + $0x380] sm:$0xff] %v2168_v12  ;;  %v2170_v22 = vmul.f32 1.4142135, %v1658_v17  ;;  %v1660_v24 = vsel %vm636_vm4, %v124_v1, %v1148_v14  ;;  %vm638_vm6 = vcmp.ge.f32.partialorder %v126_v11, 0.0 }
  0x8a   :  { %v2171_v23 = vmul.f32 1.4142135, %v1659_v18  ;;  %v130_v25 = vld [vmem:[%s6417_s0 + $0x3d0] sm:$0xff]  ;;  %2681 = vst [vmem:[%s6418_s1 + $0x388] sm:$0xff] %v2169_v16  ;;  %v2172_v26 = vmul.f32 1.4142135, %v1660_v24 }
  0x8b   :  { %v1661_v27 = vsel %vm637_vm5, %v125_v5, %v1149_v19  ;;  %v1150_v28 = vmul.f32 0.2, %v126_v11  ;;  %vm639_vm7 = vcmp.ge.f32.partialorder %v127_v15, 0.0  ;;  %v131_v29 = vld [vmem:[%s6417_s0 + $0x3d8] sm:$0xff]  ;;  %2682 = vst [vmem:[%s6418_s1 + $0x390] sm:$0xff] %v2170_v22  ;;  %vm640_vm8 = vcmp.ge.f32.partialorder %v128_v20, 0.0 }
  0x8c   :  { %2683 = vst [vmem:[%s6418_s1 + $0x398] sm:$0xff] %v2171_v23  ;;  %v2173_v30 = vmul.f32 1.4142135, %v1661_v27  ;;  %v1151_v31 = vmul.f32 0.2, %v127_v15  ;;  %vm641_vm9 = vcmp.ge.f32.partialorder %v129_v21, 0.0 }
  0x8d   :  { %2684 = vst [vmem:[%s6418_s1 + $0x3a0] sm:$0xff] %v2172_v26  ;;  %v1662_v32 = vsel %vm638_vm6, %v126_v11, %v1150_v28  ;;  %v1152_v33 = vmul.f32 0.2, %v128_v20  ;;  %v1153_v34 = vmul.f32 0.2, %v129_v21  ;;  %vm642_vm10 = vcmp.ge.f32.partialorder %v130_v25, 0.0 }
  0x8e   :  { %v132_v35 = vld [vmem:[%s6417_s0 + $0x3e0] sm:$0xff]  ;;  %2685 = vst [vmem:[%s6418_s1 + $0x3a8] sm:$0xff] %v2173_v30  ;;  %v2174_v36 = vmul.f32 1.4142135, %v1662_v32  ;;  %v1663_v37 = vsel %vm639_vm7, %v127_v15, %v1151_v31  ;;  %v1154_v38 = vmul.f32 0.2, %v130_v25 }
  0x8f   :  { %vm643_vm11 = vcmp.ge.f32.partialorder %v131_v29, 0.0  ;;  %v133_v39 = vld [vmem:[%s6417_s0 + $0x3e8] sm:$0xff]  ;;  %v2175_v40 = vmul.f32 1.4142135, %v1663_v37  ;;  %v1664_v41 = vsel %vm640_vm8, %v128_v20, %v1152_v33  ;;  %v1665_v42 = vsel %vm641_vm9, %v129_v21, %v1153_v34  ;;  %v134_v44 = vld [vmem:[%s6417_s0 + $0x3f0] sm:$0xff]  ;;  %v135_v45 = vld [vmem:[%s6417_s0 + $0x3f8] sm:$0xff] }
  0x90   :  { %v1155_v43 = vmul.f32 0.2, %v131_v29  ;;  %2686 = vst [vmem:[%s6418_s1 + $0x3b0] sm:$0xff] %v2174_v36  ;;  %v2176_v46 = vmul.f32 1.4142135, %v1664_v41  ;;  %v1666_v48 = vsel %vm642_vm10, %v130_v25, %v1154_v38  ;;  %vm644_vm12 = vcmp.ge.f32.partialorder %v132_v35, 0.0 }
  0x91   :  { %v2177_v47 = vmul.f32 1.4142135, %v1665_v42  ;;  %v136_v49 = vld [vmem:[%s6417_s0 + $0x400] sm:$0xff]  ;;  %2687 = vst [vmem:[%s6418_s1 + $0x3b8] sm:$0xff] %v2175_v40  ;;  %v2178_v50 = vmul.f32 1.4142135, %v1666_v48 }
  0x92   :  { %v1667_v51 = vsel %vm643_vm11, %v131_v29, %v1155_v43  ;;  %v1156_v52 = vmul.f32 0.2, %v132_v35  ;;  %vm645_vm13 = vcmp.ge.f32.partialorder %v133_v39, 0.0  ;;  %v137_v53 = vld [vmem:[%s6417_s0 + $0x408] sm:$0xff]  ;;  %2688 = vst [vmem:[%s6418_s1 + $0x3c0] sm:$0xff] %v2176_v46  ;;  %vm646_vm14 = vcmp.ge.f32.partialorder %v134_v44, 0.0 }
  0x93   :  { %2689 = vst [vmem:[%s6418_s1 + $0x3c8] sm:$0xff] %v2177_v47  ;;  %v2179_v54 = vmul.f32 1.4142135, %v1667_v51  ;;  %v1157_v55 = vmul.f32 0.2, %v133_v39  ;;  %vm647_vm15 = vcmp.ge.f32.partialorder %v135_v45, 0.0 }
  0x94   :  { %2690 = vst [vmem:[%s6418_s1 + $0x3d0] sm:$0xff] %v2178_v50  ;;  %v1668_v56 = vsel %vm644_vm12, %v132_v35, %v1156_v52  ;;  %v1158_v57 = vmul.f32 0.2, %v134_v44  ;;  %v1159_v58 = vmul.f32 0.2, %v135_v45  ;;  %vm648_vm0 = vcmp.ge.f32.partialorder %v136_v49, 0.0 }
  0x95   :  { %v138_v59 = vld [vmem:[%s6417_s0 + $0x410] sm:$0xff]  ;;  %2691 = vst [vmem:[%s6418_s1 + $0x3d8] sm:$0xff] %v2179_v54  ;;  %v2180_v60 = vmul.f32 1.4142135, %v1668_v56  ;;  %v1669_v61 = vsel %vm645_vm13, %v133_v39, %v1157_v55  ;;  %v1160_v62 = vmul.f32 0.2, %v136_v49 }
  0x96   :  { %vm649_vm1 = vcmp.ge.f32.partialorder %v137_v53, 0.0  ;;  %v139_v63 = vld [vmem:[%s6417_s0 + $0x418] sm:$0xff]  ;;  %v2181_v0 = vmul.f32 1.4142135, %v1669_v61  ;;  %v1670_v1 = vsel %vm646_vm14, %v134_v44, %v1158_v57  ;;  %v1671_v2 = vsel %vm647_vm15, %v135_v45, %v1159_v58  ;;  %v140_v4 = vld [vmem:[%s6417_s0 + $0x420] sm:$0xff]  ;;  %v141_v5 = vld [vmem:[%s6417_s0 + $0x428] sm:$0xff] }
  0x97   :  { %v1161_v3 = vmul.f32 0.2, %v137_v53  ;;  %2692 = vst [vmem:[%s6418_s1 + $0x3e0] sm:$0xff] %v2180_v60  ;;  %v2182_v6 = vmul.f32 1.4142135, %v1670_v1  ;;  %v1672_v8 = vsel %vm648_vm0, %v136_v49, %v1160_v62  ;;  %vm650_vm2 = vcmp.ge.f32.partialorder %v138_v59, 0.0 }
  0x98   :  { %v2183_v7 = vmul.f32 1.4142135, %v1671_v2  ;;  %v142_v9 = vld [vmem:[%s6417_s0 + $0x430] sm:$0xff]  ;;  %2693 = vst [vmem:[%s6418_s1 + $0x3e8] sm:$0xff] %v2181_v0  ;;  %v2184_v10 = vmul.f32 1.4142135, %v1672_v8 }
  0x99   :  { %v1673_v11 = vsel %vm649_vm1, %v137_v53, %v1161_v3  ;;  %v1162_v12 = vmul.f32 0.2, %v138_v59  ;;  %vm651_vm3 = vcmp.ge.f32.partialorder %v139_v63, 0.0  ;;  %v143_v13 = vld [vmem:[%s6417_s0 + $0x438] sm:$0xff]  ;;  %2694 = vst [vmem:[%s6418_s1 + $0x3f0] sm:$0xff] %v2182_v6  ;;  %vm652_vm4 = vcmp.ge.f32.partialorder %v140_v4, 0.0 }
  0x9a   :  { %2695 = vst [vmem:[%s6418_s1 + $0x3f8] sm:$0xff] %v2183_v7  ;;  %v2185_v14 = vmul.f32 1.4142135, %v1673_v11  ;;  %v1163_v15 = vmul.f32 0.2, %v139_v63  ;;  %vm653_vm5 = vcmp.ge.f32.partialorder %v141_v5, 0.0 }
  0x9b   :  { %2696 = vst [vmem:[%s6418_s1 + $0x400] sm:$0xff] %v2184_v10  ;;  %v1674_v16 = vsel %vm650_vm2, %v138_v59, %v1162_v12  ;;  %v1164_v17 = vmul.f32 0.2, %v140_v4  ;;  %v1165_v18 = vmul.f32 0.2, %v141_v5  ;;  %vm654_vm6 = vcmp.ge.f32.partialorder %v142_v9, 0.0 }
  0x9c   :  { %v144_v19 = vld [vmem:[%s6417_s0 + $0x440] sm:$0xff]  ;;  %2697 = vst [vmem:[%s6418_s1 + $0x408] sm:$0xff] %v2185_v14  ;;  %v2186_v20 = vmul.f32 1.4142135, %v1674_v16  ;;  %v1675_v21 = vsel %vm651_vm3, %v139_v63, %v1163_v15  ;;  %v1166_v22 = vmul.f32 0.2, %v142_v9 }
  0x9d   :  { %vm655_vm7 = vcmp.ge.f32.partialorder %v143_v13, 0.0  ;;  %v145_v23 = vld [vmem:[%s6417_s0 + $0x448] sm:$0xff]  ;;  %v2187_v24 = vmul.f32 1.4142135, %v1675_v21  ;;  %v1676_v25 = vsel %vm652_vm4, %v140_v4, %v1164_v17  ;;  %v1677_v26 = vsel %vm653_vm5, %v141_v5, %v1165_v18  ;;  %v146_v28 = vld [vmem:[%s6417_s0 + $0x450] sm:$0xff]  ;;  %v147_v29 = vld [vmem:[%s6417_s0 + $0x458] sm:$0xff] }
  0x9e   :  { %v1167_v27 = vmul.f32 0.2, %v143_v13  ;;  %2698 = vst [vmem:[%s6418_s1 + $0x410] sm:$0xff] %v2186_v20  ;;  %v2188_v30 = vmul.f32 1.4142135, %v1676_v25  ;;  %v1678_v32 = vsel %vm654_vm6, %v142_v9, %v1166_v22  ;;  %vm656_vm8 = vcmp.ge.f32.partialorder %v144_v19, 0.0 }
  0x9f   :  { %v2189_v31 = vmul.f32 1.4142135, %v1677_v26  ;;  %v148_v33 = vld [vmem:[%s6417_s0 + $0x460] sm:$0xff]  ;;  %2699 = vst [vmem:[%s6418_s1 + $0x418] sm:$0xff] %v2187_v24  ;;  %v2190_v34 = vmul.f32 1.4142135, %v1678_v32 }
  0xa0   :  { %v1679_v35 = vsel %vm655_vm7, %v143_v13, %v1167_v27  ;;  %v1168_v36 = vmul.f32 0.2, %v144_v19  ;;  %vm657_vm9 = vcmp.ge.f32.partialorder %v145_v23, 0.0  ;;  %v149_v37 = vld [vmem:[%s6417_s0 + $0x468] sm:$0xff]  ;;  %2700 = vst [vmem:[%s6418_s1 + $0x420] sm:$0xff] %v2188_v30  ;;  %vm658_vm10 = vcmp.ge.f32.partialorder %v146_v28, 0.0 }
  0xa1   :  { %2701 = vst [vmem:[%s6418_s1 + $0x428] sm:$0xff] %v2189_v31  ;;  %v2191_v38 = vmul.f32 1.4142135, %v1679_v35  ;;  %v1169_v39 = vmul.f32 0.2, %v145_v23  ;;  %vm659_vm11 = vcmp.ge.f32.partialorder %v147_v29, 0.0 }
  0xa2   :  { %2702 = vst [vmem:[%s6418_s1 + $0x430] sm:$0xff] %v2190_v34  ;;  %v1680_v40 = vsel %vm656_vm8, %v144_v19, %v1168_v36  ;;  %v1170_v41 = vmul.f32 0.2, %v146_v28  ;;  %v1171_v42 = vmul.f32 0.2, %v147_v29  ;;  %vm660_vm12 = vcmp.ge.f32.partialorder %v148_v33, 0.0 }
  0xa3   :  { %v150_v43 = vld [vmem:[%s6417_s0 + $0x470] sm:$0xff]  ;;  %2703 = vst [vmem:[%s6418_s1 + $0x438] sm:$0xff] %v2191_v38  ;;  %v2192_v44 = vmul.f32 1.4142135, %v1680_v40  ;;  %v1681_v45 = vsel %vm657_vm9, %v145_v23, %v1169_v39  ;;  %v1172_v46 = vmul.f32 0.2, %v148_v33 }
  0xa4   :  { %vm661_vm13 = vcmp.ge.f32.partialorder %v149_v37, 0.0  ;;  %v151_v47 = vld [vmem:[%s6417_s0 + $0x478] sm:$0xff]  ;;  %v2193_v48 = vmul.f32 1.4142135, %v1681_v45  ;;  %v1682_v49 = vsel %vm658_vm10, %v146_v28, %v1170_v41  ;;  %v1683_v50 = vsel %vm659_vm11, %v147_v29, %v1171_v42  ;;  %v152_v52 = vld [vmem:[%s6417_s0 + $0x480] sm:$0xff]  ;;  %v153_v53 = vld [vmem:[%s6417_s0 + $0x488] sm:$0xff] }
  0xa5   :  { %v1173_v51 = vmul.f32 0.2, %v149_v37  ;;  %2704 = vst [vmem:[%s6418_s1 + $0x440] sm:$0xff] %v2192_v44  ;;  %v2194_v54 = vmul.f32 1.4142135, %v1682_v49  ;;  %v1684_v56 = vsel %vm660_vm12, %v148_v33, %v1172_v46  ;;  %vm662_vm14 = vcmp.ge.f32.partialorder %v150_v43, 0.0 }
  0xa6   :  { %v2195_v55 = vmul.f32 1.4142135, %v1683_v50  ;;  %v154_v57 = vld [vmem:[%s6417_s0 + $0x490] sm:$0xff]  ;;  %2705 = vst [vmem:[%s6418_s1 + $0x448] sm:$0xff] %v2193_v48  ;;  %v2196_v58 = vmul.f32 1.4142135, %v1684_v56 }
  0xa7   :  { %v1685_v59 = vsel %vm661_vm13, %v149_v37, %v1173_v51  ;;  %v1174_v60 = vmul.f32 0.2, %v150_v43  ;;  %vm663_vm15 = vcmp.ge.f32.partialorder %v151_v47, 0.0  ;;  %v155_v61 = vld [vmem:[%s6417_s0 + $0x498] sm:$0xff]  ;;  %2706 = vst [vmem:[%s6418_s1 + $0x450] sm:$0xff] %v2194_v54  ;;  %vm664_vm0 = vcmp.ge.f32.partialorder %v152_v52, 0.0 }
  0xa8   :  { %2707 = vst [vmem:[%s6418_s1 + $0x458] sm:$0xff] %v2195_v55  ;;  %v2197_v62 = vmul.f32 1.4142135, %v1685_v59  ;;  %v1175_v63 = vmul.f32 0.2, %v151_v47  ;;  %vm665_vm1 = vcmp.ge.f32.partialorder %v153_v53, 0.0 }
  0xa9   :  { %2708 = vst [vmem:[%s6418_s1 + $0x460] sm:$0xff] %v2196_v58  ;;  %v1686_v0 = vsel %vm662_vm14, %v150_v43, %v1174_v60  ;;  %v1176_v1 = vmul.f32 0.2, %v152_v52  ;;  %v1177_v2 = vmul.f32 0.2, %v153_v53  ;;  %vm666_vm2 = vcmp.ge.f32.partialorder %v154_v57, 0.0 }
  0xaa   :  { %v156_v3 = vld [vmem:[%s6417_s0 + $0x4a0] sm:$0xff]  ;;  %2709 = vst [vmem:[%s6418_s1 + $0x468] sm:$0xff] %v2197_v62  ;;  %v2198_v4 = vmul.f32 1.4142135, %v1686_v0  ;;  %v1687_v5 = vsel %vm663_vm15, %v151_v47, %v1175_v63  ;;  %v1178_v6 = vmul.f32 0.2, %v154_v57 }
  0xab   :  { %vm667_vm3 = vcmp.ge.f32.partialorder %v155_v61, 0.0  ;;  %v157_v7 = vld [vmem:[%s6417_s0 + $0x4a8] sm:$0xff]  ;;  %v2199_v8 = vmul.f32 1.4142135, %v1687_v5  ;;  %v1688_v9 = vsel %vm664_vm0, %v152_v52, %v1176_v1  ;;  %v1689_v10 = vsel %vm665_vm1, %v153_v53, %v1177_v2  ;;  %v158_v12 = vld [vmem:[%s6417_s0 + $0x4b0] sm:$0xff]  ;;  %v159_v13 = vld [vmem:[%s6417_s0 + $0x4b8] sm:$0xff] }
  0xac   :  { %v1179_v11 = vmul.f32 0.2, %v155_v61  ;;  %2710 = vst [vmem:[%s6418_s1 + $0x470] sm:$0xff] %v2198_v4  ;;  %v2200_v14 = vmul.f32 1.4142135, %v1688_v9  ;;  %v1690_v16 = vsel %vm666_vm2, %v154_v57, %v1178_v6  ;;  %vm668_vm4 = vcmp.ge.f32.partialorder %v156_v3, 0.0 }
  0xad   :  { %v2201_v15 = vmul.f32 1.4142135, %v1689_v10  ;;  %v160_v17 = vld [vmem:[%s6417_s0 + $0x4c0] sm:$0xff]  ;;  %2711 = vst [vmem:[%s6418_s1 + $0x478] sm:$0xff] %v2199_v8  ;;  %v2202_v18 = vmul.f32 1.4142135, %v1690_v16 }
  0xae   :  { %v1691_v19 = vsel %vm667_vm3, %v155_v61, %v1179_v11  ;;  %v1180_v20 = vmul.f32 0.2, %v156_v3  ;;  %vm669_vm5 = vcmp.ge.f32.partialorder %v157_v7, 0.0  ;;  %v161_v21 = vld [vmem:[%s6417_s0 + $0x4c8] sm:$0xff]  ;;  %2712 = vst [vmem:[%s6418_s1 + $0x480] sm:$0xff] %v2200_v14  ;;  %vm670_vm6 = vcmp.ge.f32.partialorder %v158_v12, 0.0 }
  0xaf   :  { %2713 = vst [vmem:[%s6418_s1 + $0x488] sm:$0xff] %v2201_v15  ;;  %v2203_v22 = vmul.f32 1.4142135, %v1691_v19  ;;  %v1181_v23 = vmul.f32 0.2, %v157_v7  ;;  %vm671_vm7 = vcmp.ge.f32.partialorder %v159_v13, 0.0 }
  0xb0   :  { %2714 = vst [vmem:[%s6418_s1 + $0x490] sm:$0xff] %v2202_v18  ;;  %v1692_v24 = vsel %vm668_vm4, %v156_v3, %v1180_v20  ;;  %v1182_v25 = vmul.f32 0.2, %v158_v12  ;;  %v1183_v26 = vmul.f32 0.2, %v159_v13  ;;  %vm672_vm8 = vcmp.ge.f32.partialorder %v160_v17, 0.0 }
  0xb1   :  { %v162_v27 = vld [vmem:[%s6417_s0 + $0x4d0] sm:$0xff]  ;;  %2715 = vst [vmem:[%s6418_s1 + $0x498] sm:$0xff] %v2203_v22  ;;  %v2204_v28 = vmul.f32 1.4142135, %v1692_v24  ;;  %v1693_v29 = vsel %vm669_vm5, %v157_v7, %v1181_v23  ;;  %v1184_v30 = vmul.f32 0.2, %v160_v17 }
  0xb2   :  { %vm673_vm9 = vcmp.ge.f32.partialorder %v161_v21, 0.0  ;;  %v163_v31 = vld [vmem:[%s6417_s0 + $0x4d8] sm:$0xff]  ;;  %v2205_v32 = vmul.f32 1.4142135, %v1693_v29  ;;  %v1694_v33 = vsel %vm670_vm6, %v158_v12, %v1182_v25  ;;  %v1695_v34 = vsel %vm671_vm7, %v159_v13, %v1183_v26  ;;  %v164_v36 = vld [vmem:[%s6417_s0 + $0x4e0] sm:$0xff]  ;;  %v165_v37 = vld [vmem:[%s6417_s0 + $0x4e8] sm:$0xff] }
  0xb3   :  { %v1185_v35 = vmul.f32 0.2, %v161_v21  ;;  %2716 = vst [vmem:[%s6418_s1 + $0x4a0] sm:$0xff] %v2204_v28  ;;  %v2206_v38 = vmul.f32 1.4142135, %v1694_v33  ;;  %v1696_v40 = vsel %vm672_vm8, %v160_v17, %v1184_v30  ;;  %vm674_vm10 = vcmp.ge.f32.partialorder %v162_v27, 0.0 }
  0xb4   :  { %v2207_v39 = vmul.f32 1.4142135, %v1695_v34  ;;  %v166_v41 = vld [vmem:[%s6417_s0 + $0x4f0] sm:$0xff]  ;;  %2717 = vst [vmem:[%s6418_s1 + $0x4a8] sm:$0xff] %v2205_v32  ;;  %v2208_v42 = vmul.f32 1.4142135, %v1696_v40 }
  0xb5   :  { %v1697_v43 = vsel %vm673_vm9, %v161_v21, %v1185_v35  ;;  %v1186_v44 = vmul.f32 0.2, %v162_v27  ;;  %vm675_vm11 = vcmp.ge.f32.partialorder %v163_v31, 0.0  ;;  %v167_v45 = vld [vmem:[%s6417_s0 + $0x4f8] sm:$0xff]  ;;  %2718 = vst [vmem:[%s6418_s1 + $0x4b0] sm:$0xff] %v2206_v38  ;;  %vm676_vm12 = vcmp.ge.f32.partialorder %v164_v36, 0.0 }
  0xb6   :  { %2719 = vst [vmem:[%s6418_s1 + $0x4b8] sm:$0xff] %v2207_v39  ;;  %v2209_v46 = vmul.f32 1.4142135, %v1697_v43  ;;  %v1187_v47 = vmul.f32 0.2, %v163_v31  ;;  %vm677_vm13 = vcmp.ge.f32.partialorder %v165_v37, 0.0 }
  0xb7   :  { %2720 = vst [vmem:[%s6418_s1 + $0x4c0] sm:$0xff] %v2208_v42  ;;  %v1698_v48 = vsel %vm674_vm10, %v162_v27, %v1186_v44  ;;  %v1188_v49 = vmul.f32 0.2, %v164_v36  ;;  %v1189_v50 = vmul.f32 0.2, %v165_v37  ;;  %vm678_vm14 = vcmp.ge.f32.partialorder %v166_v41, 0.0 }
  0xb8   :  { %v168_v51 = vld [vmem:[%s6417_s0 + $0x500] sm:$0xff]  ;;  %2721 = vst [vmem:[%s6418_s1 + $0x4c8] sm:$0xff] %v2209_v46  ;;  %v2210_v52 = vmul.f32 1.4142135, %v1698_v48  ;;  %v1699_v53 = vsel %vm675_vm11, %v163_v31, %v1187_v47  ;;  %v1190_v54 = vmul.f32 0.2, %v166_v41 }
  0xb9   :  { %vm679_vm15 = vcmp.ge.f32.partialorder %v167_v45, 0.0  ;;  %v169_v55 = vld [vmem:[%s6417_s0 + $0x508] sm:$0xff]  ;;  %v2211_v56 = vmul.f32 1.4142135, %v1699_v53  ;;  %v1700_v57 = vsel %vm676_vm12, %v164_v36, %v1188_v49  ;;  %v1701_v58 = vsel %vm677_vm13, %v165_v37, %v1189_v50  ;;  %v170_v60 = vld [vmem:[%s6417_s0 + $0x510] sm:$0xff]  ;;  %v171_v61 = vld [vmem:[%s6417_s0 + $0x518] sm:$0xff] }
  0xba   :  { %v1191_v59 = vmul.f32 0.2, %v167_v45  ;;  %2722 = vst [vmem:[%s6418_s1 + $0x4d0] sm:$0xff] %v2210_v52  ;;  %v2212_v62 = vmul.f32 1.4142135, %v1700_v57  ;;  %v1702_v0 = vsel %vm678_vm14, %v166_v41, %v1190_v54  ;;  %vm680_vm0 = vcmp.ge.f32.partialorder %v168_v51, 0.0 }
  0xbb   :  { %v2213_v63 = vmul.f32 1.4142135, %v1701_v58  ;;  %v172_v1 = vld [vmem:[%s6417_s0 + $0x520] sm:$0xff]  ;;  %2723 = vst [vmem:[%s6418_s1 + $0x4d8] sm:$0xff] %v2211_v56  ;;  %v2214_v2 = vmul.f32 1.4142135, %v1702_v0 }
  0xbc   :  { %v1703_v3 = vsel %vm679_vm15, %v167_v45, %v1191_v59  ;;  %v1192_v4 = vmul.f32 0.2, %v168_v51  ;;  %vm681_vm1 = vcmp.ge.f32.partialorder %v169_v55, 0.0  ;;  %v173_v5 = vld [vmem:[%s6417_s0 + $0x528] sm:$0xff]  ;;  %2724 = vst [vmem:[%s6418_s1 + $0x4e0] sm:$0xff] %v2212_v62  ;;  %vm682_vm2 = vcmp.ge.f32.partialorder %v170_v60, 0.0 }
  0xbd   :  { %2725 = vst [vmem:[%s6418_s1 + $0x4e8] sm:$0xff] %v2213_v63  ;;  %v2215_v6 = vmul.f32 1.4142135, %v1703_v3  ;;  %v1193_v7 = vmul.f32 0.2, %v169_v55  ;;  %vm683_vm3 = vcmp.ge.f32.partialorder %v171_v61, 0.0 }
  0xbe   :  { %2726 = vst [vmem:[%s6418_s1 + $0x4f0] sm:$0xff] %v2214_v2  ;;  %v1704_v8 = vsel %vm680_vm0, %v168_v51, %v1192_v4  ;;  %v1194_v9 = vmul.f32 0.2, %v170_v60  ;;  %v1195_v10 = vmul.f32 0.2, %v171_v61  ;;  %vm684_vm4 = vcmp.ge.f32.partialorder %v172_v1, 0.0 }
  0xbf   :  { %v174_v11 = vld [vmem:[%s6417_s0 + $0x530] sm:$0xff]  ;;  %2727 = vst [vmem:[%s6418_s1 + $0x4f8] sm:$0xff] %v2215_v6  ;;  %v2216_v12 = vmul.f32 1.4142135, %v1704_v8  ;;  %v1705_v13 = vsel %vm681_vm1, %v169_v55, %v1193_v7  ;;  %v1196_v14 = vmul.f32 0.2, %v172_v1 }
  0xc0   :  { %vm685_vm5 = vcmp.ge.f32.partialorder %v173_v5, 0.0  ;;  %v175_v15 = vld [vmem:[%s6417_s0 + $0x538] sm:$0xff]  ;;  %v2217_v16 = vmul.f32 1.4142135, %v1705_v13  ;;  %v1706_v17 = vsel %vm682_vm2, %v170_v60, %v1194_v9  ;;  %v1707_v18 = vsel %vm683_vm3, %v171_v61, %v1195_v10  ;;  %v176_v20 = vld [vmem:[%s6417_s0 + $0x540] sm:$0xff]  ;;  %v177_v21 = vld [vmem:[%s6417_s0 + $0x548] sm:$0xff] }
  0xc1   :  { %v1197_v19 = vmul.f32 0.2, %v173_v5  ;;  %2728 = vst [vmem:[%s6418_s1 + $0x500] sm:$0xff] %v2216_v12  ;;  %v2218_v22 = vmul.f32 1.4142135, %v1706_v17  ;;  %v1708_v24 = vsel %vm684_vm4, %v172_v1, %v1196_v14  ;;  %vm686_vm6 = vcmp.ge.f32.partialorder %v174_v11, 0.0 }
  0xc2   :  { %v2219_v23 = vmul.f32 1.4142135, %v1707_v18  ;;  %v178_v25 = vld [vmem:[%s6417_s0 + $0x550] sm:$0xff]  ;;  %2729 = vst [vmem:[%s6418_s1 + $0x508] sm:$0xff] %v2217_v16  ;;  %v2220_v26 = vmul.f32 1.4142135, %v1708_v24 }
  0xc3   :  { %v1709_v27 = vsel %vm685_vm5, %v173_v5, %v1197_v19  ;;  %v1198_v28 = vmul.f32 0.2, %v174_v11  ;;  %vm687_vm7 = vcmp.ge.f32.partialorder %v175_v15, 0.0  ;;  %v179_v29 = vld [vmem:[%s6417_s0 + $0x558] sm:$0xff]  ;;  %2730 = vst [vmem:[%s6418_s1 + $0x510] sm:$0xff] %v2218_v22  ;;  %vm688_vm8 = vcmp.ge.f32.partialorder %v176_v20, 0.0 }
  0xc4   :  { %2731 = vst [vmem:[%s6418_s1 + $0x518] sm:$0xff] %v2219_v23  ;;  %v2221_v30 = vmul.f32 1.4142135, %v1709_v27  ;;  %v1199_v31 = vmul.f32 0.2, %v175_v15  ;;  %vm689_vm9 = vcmp.ge.f32.partialorder %v177_v21, 0.0 }
  0xc5   :  { %2732 = vst [vmem:[%s6418_s1 + $0x520] sm:$0xff] %v2220_v26  ;;  %v1710_v32 = vsel %vm686_vm6, %v174_v11, %v1198_v28  ;;  %v1200_v33 = vmul.f32 0.2, %v176_v20  ;;  %v1201_v34 = vmul.f32 0.2, %v177_v21  ;;  %vm690_vm10 = vcmp.ge.f32.partialorder %v178_v25, 0.0 }
  0xc6   :  { %v180_v35 = vld [vmem:[%s6417_s0 + $0x560] sm:$0xff]  ;;  %2733 = vst [vmem:[%s6418_s1 + $0x528] sm:$0xff] %v2221_v30  ;;  %v2222_v36 = vmul.f32 1.4142135, %v1710_v32  ;;  %v1711_v37 = vsel %vm687_vm7, %v175_v15, %v1199_v31  ;;  %v1202_v38 = vmul.f32 0.2, %v178_v25 }
  0xc7   :  { %vm691_vm11 = vcmp.ge.f32.partialorder %v179_v29, 0.0  ;;  %v181_v39 = vld [vmem:[%s6417_s0 + $0x568] sm:$0xff]  ;;  %v2223_v40 = vmul.f32 1.4142135, %v1711_v37  ;;  %v1712_v41 = vsel %vm688_vm8, %v176_v20, %v1200_v33  ;;  %v1713_v42 = vsel %vm689_vm9, %v177_v21, %v1201_v34  ;;  %v182_v44 = vld [vmem:[%s6417_s0 + $0x570] sm:$0xff]  ;;  %v183_v45 = vld [vmem:[%s6417_s0 + $0x578] sm:$0xff] }
  0xc8   :  { %v1203_v43 = vmul.f32 0.2, %v179_v29  ;;  %2734 = vst [vmem:[%s6418_s1 + $0x530] sm:$0xff] %v2222_v36  ;;  %v2224_v46 = vmul.f32 1.4142135, %v1712_v41  ;;  %v1714_v48 = vsel %vm690_vm10, %v178_v25, %v1202_v38  ;;  %vm692_vm12 = vcmp.ge.f32.partialorder %v180_v35, 0.0 }
  0xc9   :  { %v2225_v47 = vmul.f32 1.4142135, %v1713_v42  ;;  %v184_v49 = vld [vmem:[%s6417_s0 + $0x580] sm:$0xff]  ;;  %2735 = vst [vmem:[%s6418_s1 + $0x538] sm:$0xff] %v2223_v40  ;;  %v2226_v50 = vmul.f32 1.4142135, %v1714_v48 }
  0xca   :  { %v1715_v51 = vsel %vm691_vm11, %v179_v29, %v1203_v43  ;;  %v1204_v52 = vmul.f32 0.2, %v180_v35  ;;  %vm693_vm13 = vcmp.ge.f32.partialorder %v181_v39, 0.0  ;;  %v185_v53 = vld [vmem:[%s6417_s0 + $0x588] sm:$0xff]  ;;  %2736 = vst [vmem:[%s6418_s1 + $0x540] sm:$0xff] %v2224_v46  ;;  %vm694_vm14 = vcmp.ge.f32.partialorder %v182_v44, 0.0 }
  0xcb   :  { %2737 = vst [vmem:[%s6418_s1 + $0x548] sm:$0xff] %v2225_v47  ;;  %v2227_v54 = vmul.f32 1.4142135, %v1715_v51  ;;  %v1205_v55 = vmul.f32 0.2, %v181_v39  ;;  %vm695_vm15 = vcmp.ge.f32.partialorder %v183_v45, 0.0 }
  0xcc   :  { %2738 = vst [vmem:[%s6418_s1 + $0x550] sm:$0xff] %v2226_v50  ;;  %v1716_v56 = vsel %vm692_vm12, %v180_v35, %v1204_v52  ;;  %v1206_v57 = vmul.f32 0.2, %v182_v44  ;;  %v1207_v58 = vmul.f32 0.2, %v183_v45  ;;  %vm696_vm0 = vcmp.ge.f32.partialorder %v184_v49, 0.0 }
  0xcd   :  { %v186_v59 = vld [vmem:[%s6417_s0 + $0x590] sm:$0xff]  ;;  %2739 = vst [vmem:[%s6418_s1 + $0x558] sm:$0xff] %v2227_v54  ;;  %v2228_v60 = vmul.f32 1.4142135, %v1716_v56  ;;  %v1717_v61 = vsel %vm693_vm13, %v181_v39, %v1205_v55  ;;  %v1208_v62 = vmul.f32 0.2, %v184_v49 }
  0xce   :  { %vm697_vm1 = vcmp.ge.f32.partialorder %v185_v53, 0.0  ;;  %v187_v63 = vld [vmem:[%s6417_s0 + $0x598] sm:$0xff]  ;;  %v2229_v0 = vmul.f32 1.4142135, %v1717_v61  ;;  %v1718_v1 = vsel %vm694_vm14, %v182_v44, %v1206_v57  ;;  %v1719_v2 = vsel %vm695_vm15, %v183_v45, %v1207_v58  ;;  %v188_v4 = vld [vmem:[%s6417_s0 + $0x5a0] sm:$0xff]  ;;  %v189_v5 = vld [vmem:[%s6417_s0 + $0x5a8] sm:$0xff] }
  0xcf   :  { %v1209_v3 = vmul.f32 0.2, %v185_v53  ;;  %2740 = vst [vmem:[%s6418_s1 + $0x560] sm:$0xff] %v2228_v60  ;;  %v2230_v6 = vmul.f32 1.4142135, %v1718_v1  ;;  %v1720_v8 = vsel %vm696_vm0, %v184_v49, %v1208_v62  ;;  %vm698_vm2 = vcmp.ge.f32.partialorder %v186_v59, 0.0 }
  0xd0   :  { %v2231_v7 = vmul.f32 1.4142135, %v1719_v2  ;;  %v190_v9 = vld [vmem:[%s6417_s0 + $0x5b0] sm:$0xff]  ;;  %2741 = vst [vmem:[%s6418_s1 + $0x568] sm:$0xff] %v2229_v0  ;;  %v2232_v10 = vmul.f32 1.4142135, %v1720_v8 }
  0xd1   :  { %v1721_v11 = vsel %vm697_vm1, %v185_v53, %v1209_v3  ;;  %v1210_v12 = vmul.f32 0.2, %v186_v59  ;;  %vm699_vm3 = vcmp.ge.f32.partialorder %v187_v63, 0.0  ;;  %v191_v13 = vld [vmem:[%s6417_s0 + $0x5b8] sm:$0xff]  ;;  %2742 = vst [vmem:[%s6418_s1 + $0x570] sm:$0xff] %v2230_v6  ;;  %vm700_vm4 = vcmp.ge.f32.partialorder %v188_v4, 0.0 }
  0xd2   :  { %2743 = vst [vmem:[%s6418_s1 + $0x578] sm:$0xff] %v2231_v7  ;;  %v2233_v14 = vmul.f32 1.4142135, %v1721_v11  ;;  %v1211_v15 = vmul.f32 0.2, %v187_v63  ;;  %vm701_vm5 = vcmp.ge.f32.partialorder %v189_v5, 0.0 }
  0xd3   :  { %2744 = vst [vmem:[%s6418_s1 + $0x580] sm:$0xff] %v2232_v10  ;;  %v1722_v16 = vsel %vm698_vm2, %v186_v59, %v1210_v12  ;;  %v1212_v17 = vmul.f32 0.2, %v188_v4  ;;  %v1213_v18 = vmul.f32 0.2, %v189_v5  ;;  %vm702_vm6 = vcmp.ge.f32.partialorder %v190_v9, 0.0 }
  0xd4   :  { %v192_v19 = vld [vmem:[%s6417_s0 + $0x5c0] sm:$0xff]  ;;  %2745 = vst [vmem:[%s6418_s1 + $0x588] sm:$0xff] %v2233_v14  ;;  %v2234_v20 = vmul.f32 1.4142135, %v1722_v16  ;;  %v1723_v21 = vsel %vm699_vm3, %v187_v63, %v1211_v15  ;;  %v1214_v22 = vmul.f32 0.2, %v190_v9 }
  0xd5   :  { %vm703_vm7 = vcmp.ge.f32.partialorder %v191_v13, 0.0  ;;  %v193_v23 = vld [vmem:[%s6417_s0 + $0x5c8] sm:$0xff]  ;;  %v2235_v24 = vmul.f32 1.4142135, %v1723_v21  ;;  %v1724_v25 = vsel %vm700_vm4, %v188_v4, %v1212_v17  ;;  %v1725_v26 = vsel %vm701_vm5, %v189_v5, %v1213_v18  ;;  %v194_v28 = vld [vmem:[%s6417_s0 + $0x5d0] sm:$0xff]  ;;  %v195_v29 = vld [vmem:[%s6417_s0 + $0x5d8] sm:$0xff] }
  0xd6   :  { %v1215_v27 = vmul.f32 0.2, %v191_v13  ;;  %2746 = vst [vmem:[%s6418_s1 + $0x590] sm:$0xff] %v2234_v20  ;;  %v2236_v30 = vmul.f32 1.4142135, %v1724_v25  ;;  %v1726_v32 = vsel %vm702_vm6, %v190_v9, %v1214_v22  ;;  %vm704_vm8 = vcmp.ge.f32.partialorder %v192_v19, 0.0 }
  0xd7   :  { %v2237_v31 = vmul.f32 1.4142135, %v1725_v26  ;;  %v196_v33 = vld [vmem:[%s6417_s0 + $0x5e0] sm:$0xff]  ;;  %2747 = vst [vmem:[%s6418_s1 + $0x598] sm:$0xff] %v2235_v24  ;;  %v2238_v34 = vmul.f32 1.4142135, %v1726_v32 }
  0xd8   :  { %v1727_v35 = vsel %vm703_vm7, %v191_v13, %v1215_v27  ;;  %v1216_v36 = vmul.f32 0.2, %v192_v19  ;;  %vm705_vm9 = vcmp.ge.f32.partialorder %v193_v23, 0.0  ;;  %v197_v37 = vld [vmem:[%s6417_s0 + $0x5e8] sm:$0xff]  ;;  %2748 = vst [vmem:[%s6418_s1 + $0x5a0] sm:$0xff] %v2236_v30  ;;  %vm706_vm10 = vcmp.ge.f32.partialorder %v194_v28, 0.0 }
  0xd9   :  { %2749 = vst [vmem:[%s6418_s1 + $0x5a8] sm:$0xff] %v2237_v31  ;;  %v2239_v38 = vmul.f32 1.4142135, %v1727_v35  ;;  %v1217_v39 = vmul.f32 0.2, %v193_v23  ;;  %vm707_vm11 = vcmp.ge.f32.partialorder %v195_v29, 0.0 }
  0xda   :  { %2750 = vst [vmem:[%s6418_s1 + $0x5b0] sm:$0xff] %v2238_v34  ;;  %v1728_v40 = vsel %vm704_vm8, %v192_v19, %v1216_v36  ;;  %v1218_v41 = vmul.f32 0.2, %v194_v28  ;;  %v1219_v42 = vmul.f32 0.2, %v195_v29  ;;  %vm708_vm12 = vcmp.ge.f32.partialorder %v196_v33, 0.0 }
  0xdb   :  { %v198_v43 = vld [vmem:[%s6417_s0 + $0x5f0] sm:$0xff]  ;;  %2751 = vst [vmem:[%s6418_s1 + $0x5b8] sm:$0xff] %v2239_v38  ;;  %v2240_v44 = vmul.f32 1.4142135, %v1728_v40  ;;  %v1729_v45 = vsel %vm705_vm9, %v193_v23, %v1217_v39  ;;  %v1220_v46 = vmul.f32 0.2, %v196_v33 }
  0xdc   :  { %vm709_vm13 = vcmp.ge.f32.partialorder %v197_v37, 0.0  ;;  %v199_v47 = vld [vmem:[%s6417_s0 + $0x5f8] sm:$0xff]  ;;  %v2241_v48 = vmul.f32 1.4142135, %v1729_v45  ;;  %v1730_v49 = vsel %vm706_vm10, %v194_v28, %v1218_v41  ;;  %v1731_v50 = vsel %vm707_vm11, %v195_v29, %v1219_v42  ;;  %v200_v52 = vld [vmem:[%s6417_s0 + $0x600] sm:$0xff]  ;;  %v201_v53 = vld [vmem:[%s6417_s0 + $0x608] sm:$0xff] }
  0xdd   :  { %v1221_v51 = vmul.f32 0.2, %v197_v37  ;;  %2752 = vst [vmem:[%s6418_s1 + $0x5c0] sm:$0xff] %v2240_v44  ;;  %v2242_v54 = vmul.f32 1.4142135, %v1730_v49  ;;  %v1732_v56 = vsel %vm708_vm12, %v196_v33, %v1220_v46  ;;  %vm710_vm14 = vcmp.ge.f32.partialorder %v198_v43, 0.0 }
  0xde   :  { %v2243_v55 = vmul.f32 1.4142135, %v1731_v50  ;;  %v202_v57 = vld [vmem:[%s6417_s0 + $0x610] sm:$0xff]  ;;  %2753 = vst [vmem:[%s6418_s1 + $0x5c8] sm:$0xff] %v2241_v48  ;;  %v2244_v58 = vmul.f32 1.4142135, %v1732_v56 }
  0xdf   :  { %v1733_v59 = vsel %vm709_vm13, %v197_v37, %v1221_v51  ;;  %v1222_v60 = vmul.f32 0.2, %v198_v43  ;;  %vm711_vm15 = vcmp.ge.f32.partialorder %v199_v47, 0.0  ;;  %v203_v61 = vld [vmem:[%s6417_s0 + $0x618] sm:$0xff]  ;;  %2754 = vst [vmem:[%s6418_s1 + $0x5d0] sm:$0xff] %v2242_v54  ;;  %vm712_vm0 = vcmp.ge.f32.partialorder %v200_v52, 0.0 }
  0xe0   :  { %2755 = vst [vmem:[%s6418_s1 + $0x5d8] sm:$0xff] %v2243_v55  ;;  %v2245_v62 = vmul.f32 1.4142135, %v1733_v59  ;;  %v1223_v63 = vmul.f32 0.2, %v199_v47  ;;  %vm713_vm1 = vcmp.ge.f32.partialorder %v201_v53, 0.0 }
  0xe1   :  { %2756 = vst [vmem:[%s6418_s1 + $0x5e0] sm:$0xff] %v2244_v58  ;;  %v1734_v0 = vsel %vm710_vm14, %v198_v43, %v1222_v60  ;;  %v1224_v1 = vmul.f32 0.2, %v200_v52  ;;  %v1225_v2 = vmul.f32 0.2, %v201_v53  ;;  %vm714_vm2 = vcmp.ge.f32.partialorder %v202_v57, 0.0 }
  0xe2   :  { %v204_v3 = vld [vmem:[%s6417_s0 + $0x620] sm:$0xff]  ;;  %2757 = vst [vmem:[%s6418_s1 + $0x5e8] sm:$0xff] %v2245_v62  ;;  %v2246_v4 = vmul.f32 1.4142135, %v1734_v0  ;;  %v1735_v5 = vsel %vm711_vm15, %v199_v47, %v1223_v63  ;;  %v1226_v6 = vmul.f32 0.2, %v202_v57 }
  0xe3   :  { %vm715_vm3 = vcmp.ge.f32.partialorder %v203_v61, 0.0  ;;  %v205_v7 = vld [vmem:[%s6417_s0 + $0x628] sm:$0xff]  ;;  %v2247_v8 = vmul.f32 1.4142135, %v1735_v5  ;;  %v1736_v9 = vsel %vm712_vm0, %v200_v52, %v1224_v1  ;;  %v1737_v10 = vsel %vm713_vm1, %v201_v53, %v1225_v2  ;;  %v206_v12 = vld [vmem:[%s6417_s0 + $0x630] sm:$0xff]  ;;  %v207_v13 = vld [vmem:[%s6417_s0 + $0x638] sm:$0xff] }
  0xe4   :  { %v1227_v11 = vmul.f32 0.2, %v203_v61  ;;  %2758 = vst [vmem:[%s6418_s1 + $0x5f0] sm:$0xff] %v2246_v4  ;;  %v2248_v14 = vmul.f32 1.4142135, %v1736_v9  ;;  %v1738_v16 = vsel %vm714_vm2, %v202_v57, %v1226_v6  ;;  %vm716_vm4 = vcmp.ge.f32.partialorder %v204_v3, 0.0 }
  0xe5   :  { %v2249_v15 = vmul.f32 1.4142135, %v1737_v10  ;;  %v208_v17 = vld [vmem:[%s6417_s0 + $0x640] sm:$0xff]  ;;  %2759 = vst [vmem:[%s6418_s1 + $0x5f8] sm:$0xff] %v2247_v8  ;;  %v2250_v18 = vmul.f32 1.4142135, %v1738_v16 }
  0xe6   :  { %v1739_v19 = vsel %vm715_vm3, %v203_v61, %v1227_v11  ;;  %v1228_v20 = vmul.f32 0.2, %v204_v3  ;;  %vm717_vm5 = vcmp.ge.f32.partialorder %v205_v7, 0.0  ;;  %v209_v21 = vld [vmem:[%s6417_s0 + $0x648] sm:$0xff]  ;;  %2760 = vst [vmem:[%s6418_s1 + $0x600] sm:$0xff] %v2248_v14  ;;  %vm718_vm6 = vcmp.ge.f32.partialorder %v206_v12, 0.0 }
  0xe7   :  { %2761 = vst [vmem:[%s6418_s1 + $0x608] sm:$0xff] %v2249_v15  ;;  %v2251_v22 = vmul.f32 1.4142135, %v1739_v19  ;;  %v1229_v23 = vmul.f32 0.2, %v205_v7  ;;  %vm719_vm7 = vcmp.ge.f32.partialorder %v207_v13, 0.0 }
  0xe8   :  { %2762 = vst [vmem:[%s6418_s1 + $0x610] sm:$0xff] %v2250_v18  ;;  %v1740_v24 = vsel %vm716_vm4, %v204_v3, %v1228_v20  ;;  %v1230_v25 = vmul.f32 0.2, %v206_v12  ;;  %v1231_v26 = vmul.f32 0.2, %v207_v13  ;;  %vm720_vm8 = vcmp.ge.f32.partialorder %v208_v17, 0.0 }
  0xe9   :  { %v210_v27 = vld [vmem:[%s6417_s0 + $0x650] sm:$0xff]  ;;  %2763 = vst [vmem:[%s6418_s1 + $0x618] sm:$0xff] %v2251_v22  ;;  %v2252_v28 = vmul.f32 1.4142135, %v1740_v24  ;;  %v1741_v29 = vsel %vm717_vm5, %v205_v7, %v1229_v23  ;;  %v1232_v30 = vmul.f32 0.2, %v208_v17 }
  0xea   :  { %vm721_vm9 = vcmp.ge.f32.partialorder %v209_v21, 0.0  ;;  %v211_v31 = vld [vmem:[%s6417_s0 + $0x658] sm:$0xff]  ;;  %v2253_v32 = vmul.f32 1.4142135, %v1741_v29  ;;  %v1742_v33 = vsel %vm718_vm6, %v206_v12, %v1230_v25  ;;  %v1743_v34 = vsel %vm719_vm7, %v207_v13, %v1231_v26  ;;  %v212_v36 = vld [vmem:[%s6417_s0 + $0x660] sm:$0xff]  ;;  %v213_v37 = vld [vmem:[%s6417_s0 + $0x668] sm:$0xff] }
  0xeb   :  { %v1233_v35 = vmul.f32 0.2, %v209_v21  ;;  %2764 = vst [vmem:[%s6418_s1 + $0x620] sm:$0xff] %v2252_v28  ;;  %v2254_v38 = vmul.f32 1.4142135, %v1742_v33  ;;  %v1744_v40 = vsel %vm720_vm8, %v208_v17, %v1232_v30  ;;  %vm722_vm10 = vcmp.ge.f32.partialorder %v210_v27, 0.0 }
  0xec   :  { %v2255_v39 = vmul.f32 1.4142135, %v1743_v34  ;;  %v214_v41 = vld [vmem:[%s6417_s0 + $0x670] sm:$0xff]  ;;  %2765 = vst [vmem:[%s6418_s1 + $0x628] sm:$0xff] %v2253_v32  ;;  %v2256_v42 = vmul.f32 1.4142135, %v1744_v40 }
  0xed   :  { %v1745_v43 = vsel %vm721_vm9, %v209_v21, %v1233_v35  ;;  %v1234_v44 = vmul.f32 0.2, %v210_v27  ;;  %vm723_vm11 = vcmp.ge.f32.partialorder %v211_v31, 0.0  ;;  %v215_v45 = vld [vmem:[%s6417_s0 + $0x678] sm:$0xff]  ;;  %2766 = vst [vmem:[%s6418_s1 + $0x630] sm:$0xff] %v2254_v38  ;;  %vm724_vm12 = vcmp.ge.f32.partialorder %v212_v36, 0.0 }
  0xee   :  { %2767 = vst [vmem:[%s6418_s1 + $0x638] sm:$0xff] %v2255_v39  ;;  %v2257_v46 = vmul.f32 1.4142135, %v1745_v43  ;;  %v1235_v47 = vmul.f32 0.2, %v211_v31  ;;  %vm725_vm13 = vcmp.ge.f32.partialorder %v213_v37, 0.0 }
  0xef   :  { %2768 = vst [vmem:[%s6418_s1 + $0x640] sm:$0xff] %v2256_v42  ;;  %v1746_v48 = vsel %vm722_vm10, %v210_v27, %v1234_v44  ;;  %v1236_v49 = vmul.f32 0.2, %v212_v36  ;;  %v1237_v50 = vmul.f32 0.2, %v213_v37  ;;  %vm726_vm14 = vcmp.ge.f32.partialorder %v214_v41, 0.0 }
  0xf0   :  { %v216_v51 = vld [vmem:[%s6417_s0 + $0x680] sm:$0xff]  ;;  %2769 = vst [vmem:[%s6418_s1 + $0x648] sm:$0xff] %v2257_v46  ;;  %v2258_v52 = vmul.f32 1.4142135, %v1746_v48  ;;  %v1747_v53 = vsel %vm723_vm11, %v211_v31, %v1235_v47  ;;  %v1238_v54 = vmul.f32 0.2, %v214_v41 }
  0xf1   :  { %vm727_vm15 = vcmp.ge.f32.partialorder %v215_v45, 0.0  ;;  %v217_v55 = vld [vmem:[%s6417_s0 + $0x688] sm:$0xff]  ;;  %v2259_v56 = vmul.f32 1.4142135, %v1747_v53  ;;  %v1748_v57 = vsel %vm724_vm12, %v212_v36, %v1236_v49  ;;  %v1749_v58 = vsel %vm725_vm13, %v213_v37, %v1237_v50  ;;  %v218_v60 = vld [vmem:[%s6417_s0 + $0x690] sm:$0xff]  ;;  %v219_v61 = vld [vmem:[%s6417_s0 + $0x698] sm:$0xff] }
  0xf2   :  { %v1239_v59 = vmul.f32 0.2, %v215_v45  ;;  %2770 = vst [vmem:[%s6418_s1 + $0x650] sm:$0xff] %v2258_v52  ;;  %v2260_v62 = vmul.f32 1.4142135, %v1748_v57  ;;  %v1750_v0 = vsel %vm726_vm14, %v214_v41, %v1238_v54  ;;  %vm728_vm0 = vcmp.ge.f32.partialorder %v216_v51, 0.0 }
  0xf3   :  { %v2261_v63 = vmul.f32 1.4142135, %v1749_v58  ;;  %v220_v1 = vld [vmem:[%s6417_s0 + $0x6a0] sm:$0xff]  ;;  %2771 = vst [vmem:[%s6418_s1 + $0x658] sm:$0xff] %v2259_v56  ;;  %v2262_v2 = vmul.f32 1.4142135, %v1750_v0 }
  0xf4   :  { %v1751_v3 = vsel %vm727_vm15, %v215_v45, %v1239_v59  ;;  %v1240_v4 = vmul.f32 0.2, %v216_v51  ;;  %vm729_vm1 = vcmp.ge.f32.partialorder %v217_v55, 0.0  ;;  %v221_v5 = vld [vmem:[%s6417_s0 + $0x6a8] sm:$0xff]  ;;  %2772 = vst [vmem:[%s6418_s1 + $0x660] sm:$0xff] %v2260_v62  ;;  %vm730_vm2 = vcmp.ge.f32.partialorder %v218_v60, 0.0 }
  0xf5   :  { %2773 = vst [vmem:[%s6418_s1 + $0x668] sm:$0xff] %v2261_v63  ;;  %v2263_v6 = vmul.f32 1.4142135, %v1751_v3  ;;  %v1241_v7 = vmul.f32 0.2, %v217_v55  ;;  %vm731_vm3 = vcmp.ge.f32.partialorder %v219_v61, 0.0 }
  0xf6   :  { %2774 = vst [vmem:[%s6418_s1 + $0x670] sm:$0xff] %v2262_v2  ;;  %v1752_v8 = vsel %vm728_vm0, %v216_v51, %v1240_v4  ;;  %v1242_v9 = vmul.f32 0.2, %v218_v60  ;;  %v1243_v10 = vmul.f32 0.2, %v219_v61  ;;  %vm732_vm4 = vcmp.ge.f32.partialorder %v220_v1, 0.0 }
  0xf7   :  { %v222_v11 = vld [vmem:[%s6417_s0 + $0x6b0] sm:$0xff]  ;;  %2775 = vst [vmem:[%s6418_s1 + $0x678] sm:$0xff] %v2263_v6  ;;  %v2264_v12 = vmul.f32 1.4142135, %v1752_v8  ;;  %v1753_v13 = vsel %vm729_vm1, %v217_v55, %v1241_v7  ;;  %v1244_v14 = vmul.f32 0.2, %v220_v1 }
  0xf8   :  { %vm733_vm5 = vcmp.ge.f32.partialorder %v221_v5, 0.0  ;;  %v223_v15 = vld [vmem:[%s6417_s0 + $0x6b8] sm:$0xff]  ;;  %v2265_v16 = vmul.f32 1.4142135, %v1753_v13  ;;  %v1754_v17 = vsel %vm730_vm2, %v218_v60, %v1242_v9  ;;  %v1755_v18 = vsel %vm731_vm3, %v219_v61, %v1243_v10  ;;  %v224_v20 = vld [vmem:[%s6417_s0 + $0x6c0] sm:$0xff]  ;;  %v225_v21 = vld [vmem:[%s6417_s0 + $0x6c8] sm:$0xff] }
  0xf9   :  { %v1245_v19 = vmul.f32 0.2, %v221_v5  ;;  %2776 = vst [vmem:[%s6418_s1 + $0x680] sm:$0xff] %v2264_v12  ;;  %v2266_v22 = vmul.f32 1.4142135, %v1754_v17  ;;  %v1756_v24 = vsel %vm732_vm4, %v220_v1, %v1244_v14  ;;  %vm734_vm6 = vcmp.ge.f32.partialorder %v222_v11, 0.0 }
  0xfa   :  { %v2267_v23 = vmul.f32 1.4142135, %v1755_v18  ;;  %v226_v25 = vld [vmem:[%s6417_s0 + $0x6d0] sm:$0xff]  ;;  %2777 = vst [vmem:[%s6418_s1 + $0x688] sm:$0xff] %v2265_v16  ;;  %v2268_v26 = vmul.f32 1.4142135, %v1756_v24 }
  0xfb   :  { %v1757_v27 = vsel %vm733_vm5, %v221_v5, %v1245_v19  ;;  %v1246_v28 = vmul.f32 0.2, %v222_v11  ;;  %vm735_vm7 = vcmp.ge.f32.partialorder %v223_v15, 0.0  ;;  %v227_v29 = vld [vmem:[%s6417_s0 + $0x6d8] sm:$0xff]  ;;  %2778 = vst [vmem:[%s6418_s1 + $0x690] sm:$0xff] %v2266_v22  ;;  %vm736_vm8 = vcmp.ge.f32.partialorder %v224_v20, 0.0 }
  0xfc   :  { %2779 = vst [vmem:[%s6418_s1 + $0x698] sm:$0xff] %v2267_v23  ;;  %v2269_v30 = vmul.f32 1.4142135, %v1757_v27  ;;  %v1247_v31 = vmul.f32 0.2, %v223_v15  ;;  %vm737_vm9 = vcmp.ge.f32.partialorder %v225_v21, 0.0 }
  0xfd   :  { %2780 = vst [vmem:[%s6418_s1 + $0x6a0] sm:$0xff] %v2268_v26  ;;  %v1758_v32 = vsel %vm734_vm6, %v222_v11, %v1246_v28  ;;  %v1248_v33 = vmul.f32 0.2, %v224_v20  ;;  %v1249_v34 = vmul.f32 0.2, %v225_v21  ;;  %vm738_vm10 = vcmp.ge.f32.partialorder %v226_v25, 0.0 }
  0xfe   :  { %v228_v35 = vld [vmem:[%s6417_s0 + $0x6e0] sm:$0xff]  ;;  %2781 = vst [vmem:[%s6418_s1 + $0x6a8] sm:$0xff] %v2269_v30  ;;  %v2270_v36 = vmul.f32 1.4142135, %v1758_v32  ;;  %v1759_v37 = vsel %vm735_vm7, %v223_v15, %v1247_v31  ;;  %v1250_v38 = vmul.f32 0.2, %v226_v25 }
  0xff   :  { %vm739_vm11 = vcmp.ge.f32.partialorder %v227_v29, 0.0  ;;  %v229_v39 = vld [vmem:[%s6417_s0 + $0x6e8] sm:$0xff]  ;;  %v2271_v40 = vmul.f32 1.4142135, %v1759_v37  ;;  %v1760_v41 = vsel %vm736_vm8, %v224_v20, %v1248_v33  ;;  %v1761_v42 = vsel %vm737_vm9, %v225_v21, %v1249_v34  ;;  %v230_v44 = vld [vmem:[%s6417_s0 + $0x6f0] sm:$0xff]  ;;  %v231_v45 = vld [vmem:[%s6417_s0 + $0x6f8] sm:$0xff] }
 0x100   :  { %v1251_v43 = vmul.f32 0.2, %v227_v29  ;;  %2782 = vst [vmem:[%s6418_s1 + $0x6b0] sm:$0xff] %v2270_v36  ;;  %v2272_v46 = vmul.f32 1.4142135, %v1760_v41  ;;  %v1762_v48 = vsel %vm738_vm10, %v226_v25, %v1250_v38  ;;  %vm740_vm12 = vcmp.ge.f32.partialorder %v228_v35, 0.0 }
 0x101   :  { %v2273_v47 = vmul.f32 1.4142135, %v1761_v42  ;;  %v232_v49 = vld [vmem:[%s6417_s0 + $0x700] sm:$0xff]  ;;  %2783 = vst [vmem:[%s6418_s1 + $0x6b8] sm:$0xff] %v2271_v40  ;;  %v2274_v50 = vmul.f32 1.4142135, %v1762_v48 }
 0x102   :  { %v1763_v51 = vsel %vm739_vm11, %v227_v29, %v1251_v43  ;;  %v1252_v52 = vmul.f32 0.2, %v228_v35  ;;  %vm741_vm13 = vcmp.ge.f32.partialorder %v229_v39, 0.0  ;;  %v233_v53 = vld [vmem:[%s6417_s0 + $0x708] sm:$0xff]  ;;  %2784 = vst [vmem:[%s6418_s1 + $0x6c0] sm:$0xff] %v2272_v46  ;;  %vm742_vm14 = vcmp.ge.f32.partialorder %v230_v44, 0.0 }
 0x103   :  { %2785 = vst [vmem:[%s6418_s1 + $0x6c8] sm:$0xff] %v2273_v47  ;;  %v2275_v54 = vmul.f32 1.4142135, %v1763_v51  ;;  %v1253_v55 = vmul.f32 0.2, %v229_v39  ;;  %vm743_vm15 = vcmp.ge.f32.partialorder %v231_v45, 0.0 }
 0x104   :  { %2786 = vst [vmem:[%s6418_s1 + $0x6d0] sm:$0xff] %v2274_v50  ;;  %v1764_v56 = vsel %vm740_vm12, %v228_v35, %v1252_v52  ;;  %v1254_v57 = vmul.f32 0.2, %v230_v44  ;;  %v1255_v58 = vmul.f32 0.2, %v231_v45  ;;  %vm744_vm0 = vcmp.ge.f32.partialorder %v232_v49, 0.0 }
 0x105   :  { %v234_v59 = vld [vmem:[%s6417_s0 + $0x710] sm:$0xff]  ;;  %2787 = vst [vmem:[%s6418_s1 + $0x6d8] sm:$0xff] %v2275_v54  ;;  %v2276_v60 = vmul.f32 1.4142135, %v1764_v56  ;;  %v1765_v61 = vsel %vm741_vm13, %v229_v39, %v1253_v55  ;;  %v1256_v62 = vmul.f32 0.2, %v232_v49 }
 0x106   :  { %vm745_vm1 = vcmp.ge.f32.partialorder %v233_v53, 0.0  ;;  %v235_v63 = vld [vmem:[%s6417_s0 + $0x718] sm:$0xff]  ;;  %v2277_v0 = vmul.f32 1.4142135, %v1765_v61  ;;  %v1766_v1 = vsel %vm742_vm14, %v230_v44, %v1254_v57  ;;  %v1767_v2 = vsel %vm743_vm15, %v231_v45, %v1255_v58  ;;  %v236_v4 = vld [vmem:[%s6417_s0 + $0x720] sm:$0xff]  ;;  %v237_v5 = vld [vmem:[%s6417_s0 + $0x728] sm:$0xff] }
 0x107   :  { %v1257_v3 = vmul.f32 0.2, %v233_v53  ;;  %2788 = vst [vmem:[%s6418_s1 + $0x6e0] sm:$0xff] %v2276_v60  ;;  %v2278_v6 = vmul.f32 1.4142135, %v1766_v1  ;;  %v1768_v8 = vsel %vm744_vm0, %v232_v49, %v1256_v62  ;;  %vm746_vm2 = vcmp.ge.f32.partialorder %v234_v59, 0.0 }
 0x108   :  { %v2279_v7 = vmul.f32 1.4142135, %v1767_v2  ;;  %v238_v9 = vld [vmem:[%s6417_s0 + $0x730] sm:$0xff]  ;;  %2789 = vst [vmem:[%s6418_s1 + $0x6e8] sm:$0xff] %v2277_v0  ;;  %v2280_v10 = vmul.f32 1.4142135, %v1768_v8 }
 0x109   :  { %v1769_v11 = vsel %vm745_vm1, %v233_v53, %v1257_v3  ;;  %v1258_v12 = vmul.f32 0.2, %v234_v59  ;;  %vm747_vm3 = vcmp.ge.f32.partialorder %v235_v63, 0.0  ;;  %v239_v13 = vld [vmem:[%s6417_s0 + $0x738] sm:$0xff]  ;;  %2790 = vst [vmem:[%s6418_s1 + $0x6f0] sm:$0xff] %v2278_v6  ;;  %vm748_vm4 = vcmp.ge.f32.partialorder %v236_v4, 0.0 }
 0x10a   :  { %2791 = vst [vmem:[%s6418_s1 + $0x6f8] sm:$0xff] %v2279_v7  ;;  %v2281_v14 = vmul.f32 1.4142135, %v1769_v11  ;;  %v1259_v15 = vmul.f32 0.2, %v235_v63  ;;  %vm749_vm5 = vcmp.ge.f32.partialorder %v237_v5, 0.0 }
 0x10b   :  { %2792 = vst [vmem:[%s6418_s1 + $0x700] sm:$0xff] %v2280_v10  ;;  %v1770_v16 = vsel %vm746_vm2, %v234_v59, %v1258_v12  ;;  %v1260_v17 = vmul.f32 0.2, %v236_v4  ;;  %v1261_v18 = vmul.f32 0.2, %v237_v5  ;;  %vm750_vm6 = vcmp.ge.f32.partialorder %v238_v9, 0.0 }
 0x10c   :  { %v240_v19 = vld [vmem:[%s6417_s0 + $0x740] sm:$0xff]  ;;  %2793 = vst [vmem:[%s6418_s1 + $0x708] sm:$0xff] %v2281_v14  ;;  %v2282_v20 = vmul.f32 1.4142135, %v1770_v16  ;;  %v1771_v21 = vsel %vm747_vm3, %v235_v63, %v1259_v15  ;;  %v1262_v22 = vmul.f32 0.2, %v238_v9 }
 0x10d   :  { %vm751_vm7 = vcmp.ge.f32.partialorder %v239_v13, 0.0  ;;  %v241_v23 = vld [vmem:[%s6417_s0 + $0x748] sm:$0xff]  ;;  %v2283_v24 = vmul.f32 1.4142135, %v1771_v21  ;;  %v1772_v25 = vsel %vm748_vm4, %v236_v4, %v1260_v17  ;;  %v1773_v26 = vsel %vm749_vm5, %v237_v5, %v1261_v18  ;;  %v242_v28 = vld [vmem:[%s6417_s0 + $0x750] sm:$0xff]  ;;  %v243_v29 = vld [vmem:[%s6417_s0 + $0x758] sm:$0xff] }
 0x10e   :  { %v1263_v27 = vmul.f32 0.2, %v239_v13  ;;  %2794 = vst [vmem:[%s6418_s1 + $0x710] sm:$0xff] %v2282_v20  ;;  %v2284_v30 = vmul.f32 1.4142135, %v1772_v25  ;;  %v1774_v32 = vsel %vm750_vm6, %v238_v9, %v1262_v22  ;;  %vm752_vm8 = vcmp.ge.f32.partialorder %v240_v19, 0.0 }
 0x10f   :  { %v2285_v31 = vmul.f32 1.4142135, %v1773_v26  ;;  %v244_v33 = vld [vmem:[%s6417_s0 + $0x760] sm:$0xff]  ;;  %2795 = vst [vmem:[%s6418_s1 + $0x718] sm:$0xff] %v2283_v24  ;;  %v2286_v34 = vmul.f32 1.4142135, %v1774_v32 }
 0x110   :  { %v1775_v35 = vsel %vm751_vm7, %v239_v13, %v1263_v27  ;;  %v1264_v36 = vmul.f32 0.2, %v240_v19  ;;  %vm753_vm9 = vcmp.ge.f32.partialorder %v241_v23, 0.0  ;;  %v245_v37 = vld [vmem:[%s6417_s0 + $0x768] sm:$0xff]  ;;  %2796 = vst [vmem:[%s6418_s1 + $0x720] sm:$0xff] %v2284_v30  ;;  %vm754_vm10 = vcmp.ge.f32.partialorder %v242_v28, 0.0 }
 0x111   :  { %2797 = vst [vmem:[%s6418_s1 + $0x728] sm:$0xff] %v2285_v31  ;;  %v2287_v38 = vmul.f32 1.4142135, %v1775_v35  ;;  %v1265_v39 = vmul.f32 0.2, %v241_v23  ;;  %vm755_vm11 = vcmp.ge.f32.partialorder %v243_v29, 0.0 }
 0x112   :  { %2798 = vst [vmem:[%s6418_s1 + $0x730] sm:$0xff] %v2286_v34  ;;  %v1776_v40 = vsel %vm752_vm8, %v240_v19, %v1264_v36  ;;  %v1266_v41 = vmul.f32 0.2, %v242_v28  ;;  %v1267_v42 = vmul.f32 0.2, %v243_v29  ;;  %vm756_vm12 = vcmp.ge.f32.partialorder %v244_v33, 0.0 }
 0x113   :  { %v246_v43 = vld [vmem:[%s6417_s0 + $0x770] sm:$0xff]  ;;  %2799 = vst [vmem:[%s6418_s1 + $0x738] sm:$0xff] %v2287_v38  ;;  %v2288_v44 = vmul.f32 1.4142135, %v1776_v40  ;;  %v1777_v45 = vsel %vm753_vm9, %v241_v23, %v1265_v39  ;;  %v1268_v46 = vmul.f32 0.2, %v244_v33 }
 0x114   :  { %vm757_vm13 = vcmp.ge.f32.partialorder %v245_v37, 0.0  ;;  %v247_v47 = vld [vmem:[%s6417_s0 + $0x778] sm:$0xff]  ;;  %v2289_v48 = vmul.f32 1.4142135, %v1777_v45  ;;  %v1778_v49 = vsel %vm754_vm10, %v242_v28, %v1266_v41  ;;  %v1779_v50 = vsel %vm755_vm11, %v243_v29, %v1267_v42  ;;  %v248_v52 = vld [vmem:[%s6417_s0 + $0x780] sm:$0xff]  ;;  %v249_v53 = vld [vmem:[%s6417_s0 + $0x788] sm:$0xff] }
 0x115   :  { %v1269_v51 = vmul.f32 0.2, %v245_v37  ;;  %2800 = vst [vmem:[%s6418_s1 + $0x740] sm:$0xff] %v2288_v44  ;;  %v2290_v54 = vmul.f32 1.4142135, %v1778_v49  ;;  %v1780_v56 = vsel %vm756_vm12, %v244_v33, %v1268_v46  ;;  %vm758_vm14 = vcmp.ge.f32.partialorder %v246_v43, 0.0 }
 0x116   :  { %v2291_v55 = vmul.f32 1.4142135, %v1779_v50  ;;  %v250_v57 = vld [vmem:[%s6417_s0 + $0x790] sm:$0xff]  ;;  %2801 = vst [vmem:[%s6418_s1 + $0x748] sm:$0xff] %v2289_v48  ;;  %v2292_v58 = vmul.f32 1.4142135, %v1780_v56 }
 0x117   :  { %v1781_v59 = vsel %vm757_vm13, %v245_v37, %v1269_v51  ;;  %v1270_v60 = vmul.f32 0.2, %v246_v43  ;;  %vm759_vm15 = vcmp.ge.f32.partialorder %v247_v47, 0.0  ;;  %v251_v61 = vld [vmem:[%s6417_s0 + $0x798] sm:$0xff]  ;;  %2802 = vst [vmem:[%s6418_s1 + $0x750] sm:$0xff] %v2290_v54  ;;  %vm760_vm0 = vcmp.ge.f32.partialorder %v248_v52, 0.0 }
 0x118   :  { %2803 = vst [vmem:[%s6418_s1 + $0x758] sm:$0xff] %v2291_v55  ;;  %v2293_v62 = vmul.f32 1.4142135, %v1781_v59  ;;  %v1271_v63 = vmul.f32 0.2, %v247_v47  ;;  %vm761_vm1 = vcmp.ge.f32.partialorder %v249_v53, 0.0 }
 0x119   :  { %2804 = vst [vmem:[%s6418_s1 + $0x760] sm:$0xff] %v2292_v58  ;;  %v1782_v0 = vsel %vm758_vm14, %v246_v43, %v1270_v60  ;;  %v1272_v1 = vmul.f32 0.2, %v248_v52  ;;  %v1273_v2 = vmul.f32 0.2, %v249_v53  ;;  %vm762_vm2 = vcmp.ge.f32.partialorder %v250_v57, 0.0 }
 0x11a   :  { %v252_v3 = vld [vmem:[%s6417_s0 + $0x7a0] sm:$0xff]  ;;  %2805 = vst [vmem:[%s6418_s1 + $0x768] sm:$0xff] %v2293_v62  ;;  %v2294_v4 = vmul.f32 1.4142135, %v1782_v0  ;;  %v1783_v5 = vsel %vm759_vm15, %v247_v47, %v1271_v63  ;;  %v1274_v6 = vmul.f32 0.2, %v250_v57 }
 0x11b   :  { %vm763_vm3 = vcmp.ge.f32.partialorder %v251_v61, 0.0  ;;  %v253_v7 = vld [vmem:[%s6417_s0 + $0x7a8] sm:$0xff]  ;;  %v2295_v8 = vmul.f32 1.4142135, %v1783_v5  ;;  %v1784_v9 = vsel %vm760_vm0, %v248_v52, %v1272_v1  ;;  %v1785_v10 = vsel %vm761_vm1, %v249_v53, %v1273_v2  ;;  %v254_v12 = vld [vmem:[%s6417_s0 + $0x7b0] sm:$0xff]  ;;  %v255_v13 = vld [vmem:[%s6417_s0 + $0x7b8] sm:$0xff] }
 0x11c   :  { %v1275_v11 = vmul.f32 0.2, %v251_v61  ;;  %2806 = vst [vmem:[%s6418_s1 + $0x770] sm:$0xff] %v2294_v4  ;;  %v2296_v14 = vmul.f32 1.4142135, %v1784_v9  ;;  %v1786_v16 = vsel %vm762_vm2, %v250_v57, %v1274_v6  ;;  %vm764_vm4 = vcmp.ge.f32.partialorder %v252_v3, 0.0 }
 0x11d   :  { %v2297_v15 = vmul.f32 1.4142135, %v1785_v10  ;;  %v256_v17 = vld [vmem:[%s6417_s0 + $0x7c0] sm:$0xff]  ;;  %2807 = vst [vmem:[%s6418_s1 + $0x778] sm:$0xff] %v2295_v8  ;;  %v2298_v18 = vmul.f32 1.4142135, %v1786_v16 }
 0x11e   :  { %v1787_v19 = vsel %vm763_vm3, %v251_v61, %v1275_v11  ;;  %v1276_v20 = vmul.f32 0.2, %v252_v3  ;;  %vm765_vm5 = vcmp.ge.f32.partialorder %v253_v7, 0.0  ;;  %v257_v21 = vld [vmem:[%s6417_s0 + $0x7c8] sm:$0xff]  ;;  %2808 = vst [vmem:[%s6418_s1 + $0x780] sm:$0xff] %v2296_v14  ;;  %vm766_vm6 = vcmp.ge.f32.partialorder %v254_v12, 0.0 }
 0x11f   :  { %2809 = vst [vmem:[%s6418_s1 + $0x788] sm:$0xff] %v2297_v15  ;;  %v2299_v22 = vmul.f32 1.4142135, %v1787_v19  ;;  %v1277_v23 = vmul.f32 0.2, %v253_v7  ;;  %vm767_vm7 = vcmp.ge.f32.partialorder %v255_v13, 0.0 }
 0x120   :  { %2810 = vst [vmem:[%s6418_s1 + $0x790] sm:$0xff] %v2298_v18  ;;  %v1788_v24 = vsel %vm764_vm4, %v252_v3, %v1276_v20  ;;  %v1278_v25 = vmul.f32 0.2, %v254_v12  ;;  %v1279_v26 = vmul.f32 0.2, %v255_v13  ;;  %vm768_vm8 = vcmp.ge.f32.partialorder %v256_v17, 0.0 }
 0x121   :  { %v258_v27 = vld [vmem:[%s6417_s0 + $0x7d0] sm:$0xff]  ;;  %2811 = vst [vmem:[%s6418_s1 + $0x798] sm:$0xff] %v2299_v22  ;;  %v2300_v28 = vmul.f32 1.4142135, %v1788_v24  ;;  %v1789_v29 = vsel %vm765_vm5, %v253_v7, %v1277_v23  ;;  %v1280_v30 = vmul.f32 0.2, %v256_v17 }
 0x122   :  { %vm769_vm9 = vcmp.ge.f32.partialorder %v257_v21, 0.0  ;;  %v259_v31 = vld [vmem:[%s6417_s0 + $0x7d8] sm:$0xff]  ;;  %v2301_v32 = vmul.f32 1.4142135, %v1789_v29  ;;  %v1790_v33 = vsel %vm766_vm6, %v254_v12, %v1278_v25  ;;  %v1791_v34 = vsel %vm767_vm7, %v255_v13, %v1279_v26  ;;  %v260_v36 = vld [vmem:[%s6417_s0 + $0x7e0] sm:$0xff]  ;;  %v261_v37 = vld [vmem:[%s6417_s0 + $0x7e8] sm:$0xff] }
 0x123   :  { %v1281_v35 = vmul.f32 0.2, %v257_v21  ;;  %2812 = vst [vmem:[%s6418_s1 + $0x7a0] sm:$0xff] %v2300_v28  ;;  %v2302_v38 = vmul.f32 1.4142135, %v1790_v33  ;;  %v1792_v40 = vsel %vm768_vm8, %v256_v17, %v1280_v30  ;;  %vm770_vm10 = vcmp.ge.f32.partialorder %v258_v27, 0.0 }
 0x124   :  { %v2303_v39 = vmul.f32 1.4142135, %v1791_v34  ;;  %v262_v41 = vld [vmem:[%s6417_s0 + $0x7f0] sm:$0xff]  ;;  %2813 = vst [vmem:[%s6418_s1 + $0x7a8] sm:$0xff] %v2301_v32  ;;  %v2304_v42 = vmul.f32 1.4142135, %v1792_v40 }
 0x125   :  { %v1793_v43 = vsel %vm769_vm9, %v257_v21, %v1281_v35  ;;  %v1282_v44 = vmul.f32 0.2, %v258_v27  ;;  %vm771_vm11 = vcmp.ge.f32.partialorder %v259_v31, 0.0  ;;  %v263_v45 = vld [vmem:[%s6417_s0 + $0x7f8] sm:$0xff]  ;;  %2814 = vst [vmem:[%s6418_s1 + $0x7b0] sm:$0xff] %v2302_v38  ;;  %vm772_vm12 = vcmp.ge.f32.partialorder %v260_v36, 0.0 }
 0x126   :  { %2815 = vst [vmem:[%s6418_s1 + $0x7b8] sm:$0xff] %v2303_v39  ;;  %v2305_v46 = vmul.f32 1.4142135, %v1793_v43  ;;  %v1283_v47 = vmul.f32 0.2, %v259_v31  ;;  %vm773_vm13 = vcmp.ge.f32.partialorder %v261_v37, 0.0 }
 0x127   :  { %2816 = vst [vmem:[%s6418_s1 + $0x7c0] sm:$0xff] %v2304_v42  ;;  %v1794_v48 = vsel %vm770_vm10, %v258_v27, %v1282_v44  ;;  %v1284_v49 = vmul.f32 0.2, %v260_v36  ;;  %v1285_v50 = vmul.f32 0.2, %v261_v37  ;;  %vm774_vm14 = vcmp.ge.f32.partialorder %v262_v41, 0.0 }
 0x128   :  { %v264_v51 = vld [vmem:[%s6417_s0 + $0x800] sm:$0xff]  ;;  %2817 = vst [vmem:[%s6418_s1 + $0x7c8] sm:$0xff] %v2305_v46  ;;  %v2306_v52 = vmul.f32 1.4142135, %v1794_v48  ;;  %v1795_v53 = vsel %vm771_vm11, %v259_v31, %v1283_v47  ;;  %v1286_v54 = vmul.f32 0.2, %v262_v41 }
 0x129   :  { %vm775_vm15 = vcmp.ge.f32.partialorder %v263_v45, 0.0  ;;  %v265_v55 = vld [vmem:[%s6417_s0 + $0x808] sm:$0xff]  ;;  %v2307_v56 = vmul.f32 1.4142135, %v1795_v53  ;;  %v1796_v57 = vsel %vm772_vm12, %v260_v36, %v1284_v49  ;;  %v1797_v58 = vsel %vm773_vm13, %v261_v37, %v1285_v50  ;;  %v266_v60 = vld [vmem:[%s6417_s0 + $0x810] sm:$0xff]  ;;  %v267_v61 = vld [vmem:[%s6417_s0 + $0x818] sm:$0xff] }
 0x12a   :  { %v1287_v59 = vmul.f32 0.2, %v263_v45  ;;  %2818 = vst [vmem:[%s6418_s1 + $0x7d0] sm:$0xff] %v2306_v52  ;;  %v2308_v62 = vmul.f32 1.4142135, %v1796_v57  ;;  %v1798_v0 = vsel %vm774_vm14, %v262_v41, %v1286_v54  ;;  %vm776_vm0 = vcmp.ge.f32.partialorder %v264_v51, 0.0 }
 0x12b   :  { %v2309_v63 = vmul.f32 1.4142135, %v1797_v58  ;;  %v268_v1 = vld [vmem:[%s6417_s0 + $0x820] sm:$0xff]  ;;  %2819 = vst [vmem:[%s6418_s1 + $0x7d8] sm:$0xff] %v2307_v56  ;;  %v2310_v2 = vmul.f32 1.4142135, %v1798_v0 }
 0x12c   :  { %v1799_v3 = vsel %vm775_vm15, %v263_v45, %v1287_v59  ;;  %v1288_v4 = vmul.f32 0.2, %v264_v51  ;;  %vm777_vm1 = vcmp.ge.f32.partialorder %v265_v55, 0.0  ;;  %v269_v5 = vld [vmem:[%s6417_s0 + $0x828] sm:$0xff]  ;;  %2820 = vst [vmem:[%s6418_s1 + $0x7e0] sm:$0xff] %v2308_v62  ;;  %vm778_vm2 = vcmp.ge.f32.partialorder %v266_v60, 0.0 }
 0x12d   :  { %2821 = vst [vmem:[%s6418_s1 + $0x7e8] sm:$0xff] %v2309_v63  ;;  %v2311_v6 = vmul.f32 1.4142135, %v1799_v3  ;;  %v1289_v7 = vmul.f32 0.2, %v265_v55  ;;  %vm779_vm3 = vcmp.ge.f32.partialorder %v267_v61, 0.0 }
 0x12e   :  { %2822 = vst [vmem:[%s6418_s1 + $0x7f0] sm:$0xff] %v2310_v2  ;;  %v1800_v8 = vsel %vm776_vm0, %v264_v51, %v1288_v4  ;;  %v1290_v9 = vmul.f32 0.2, %v266_v60  ;;  %v1291_v10 = vmul.f32 0.2, %v267_v61  ;;  %vm780_vm4 = vcmp.ge.f32.partialorder %v268_v1, 0.0 }
 0x12f   :  { %v270_v11 = vld [vmem:[%s6417_s0 + $0x830] sm:$0xff]  ;;  %2823 = vst [vmem:[%s6418_s1 + $0x7f8] sm:$0xff] %v2311_v6  ;;  %v2312_v12 = vmul.f32 1.4142135, %v1800_v8  ;;  %v1801_v13 = vsel %vm777_vm1, %v265_v55, %v1289_v7  ;;  %v1292_v14 = vmul.f32 0.2, %v268_v1 }
 0x130   :  { %vm781_vm5 = vcmp.ge.f32.partialorder %v269_v5, 0.0  ;;  %v271_v15 = vld [vmem:[%s6417_s0 + $0x838] sm:$0xff]  ;;  %v2313_v16 = vmul.f32 1.4142135, %v1801_v13  ;;  %v1802_v17 = vsel %vm778_vm2, %v266_v60, %v1290_v9  ;;  %v1803_v18 = vsel %vm779_vm3, %v267_v61, %v1291_v10  ;;  %v272_v20 = vld [vmem:[%s6417_s0 + $0x840] sm:$0xff]  ;;  %v273_v21 = vld [vmem:[%s6417_s0 + $0x848] sm:$0xff] }
 0x131   :  { %v1293_v19 = vmul.f32 0.2, %v269_v5  ;;  %2824 = vst [vmem:[%s6418_s1 + $0x800] sm:$0xff] %v2312_v12  ;;  %v2314_v22 = vmul.f32 1.4142135, %v1802_v17  ;;  %v1804_v24 = vsel %vm780_vm4, %v268_v1, %v1292_v14  ;;  %vm782_vm6 = vcmp.ge.f32.partialorder %v270_v11, 0.0 }
 0x132   :  { %v2315_v23 = vmul.f32 1.4142135, %v1803_v18  ;;  %v274_v25 = vld [vmem:[%s6417_s0 + $0x850] sm:$0xff]  ;;  %2825 = vst [vmem:[%s6418_s1 + $0x808] sm:$0xff] %v2313_v16  ;;  %v2316_v26 = vmul.f32 1.4142135, %v1804_v24 }
 0x133   :  { %v1805_v27 = vsel %vm781_vm5, %v269_v5, %v1293_v19  ;;  %v1294_v28 = vmul.f32 0.2, %v270_v11  ;;  %vm783_vm7 = vcmp.ge.f32.partialorder %v271_v15, 0.0  ;;  %v275_v29 = vld [vmem:[%s6417_s0 + $0x858] sm:$0xff]  ;;  %2826 = vst [vmem:[%s6418_s1 + $0x810] sm:$0xff] %v2314_v22  ;;  %vm784_vm8 = vcmp.ge.f32.partialorder %v272_v20, 0.0 }
 0x134   :  { %2827 = vst [vmem:[%s6418_s1 + $0x818] sm:$0xff] %v2315_v23  ;;  %v2317_v30 = vmul.f32 1.4142135, %v1805_v27  ;;  %v1295_v31 = vmul.f32 0.2, %v271_v15  ;;  %vm785_vm9 = vcmp.ge.f32.partialorder %v273_v21, 0.0 }
 0x135   :  { %2828 = vst [vmem:[%s6418_s1 + $0x820] sm:$0xff] %v2316_v26  ;;  %v1806_v32 = vsel %vm782_vm6, %v270_v11, %v1294_v28  ;;  %v1296_v33 = vmul.f32 0.2, %v272_v20  ;;  %v1297_v34 = vmul.f32 0.2, %v273_v21  ;;  %vm786_vm10 = vcmp.ge.f32.partialorder %v274_v25, 0.0 }
 0x136   :  { %v276_v35 = vld [vmem:[%s6417_s0 + $0x860] sm:$0xff]  ;;  %2829 = vst [vmem:[%s6418_s1 + $0x828] sm:$0xff] %v2317_v30  ;;  %v2318_v36 = vmul.f32 1.4142135, %v1806_v32  ;;  %v1807_v37 = vsel %vm783_vm7, %v271_v15, %v1295_v31  ;;  %v1298_v38 = vmul.f32 0.2, %v274_v25 }
 0x137   :  { %vm787_vm11 = vcmp.ge.f32.partialorder %v275_v29, 0.0  ;;  %v277_v39 = vld [vmem:[%s6417_s0 + $0x868] sm:$0xff]  ;;  %v2319_v40 = vmul.f32 1.4142135, %v1807_v37  ;;  %v1808_v41 = vsel %vm784_vm8, %v272_v20, %v1296_v33  ;;  %v1809_v42 = vsel %vm785_vm9, %v273_v21, %v1297_v34  ;;  %v278_v44 = vld [vmem:[%s6417_s0 + $0x870] sm:$0xff]  ;;  %v279_v45 = vld [vmem:[%s6417_s0 + $0x878] sm:$0xff] }
 0x138   :  { %v1299_v43 = vmul.f32 0.2, %v275_v29  ;;  %2830 = vst [vmem:[%s6418_s1 + $0x830] sm:$0xff] %v2318_v36  ;;  %v2320_v46 = vmul.f32 1.4142135, %v1808_v41  ;;  %v1810_v48 = vsel %vm786_vm10, %v274_v25, %v1298_v38  ;;  %vm788_vm12 = vcmp.ge.f32.partialorder %v276_v35, 0.0 }
 0x139   :  { %v2321_v47 = vmul.f32 1.4142135, %v1809_v42  ;;  %v280_v49 = vld [vmem:[%s6417_s0 + $0x880] sm:$0xff]  ;;  %2831 = vst [vmem:[%s6418_s1 + $0x838] sm:$0xff] %v2319_v40  ;;  %v2322_v50 = vmul.f32 1.4142135, %v1810_v48 }
 0x13a   :  { %v1811_v51 = vsel %vm787_vm11, %v275_v29, %v1299_v43  ;;  %v1300_v52 = vmul.f32 0.2, %v276_v35  ;;  %vm789_vm13 = vcmp.ge.f32.partialorder %v277_v39, 0.0  ;;  %v281_v53 = vld [vmem:[%s6417_s0 + $0x888] sm:$0xff]  ;;  %2832 = vst [vmem:[%s6418_s1 + $0x840] sm:$0xff] %v2320_v46  ;;  %vm790_vm14 = vcmp.ge.f32.partialorder %v278_v44, 0.0 }
 0x13b   :  { %2833 = vst [vmem:[%s6418_s1 + $0x848] sm:$0xff] %v2321_v47  ;;  %v2323_v54 = vmul.f32 1.4142135, %v1811_v51  ;;  %v1301_v55 = vmul.f32 0.2, %v277_v39  ;;  %vm791_vm15 = vcmp.ge.f32.partialorder %v279_v45, 0.0 }
 0x13c   :  { %2834 = vst [vmem:[%s6418_s1 + $0x850] sm:$0xff] %v2322_v50  ;;  %v1812_v56 = vsel %vm788_vm12, %v276_v35, %v1300_v52  ;;  %v1302_v57 = vmul.f32 0.2, %v278_v44  ;;  %v1303_v58 = vmul.f32 0.2, %v279_v45  ;;  %vm792_vm0 = vcmp.ge.f32.partialorder %v280_v49, 0.0 }
 0x13d   :  { %v282_v59 = vld [vmem:[%s6417_s0 + $0x890] sm:$0xff]  ;;  %2835 = vst [vmem:[%s6418_s1 + $0x858] sm:$0xff] %v2323_v54  ;;  %v2324_v60 = vmul.f32 1.4142135, %v1812_v56  ;;  %v1813_v61 = vsel %vm789_vm13, %v277_v39, %v1301_v55  ;;  %v1304_v62 = vmul.f32 0.2, %v280_v49 }
 0x13e   :  { %vm793_vm1 = vcmp.ge.f32.partialorder %v281_v53, 0.0  ;;  %v283_v63 = vld [vmem:[%s6417_s0 + $0x898] sm:$0xff]  ;;  %v2325_v0 = vmul.f32 1.4142135, %v1813_v61  ;;  %v1814_v1 = vsel %vm790_vm14, %v278_v44, %v1302_v57  ;;  %v1815_v2 = vsel %vm791_vm15, %v279_v45, %v1303_v58  ;;  %v284_v4 = vld [vmem:[%s6417_s0 + $0x8a0] sm:$0xff]  ;;  %v285_v5 = vld [vmem:[%s6417_s0 + $0x8a8] sm:$0xff] }
 0x13f   :  { %v1305_v3 = vmul.f32 0.2, %v281_v53  ;;  %2836 = vst [vmem:[%s6418_s1 + $0x860] sm:$0xff] %v2324_v60  ;;  %v2326_v6 = vmul.f32 1.4142135, %v1814_v1  ;;  %v1816_v8 = vsel %vm792_vm0, %v280_v49, %v1304_v62  ;;  %vm794_vm2 = vcmp.ge.f32.partialorder %v282_v59, 0.0 }
 0x140   :  { %v2327_v7 = vmul.f32 1.4142135, %v1815_v2  ;;  %v286_v9 = vld [vmem:[%s6417_s0 + $0x8b0] sm:$0xff]  ;;  %2837 = vst [vmem:[%s6418_s1 + $0x868] sm:$0xff] %v2325_v0  ;;  %v2328_v10 = vmul.f32 1.4142135, %v1816_v8 }
 0x141   :  { %v1817_v11 = vsel %vm793_vm1, %v281_v53, %v1305_v3  ;;  %v1306_v12 = vmul.f32 0.2, %v282_v59  ;;  %vm795_vm3 = vcmp.ge.f32.partialorder %v283_v63, 0.0  ;;  %v287_v13 = vld [vmem:[%s6417_s0 + $0x8b8] sm:$0xff]  ;;  %2838 = vst [vmem:[%s6418_s1 + $0x870] sm:$0xff] %v2326_v6  ;;  %vm796_vm4 = vcmp.ge.f32.partialorder %v284_v4, 0.0 }
 0x142   :  { %2839 = vst [vmem:[%s6418_s1 + $0x878] sm:$0xff] %v2327_v7  ;;  %v2329_v14 = vmul.f32 1.4142135, %v1817_v11  ;;  %v1307_v15 = vmul.f32 0.2, %v283_v63  ;;  %vm797_vm5 = vcmp.ge.f32.partialorder %v285_v5, 0.0 }
 0x143   :  { %2840 = vst [vmem:[%s6418_s1 + $0x880] sm:$0xff] %v2328_v10  ;;  %v1818_v16 = vsel %vm794_vm2, %v282_v59, %v1306_v12  ;;  %v1308_v17 = vmul.f32 0.2, %v284_v4  ;;  %v1309_v18 = vmul.f32 0.2, %v285_v5  ;;  %vm798_vm6 = vcmp.ge.f32.partialorder %v286_v9, 0.0 }
 0x144   :  { %v288_v19 = vld [vmem:[%s6417_s0 + $0x8c0] sm:$0xff]  ;;  %2841 = vst [vmem:[%s6418_s1 + $0x888] sm:$0xff] %v2329_v14  ;;  %v2330_v20 = vmul.f32 1.4142135, %v1818_v16  ;;  %v1819_v21 = vsel %vm795_vm3, %v283_v63, %v1307_v15  ;;  %v1310_v22 = vmul.f32 0.2, %v286_v9 }
 0x145   :  { %vm799_vm7 = vcmp.ge.f32.partialorder %v287_v13, 0.0  ;;  %v289_v23 = vld [vmem:[%s6417_s0 + $0x8c8] sm:$0xff]  ;;  %v2331_v24 = vmul.f32 1.4142135, %v1819_v21  ;;  %v1820_v25 = vsel %vm796_vm4, %v284_v4, %v1308_v17  ;;  %v1821_v26 = vsel %vm797_vm5, %v285_v5, %v1309_v18  ;;  %v290_v28 = vld [vmem:[%s6417_s0 + $0x8d0] sm:$0xff]  ;;  %v291_v29 = vld [vmem:[%s6417_s0 + $0x8d8] sm:$0xff] }
 0x146   :  { %v1311_v27 = vmul.f32 0.2, %v287_v13  ;;  %2842 = vst [vmem:[%s6418_s1 + $0x890] sm:$0xff] %v2330_v20  ;;  %v2332_v30 = vmul.f32 1.4142135, %v1820_v25  ;;  %v1822_v32 = vsel %vm798_vm6, %v286_v9, %v1310_v22  ;;  %vm800_vm8 = vcmp.ge.f32.partialorder %v288_v19, 0.0 }
 0x147   :  { %v2333_v31 = vmul.f32 1.4142135, %v1821_v26  ;;  %v292_v33 = vld [vmem:[%s6417_s0 + $0x8e0] sm:$0xff]  ;;  %2843 = vst [vmem:[%s6418_s1 + $0x898] sm:$0xff] %v2331_v24  ;;  %v2334_v34 = vmul.f32 1.4142135, %v1822_v32 }
 0x148   :  { %v1823_v35 = vsel %vm799_vm7, %v287_v13, %v1311_v27  ;;  %v1312_v36 = vmul.f32 0.2, %v288_v19  ;;  %vm801_vm9 = vcmp.ge.f32.partialorder %v289_v23, 0.0  ;;  %v293_v37 = vld [vmem:[%s6417_s0 + $0x8e8] sm:$0xff]  ;;  %2844 = vst [vmem:[%s6418_s1 + $0x8a0] sm:$0xff] %v2332_v30  ;;  %vm802_vm10 = vcmp.ge.f32.partialorder %v290_v28, 0.0 }
 0x149   :  { %2845 = vst [vmem:[%s6418_s1 + $0x8a8] sm:$0xff] %v2333_v31  ;;  %v2335_v38 = vmul.f32 1.4142135, %v1823_v35  ;;  %v1313_v39 = vmul.f32 0.2, %v289_v23  ;;  %vm803_vm11 = vcmp.ge.f32.partialorder %v291_v29, 0.0 }
 0x14a   :  { %2846 = vst [vmem:[%s6418_s1 + $0x8b0] sm:$0xff] %v2334_v34  ;;  %v1824_v40 = vsel %vm800_vm8, %v288_v19, %v1312_v36  ;;  %v1314_v41 = vmul.f32 0.2, %v290_v28  ;;  %v1315_v42 = vmul.f32 0.2, %v291_v29  ;;  %vm804_vm12 = vcmp.ge.f32.partialorder %v292_v33, 0.0 }
 0x14b   :  { %v294_v43 = vld [vmem:[%s6417_s0 + $0x8f0] sm:$0xff]  ;;  %2847 = vst [vmem:[%s6418_s1 + $0x8b8] sm:$0xff] %v2335_v38  ;;  %v2336_v44 = vmul.f32 1.4142135, %v1824_v40  ;;  %v1825_v45 = vsel %vm801_vm9, %v289_v23, %v1313_v39  ;;  %v1316_v46 = vmul.f32 0.2, %v292_v33 }
 0x14c   :  { %vm805_vm13 = vcmp.ge.f32.partialorder %v293_v37, 0.0  ;;  %v295_v47 = vld [vmem:[%s6417_s0 + $0x8f8] sm:$0xff]  ;;  %v2337_v48 = vmul.f32 1.4142135, %v1825_v45  ;;  %v1826_v49 = vsel %vm802_vm10, %v290_v28, %v1314_v41  ;;  %v1827_v50 = vsel %vm803_vm11, %v291_v29, %v1315_v42  ;;  %v296_v52 = vld [vmem:[%s6417_s0 + $0x900] sm:$0xff]  ;;  %v297_v53 = vld [vmem:[%s6417_s0 + $0x908] sm:$0xff] }
 0x14d   :  { %v1317_v51 = vmul.f32 0.2, %v293_v37  ;;  %2848 = vst [vmem:[%s6418_s1 + $0x8c0] sm:$0xff] %v2336_v44  ;;  %v2338_v54 = vmul.f32 1.4142135, %v1826_v49  ;;  %v1828_v56 = vsel %vm804_vm12, %v292_v33, %v1316_v46  ;;  %vm806_vm14 = vcmp.ge.f32.partialorder %v294_v43, 0.0 }
 0x14e   :  { %v2339_v55 = vmul.f32 1.4142135, %v1827_v50  ;;  %v298_v57 = vld [vmem:[%s6417_s0 + $0x910] sm:$0xff]  ;;  %2849 = vst [vmem:[%s6418_s1 + $0x8c8] sm:$0xff] %v2337_v48  ;;  %v2340_v58 = vmul.f32 1.4142135, %v1828_v56 }
 0x14f   :  { %v1829_v59 = vsel %vm805_vm13, %v293_v37, %v1317_v51  ;;  %v1318_v60 = vmul.f32 0.2, %v294_v43  ;;  %vm807_vm15 = vcmp.ge.f32.partialorder %v295_v47, 0.0  ;;  %v299_v61 = vld [vmem:[%s6417_s0 + $0x918] sm:$0xff]  ;;  %2850 = vst [vmem:[%s6418_s1 + $0x8d0] sm:$0xff] %v2338_v54  ;;  %vm808_vm0 = vcmp.ge.f32.partialorder %v296_v52, 0.0 }
 0x150   :  { %2851 = vst [vmem:[%s6418_s1 + $0x8d8] sm:$0xff] %v2339_v55  ;;  %v2341_v62 = vmul.f32 1.4142135, %v1829_v59  ;;  %v1319_v63 = vmul.f32 0.2, %v295_v47  ;;  %vm809_vm1 = vcmp.ge.f32.partialorder %v297_v53, 0.0 }
 0x151   :  { %2852 = vst [vmem:[%s6418_s1 + $0x8e0] sm:$0xff] %v2340_v58  ;;  %v1830_v0 = vsel %vm806_vm14, %v294_v43, %v1318_v60  ;;  %v1320_v1 = vmul.f32 0.2, %v296_v52  ;;  %v1321_v2 = vmul.f32 0.2, %v297_v53  ;;  %vm810_vm2 = vcmp.ge.f32.partialorder %v298_v57, 0.0 }
 0x152   :  { %v300_v3 = vld [vmem:[%s6417_s0 + $0x920] sm:$0xff]  ;;  %2853 = vst [vmem:[%s6418_s1 + $0x8e8] sm:$0xff] %v2341_v62  ;;  %v2342_v4 = vmul.f32 1.4142135, %v1830_v0  ;;  %v1831_v5 = vsel %vm807_vm15, %v295_v47, %v1319_v63  ;;  %v1322_v6 = vmul.f32 0.2, %v298_v57 }
 0x153   :  { %vm811_vm3 = vcmp.ge.f32.partialorder %v299_v61, 0.0  ;;  %v301_v7 = vld [vmem:[%s6417_s0 + $0x928] sm:$0xff]  ;;  %v2343_v8 = vmul.f32 1.4142135, %v1831_v5  ;;  %v1832_v9 = vsel %vm808_vm0, %v296_v52, %v1320_v1  ;;  %v1833_v10 = vsel %vm809_vm1, %v297_v53, %v1321_v2  ;;  %v302_v12 = vld [vmem:[%s6417_s0 + $0x930] sm:$0xff]  ;;  %v303_v13 = vld [vmem:[%s6417_s0 + $0x938] sm:$0xff] }
 0x154   :  { %v1323_v11 = vmul.f32 0.2, %v299_v61  ;;  %2854 = vst [vmem:[%s6418_s1 + $0x8f0] sm:$0xff] %v2342_v4  ;;  %v2344_v14 = vmul.f32 1.4142135, %v1832_v9  ;;  %v1834_v16 = vsel %vm810_vm2, %v298_v57, %v1322_v6  ;;  %vm812_vm4 = vcmp.ge.f32.partialorder %v300_v3, 0.0 }
 0x155   :  { %v2345_v15 = vmul.f32 1.4142135, %v1833_v10  ;;  %v304_v17 = vld [vmem:[%s6417_s0 + $0x940] sm:$0xff]  ;;  %2855 = vst [vmem:[%s6418_s1 + $0x8f8] sm:$0xff] %v2343_v8  ;;  %v2346_v18 = vmul.f32 1.4142135, %v1834_v16 }
 0x156   :  { %v1835_v19 = vsel %vm811_vm3, %v299_v61, %v1323_v11  ;;  %v1324_v20 = vmul.f32 0.2, %v300_v3  ;;  %vm813_vm5 = vcmp.ge.f32.partialorder %v301_v7, 0.0  ;;  %v305_v21 = vld [vmem:[%s6417_s0 + $0x948] sm:$0xff]  ;;  %2856 = vst [vmem:[%s6418_s1 + $0x900] sm:$0xff] %v2344_v14  ;;  %vm814_vm6 = vcmp.ge.f32.partialorder %v302_v12, 0.0 }
 0x157   :  { %2857 = vst [vmem:[%s6418_s1 + $0x908] sm:$0xff] %v2345_v15  ;;  %v2347_v22 = vmul.f32 1.4142135, %v1835_v19  ;;  %v1325_v23 = vmul.f32 0.2, %v301_v7  ;;  %vm815_vm7 = vcmp.ge.f32.partialorder %v303_v13, 0.0 }
 0x158   :  { %2858 = vst [vmem:[%s6418_s1 + $0x910] sm:$0xff] %v2346_v18  ;;  %v1836_v24 = vsel %vm812_vm4, %v300_v3, %v1324_v20  ;;  %v1326_v25 = vmul.f32 0.2, %v302_v12  ;;  %v1327_v26 = vmul.f32 0.2, %v303_v13  ;;  %vm816_vm8 = vcmp.ge.f32.partialorder %v304_v17, 0.0 }
 0x159   :  { %v306_v27 = vld [vmem:[%s6417_s0 + $0x950] sm:$0xff]  ;;  %2859 = vst [vmem:[%s6418_s1 + $0x918] sm:$0xff] %v2347_v22  ;;  %v2348_v28 = vmul.f32 1.4142135, %v1836_v24  ;;  %v1837_v29 = vsel %vm813_vm5, %v301_v7, %v1325_v23  ;;  %v1328_v30 = vmul.f32 0.2, %v304_v17 }
 0x15a   :  { %vm817_vm9 = vcmp.ge.f32.partialorder %v305_v21, 0.0  ;;  %v307_v31 = vld [vmem:[%s6417_s0 + $0x958] sm:$0xff]  ;;  %v2349_v32 = vmul.f32 1.4142135, %v1837_v29  ;;  %v1838_v33 = vsel %vm814_vm6, %v302_v12, %v1326_v25  ;;  %v1839_v34 = vsel %vm815_vm7, %v303_v13, %v1327_v26  ;;  %v308_v36 = vld [vmem:[%s6417_s0 + $0x960] sm:$0xff]  ;;  %v309_v37 = vld [vmem:[%s6417_s0 + $0x968] sm:$0xff] }
 0x15b   :  { %v1329_v35 = vmul.f32 0.2, %v305_v21  ;;  %2860 = vst [vmem:[%s6418_s1 + $0x920] sm:$0xff] %v2348_v28  ;;  %v2350_v38 = vmul.f32 1.4142135, %v1838_v33  ;;  %v1840_v40 = vsel %vm816_vm8, %v304_v17, %v1328_v30  ;;  %vm818_vm10 = vcmp.ge.f32.partialorder %v306_v27, 0.0 }
 0x15c   :  { %v2351_v39 = vmul.f32 1.4142135, %v1839_v34  ;;  %v310_v41 = vld [vmem:[%s6417_s0 + $0x970] sm:$0xff]  ;;  %2861 = vst [vmem:[%s6418_s1 + $0x928] sm:$0xff] %v2349_v32  ;;  %v2352_v42 = vmul.f32 1.4142135, %v1840_v40 }
 0x15d   :  { %v1841_v43 = vsel %vm817_vm9, %v305_v21, %v1329_v35  ;;  %v1330_v44 = vmul.f32 0.2, %v306_v27  ;;  %vm819_vm11 = vcmp.ge.f32.partialorder %v307_v31, 0.0  ;;  %v311_v45 = vld [vmem:[%s6417_s0 + $0x978] sm:$0xff]  ;;  %2862 = vst [vmem:[%s6418_s1 + $0x930] sm:$0xff] %v2350_v38  ;;  %vm820_vm12 = vcmp.ge.f32.partialorder %v308_v36, 0.0 }
 0x15e   :  { %2863 = vst [vmem:[%s6418_s1 + $0x938] sm:$0xff] %v2351_v39  ;;  %v2353_v46 = vmul.f32 1.4142135, %v1841_v43  ;;  %v1331_v47 = vmul.f32 0.2, %v307_v31  ;;  %vm821_vm13 = vcmp.ge.f32.partialorder %v309_v37, 0.0 }
 0x15f   :  { %2864 = vst [vmem:[%s6418_s1 + $0x940] sm:$0xff] %v2352_v42  ;;  %v1842_v48 = vsel %vm818_vm10, %v306_v27, %v1330_v44  ;;  %v1332_v49 = vmul.f32 0.2, %v308_v36  ;;  %v1333_v50 = vmul.f32 0.2, %v309_v37  ;;  %vm822_vm14 = vcmp.ge.f32.partialorder %v310_v41, 0.0 }
 0x160   :  { %v312_v51 = vld [vmem:[%s6417_s0 + $0x980] sm:$0xff]  ;;  %2865 = vst [vmem:[%s6418_s1 + $0x948] sm:$0xff] %v2353_v46  ;;  %v2354_v52 = vmul.f32 1.4142135, %v1842_v48  ;;  %v1843_v53 = vsel %vm819_vm11, %v307_v31, %v1331_v47  ;;  %v1334_v54 = vmul.f32 0.2, %v310_v41 }
 0x161   :  { %vm823_vm15 = vcmp.ge.f32.partialorder %v311_v45, 0.0  ;;  %v313_v55 = vld [vmem:[%s6417_s0 + $0x988] sm:$0xff]  ;;  %v2355_v56 = vmul.f32 1.4142135, %v1843_v53  ;;  %v1844_v57 = vsel %vm820_vm12, %v308_v36, %v1332_v49  ;;  %v1845_v58 = vsel %vm821_vm13, %v309_v37, %v1333_v50  ;;  %v314_v60 = vld [vmem:[%s6417_s0 + $0x990] sm:$0xff]  ;;  %v315_v61 = vld [vmem:[%s6417_s0 + $0x998] sm:$0xff] }
 0x162   :  { %v1335_v59 = vmul.f32 0.2, %v311_v45  ;;  %2866 = vst [vmem:[%s6418_s1 + $0x950] sm:$0xff] %v2354_v52  ;;  %v2356_v62 = vmul.f32 1.4142135, %v1844_v57  ;;  %v1846_v0 = vsel %vm822_vm14, %v310_v41, %v1334_v54  ;;  %vm824_vm0 = vcmp.ge.f32.partialorder %v312_v51, 0.0 }
 0x163   :  { %v2357_v63 = vmul.f32 1.4142135, %v1845_v58  ;;  %v316_v1 = vld [vmem:[%s6417_s0 + $0x9a0] sm:$0xff]  ;;  %2867 = vst [vmem:[%s6418_s1 + $0x958] sm:$0xff] %v2355_v56  ;;  %v2358_v2 = vmul.f32 1.4142135, %v1846_v0 }
 0x164   :  { %v1847_v3 = vsel %vm823_vm15, %v311_v45, %v1335_v59  ;;  %v1336_v4 = vmul.f32 0.2, %v312_v51  ;;  %vm825_vm1 = vcmp.ge.f32.partialorder %v313_v55, 0.0  ;;  %v317_v5 = vld [vmem:[%s6417_s0 + $0x9a8] sm:$0xff]  ;;  %2868 = vst [vmem:[%s6418_s1 + $0x960] sm:$0xff] %v2356_v62  ;;  %vm826_vm2 = vcmp.ge.f32.partialorder %v314_v60, 0.0 }
 0x165   :  { %2869 = vst [vmem:[%s6418_s1 + $0x968] sm:$0xff] %v2357_v63  ;;  %v2359_v6 = vmul.f32 1.4142135, %v1847_v3  ;;  %v1337_v7 = vmul.f32 0.2, %v313_v55  ;;  %vm827_vm3 = vcmp.ge.f32.partialorder %v315_v61, 0.0 }
 0x166   :  { %2870 = vst [vmem:[%s6418_s1 + $0x970] sm:$0xff] %v2358_v2  ;;  %v1848_v8 = vsel %vm824_vm0, %v312_v51, %v1336_v4  ;;  %v1338_v9 = vmul.f32 0.2, %v314_v60  ;;  %v1339_v10 = vmul.f32 0.2, %v315_v61  ;;  %vm828_vm4 = vcmp.ge.f32.partialorder %v316_v1, 0.0 }
 0x167   :  { %v318_v11 = vld [vmem:[%s6417_s0 + $0x9b0] sm:$0xff]  ;;  %2871 = vst [vmem:[%s6418_s1 + $0x978] sm:$0xff] %v2359_v6  ;;  %v2360_v12 = vmul.f32 1.4142135, %v1848_v8  ;;  %v1849_v13 = vsel %vm825_vm1, %v313_v55, %v1337_v7  ;;  %v1340_v14 = vmul.f32 0.2, %v316_v1 }
 0x168   :  { %vm829_vm5 = vcmp.ge.f32.partialorder %v317_v5, 0.0  ;;  %v319_v15 = vld [vmem:[%s6417_s0 + $0x9b8] sm:$0xff]  ;;  %v2361_v16 = vmul.f32 1.4142135, %v1849_v13  ;;  %v1850_v17 = vsel %vm826_vm2, %v314_v60, %v1338_v9  ;;  %v1851_v18 = vsel %vm827_vm3, %v315_v61, %v1339_v10  ;;  %v320_v20 = vld [vmem:[%s6417_s0 + $0x9c0] sm:$0xff]  ;;  %v321_v21 = vld [vmem:[%s6417_s0 + $0x9c8] sm:$0xff] }
 0x169   :  { %v1341_v19 = vmul.f32 0.2, %v317_v5  ;;  %2872 = vst [vmem:[%s6418_s1 + $0x980] sm:$0xff] %v2360_v12  ;;  %v2362_v22 = vmul.f32 1.4142135, %v1850_v17  ;;  %v1852_v24 = vsel %vm828_vm4, %v316_v1, %v1340_v14  ;;  %vm830_vm6 = vcmp.ge.f32.partialorder %v318_v11, 0.0 }
 0x16a   :  { %v2363_v23 = vmul.f32 1.4142135, %v1851_v18  ;;  %v322_v25 = vld [vmem:[%s6417_s0 + $0x9d0] sm:$0xff]  ;;  %2873 = vst [vmem:[%s6418_s1 + $0x988] sm:$0xff] %v2361_v16  ;;  %v2364_v26 = vmul.f32 1.4142135, %v1852_v24 }
 0x16b   :  { %v1853_v27 = vsel %vm829_vm5, %v317_v5, %v1341_v19  ;;  %v1342_v28 = vmul.f32 0.2, %v318_v11  ;;  %vm831_vm7 = vcmp.ge.f32.partialorder %v319_v15, 0.0  ;;  %v323_v29 = vld [vmem:[%s6417_s0 + $0x9d8] sm:$0xff]  ;;  %2874 = vst [vmem:[%s6418_s1 + $0x990] sm:$0xff] %v2362_v22  ;;  %vm832_vm8 = vcmp.ge.f32.partialorder %v320_v20, 0.0 }
 0x16c   :  { %2875 = vst [vmem:[%s6418_s1 + $0x998] sm:$0xff] %v2363_v23  ;;  %v2365_v30 = vmul.f32 1.4142135, %v1853_v27  ;;  %v1343_v31 = vmul.f32 0.2, %v319_v15  ;;  %vm833_vm9 = vcmp.ge.f32.partialorder %v321_v21, 0.0 }
 0x16d   :  { %2876 = vst [vmem:[%s6418_s1 + $0x9a0] sm:$0xff] %v2364_v26  ;;  %v1854_v32 = vsel %vm830_vm6, %v318_v11, %v1342_v28  ;;  %v1344_v33 = vmul.f32 0.2, %v320_v20  ;;  %v1345_v34 = vmul.f32 0.2, %v321_v21  ;;  %vm834_vm10 = vcmp.ge.f32.partialorder %v322_v25, 0.0 }
 0x16e   :  { %v324_v35 = vld [vmem:[%s6417_s0 + $0x9e0] sm:$0xff]  ;;  %2877 = vst [vmem:[%s6418_s1 + $0x9a8] sm:$0xff] %v2365_v30  ;;  %v2366_v36 = vmul.f32 1.4142135, %v1854_v32  ;;  %v1855_v37 = vsel %vm831_vm7, %v319_v15, %v1343_v31  ;;  %v1346_v38 = vmul.f32 0.2, %v322_v25 }
 0x16f   :  { %vm835_vm11 = vcmp.ge.f32.partialorder %v323_v29, 0.0  ;;  %v325_v39 = vld [vmem:[%s6417_s0 + $0x9e8] sm:$0xff]  ;;  %v2367_v40 = vmul.f32 1.4142135, %v1855_v37  ;;  %v1856_v41 = vsel %vm832_vm8, %v320_v20, %v1344_v33  ;;  %v1857_v42 = vsel %vm833_vm9, %v321_v21, %v1345_v34  ;;  %v326_v44 = vld [vmem:[%s6417_s0 + $0x9f0] sm:$0xff]  ;;  %v327_v45 = vld [vmem:[%s6417_s0 + $0x9f8] sm:$0xff] }
 0x170   :  { %v1347_v43 = vmul.f32 0.2, %v323_v29  ;;  %2878 = vst [vmem:[%s6418_s1 + $0x9b0] sm:$0xff] %v2366_v36  ;;  %v2368_v46 = vmul.f32 1.4142135, %v1856_v41  ;;  %v1858_v48 = vsel %vm834_vm10, %v322_v25, %v1346_v38  ;;  %vm836_vm12 = vcmp.ge.f32.partialorder %v324_v35, 0.0 }
 0x171   :  { %v2369_v47 = vmul.f32 1.4142135, %v1857_v42  ;;  %v328_v49 = vld [vmem:[%s6417_s0 + $0xa00] sm:$0xff]  ;;  %2879 = vst [vmem:[%s6418_s1 + $0x9b8] sm:$0xff] %v2367_v40  ;;  %v2370_v50 = vmul.f32 1.4142135, %v1858_v48 }
 0x172   :  { %v1859_v51 = vsel %vm835_vm11, %v323_v29, %v1347_v43  ;;  %v1348_v52 = vmul.f32 0.2, %v324_v35  ;;  %vm837_vm13 = vcmp.ge.f32.partialorder %v325_v39, 0.0  ;;  %v329_v53 = vld [vmem:[%s6417_s0 + $0xa08] sm:$0xff]  ;;  %2880 = vst [vmem:[%s6418_s1 + $0x9c0] sm:$0xff] %v2368_v46  ;;  %vm838_vm14 = vcmp.ge.f32.partialorder %v326_v44, 0.0 }
 0x173   :  { %2881 = vst [vmem:[%s6418_s1 + $0x9c8] sm:$0xff] %v2369_v47  ;;  %v2371_v54 = vmul.f32 1.4142135, %v1859_v51  ;;  %v1349_v55 = vmul.f32 0.2, %v325_v39  ;;  %vm839_vm15 = vcmp.ge.f32.partialorder %v327_v45, 0.0 }
 0x174   :  { %2882 = vst [vmem:[%s6418_s1 + $0x9d0] sm:$0xff] %v2370_v50  ;;  %v1860_v56 = vsel %vm836_vm12, %v324_v35, %v1348_v52  ;;  %v1350_v57 = vmul.f32 0.2, %v326_v44  ;;  %v1351_v58 = vmul.f32 0.2, %v327_v45  ;;  %vm840_vm0 = vcmp.ge.f32.partialorder %v328_v49, 0.0 }
 0x175   :  { %v330_v59 = vld [vmem:[%s6417_s0 + $0xa10] sm:$0xff]  ;;  %2883 = vst [vmem:[%s6418_s1 + $0x9d8] sm:$0xff] %v2371_v54  ;;  %v2372_v60 = vmul.f32 1.4142135, %v1860_v56  ;;  %v1861_v61 = vsel %vm837_vm13, %v325_v39, %v1349_v55  ;;  %v1352_v62 = vmul.f32 0.2, %v328_v49 }
 0x176   :  { %vm841_vm1 = vcmp.ge.f32.partialorder %v329_v53, 0.0  ;;  %v331_v63 = vld [vmem:[%s6417_s0 + $0xa18] sm:$0xff]  ;;  %v2373_v0 = vmul.f32 1.4142135, %v1861_v61  ;;  %v1862_v1 = vsel %vm838_vm14, %v326_v44, %v1350_v57  ;;  %v1863_v2 = vsel %vm839_vm15, %v327_v45, %v1351_v58  ;;  %v332_v4 = vld [vmem:[%s6417_s0 + $0xa20] sm:$0xff]  ;;  %v333_v5 = vld [vmem:[%s6417_s0 + $0xa28] sm:$0xff] }
 0x177   :  { %v1353_v3 = vmul.f32 0.2, %v329_v53  ;;  %2884 = vst [vmem:[%s6418_s1 + $0x9e0] sm:$0xff] %v2372_v60  ;;  %v2374_v6 = vmul.f32 1.4142135, %v1862_v1  ;;  %v1864_v8 = vsel %vm840_vm0, %v328_v49, %v1352_v62  ;;  %vm842_vm2 = vcmp.ge.f32.partialorder %v330_v59, 0.0 }
 0x178   :  { %v2375_v7 = vmul.f32 1.4142135, %v1863_v2  ;;  %v334_v9 = vld [vmem:[%s6417_s0 + $0xa30] sm:$0xff]  ;;  %2885 = vst [vmem:[%s6418_s1 + $0x9e8] sm:$0xff] %v2373_v0  ;;  %v2376_v10 = vmul.f32 1.4142135, %v1864_v8 }
 0x179   :  { %v1865_v11 = vsel %vm841_vm1, %v329_v53, %v1353_v3  ;;  %v1354_v12 = vmul.f32 0.2, %v330_v59  ;;  %vm843_vm3 = vcmp.ge.f32.partialorder %v331_v63, 0.0  ;;  %v335_v13 = vld [vmem:[%s6417_s0 + $0xa38] sm:$0xff]  ;;  %2886 = vst [vmem:[%s6418_s1 + $0x9f0] sm:$0xff] %v2374_v6  ;;  %vm844_vm4 = vcmp.ge.f32.partialorder %v332_v4, 0.0 }
 0x17a   :  { %2887 = vst [vmem:[%s6418_s1 + $0x9f8] sm:$0xff] %v2375_v7  ;;  %v2377_v14 = vmul.f32 1.4142135, %v1865_v11  ;;  %v1355_v15 = vmul.f32 0.2, %v331_v63  ;;  %vm845_vm5 = vcmp.ge.f32.partialorder %v333_v5, 0.0 }
 0x17b   :  { %2888 = vst [vmem:[%s6418_s1 + $0xa00] sm:$0xff] %v2376_v10  ;;  %v1866_v16 = vsel %vm842_vm2, %v330_v59, %v1354_v12  ;;  %v1356_v17 = vmul.f32 0.2, %v332_v4  ;;  %v1357_v18 = vmul.f32 0.2, %v333_v5  ;;  %vm846_vm6 = vcmp.ge.f32.partialorder %v334_v9, 0.0 }
 0x17c   :  { %v336_v19 = vld [vmem:[%s6417_s0 + $0xa40] sm:$0xff]  ;;  %2889 = vst [vmem:[%s6418_s1 + $0xa08] sm:$0xff] %v2377_v14  ;;  %v2378_v20 = vmul.f32 1.4142135, %v1866_v16  ;;  %v1867_v21 = vsel %vm843_vm3, %v331_v63, %v1355_v15  ;;  %v1358_v22 = vmul.f32 0.2, %v334_v9 }
 0x17d   :  { %vm847_vm7 = vcmp.ge.f32.partialorder %v335_v13, 0.0  ;;  %v337_v23 = vld [vmem:[%s6417_s0 + $0xa48] sm:$0xff]  ;;  %v2379_v24 = vmul.f32 1.4142135, %v1867_v21  ;;  %v1868_v25 = vsel %vm844_vm4, %v332_v4, %v1356_v17  ;;  %v1869_v26 = vsel %vm845_vm5, %v333_v5, %v1357_v18  ;;  %v338_v28 = vld [vmem:[%s6417_s0 + $0xa50] sm:$0xff]  ;;  %v339_v29 = vld [vmem:[%s6417_s0 + $0xa58] sm:$0xff] }
 0x17e   :  { %v1359_v27 = vmul.f32 0.2, %v335_v13  ;;  %2890 = vst [vmem:[%s6418_s1 + $0xa10] sm:$0xff] %v2378_v20  ;;  %v2380_v30 = vmul.f32 1.4142135, %v1868_v25  ;;  %v1870_v32 = vsel %vm846_vm6, %v334_v9, %v1358_v22  ;;  %vm848_vm8 = vcmp.ge.f32.partialorder %v336_v19, 0.0 }
 0x17f   :  { %v2381_v31 = vmul.f32 1.4142135, %v1869_v26  ;;  %v340_v33 = vld [vmem:[%s6417_s0 + $0xa60] sm:$0xff]  ;;  %2891 = vst [vmem:[%s6418_s1 + $0xa18] sm:$0xff] %v2379_v24  ;;  %v2382_v34 = vmul.f32 1.4142135, %v1870_v32 }
 0x180   :  { %v1871_v35 = vsel %vm847_vm7, %v335_v13, %v1359_v27  ;;  %v1360_v36 = vmul.f32 0.2, %v336_v19  ;;  %vm849_vm9 = vcmp.ge.f32.partialorder %v337_v23, 0.0  ;;  %v341_v37 = vld [vmem:[%s6417_s0 + $0xa68] sm:$0xff]  ;;  %2892 = vst [vmem:[%s6418_s1 + $0xa20] sm:$0xff] %v2380_v30  ;;  %vm850_vm10 = vcmp.ge.f32.partialorder %v338_v28, 0.0 }
 0x181   :  { %2893 = vst [vmem:[%s6418_s1 + $0xa28] sm:$0xff] %v2381_v31  ;;  %v2383_v38 = vmul.f32 1.4142135, %v1871_v35  ;;  %v1361_v39 = vmul.f32 0.2, %v337_v23  ;;  %vm851_vm11 = vcmp.ge.f32.partialorder %v339_v29, 0.0 }
 0x182   :  { %2894 = vst [vmem:[%s6418_s1 + $0xa30] sm:$0xff] %v2382_v34  ;;  %v1872_v40 = vsel %vm848_vm8, %v336_v19, %v1360_v36  ;;  %v1362_v41 = vmul.f32 0.2, %v338_v28  ;;  %v1363_v42 = vmul.f32 0.2, %v339_v29  ;;  %vm852_vm12 = vcmp.ge.f32.partialorder %v340_v33, 0.0 }
 0x183   :  { %v342_v43 = vld [vmem:[%s6417_s0 + $0xa70] sm:$0xff]  ;;  %2895 = vst [vmem:[%s6418_s1 + $0xa38] sm:$0xff] %v2383_v38  ;;  %v2384_v44 = vmul.f32 1.4142135, %v1872_v40  ;;  %v1873_v45 = vsel %vm849_vm9, %v337_v23, %v1361_v39  ;;  %v1364_v46 = vmul.f32 0.2, %v340_v33 }
 0x184   :  { %vm853_vm13 = vcmp.ge.f32.partialorder %v341_v37, 0.0  ;;  %v343_v47 = vld [vmem:[%s6417_s0 + $0xa78] sm:$0xff]  ;;  %v2385_v48 = vmul.f32 1.4142135, %v1873_v45  ;;  %v1874_v49 = vsel %vm850_vm10, %v338_v28, %v1362_v41  ;;  %v1875_v50 = vsel %vm851_vm11, %v339_v29, %v1363_v42  ;;  %v344_v52 = vld [vmem:[%s6417_s0 + $0xa80] sm:$0xff]  ;;  %v345_v53 = vld [vmem:[%s6417_s0 + $0xa88] sm:$0xff] }
 0x185   :  { %v1365_v51 = vmul.f32 0.2, %v341_v37  ;;  %2896 = vst [vmem:[%s6418_s1 + $0xa40] sm:$0xff] %v2384_v44  ;;  %v2386_v54 = vmul.f32 1.4142135, %v1874_v49  ;;  %v1876_v56 = vsel %vm852_vm12, %v340_v33, %v1364_v46  ;;  %vm854_vm14 = vcmp.ge.f32.partialorder %v342_v43, 0.0 }
 0x186   :  { %v2387_v55 = vmul.f32 1.4142135, %v1875_v50  ;;  %v346_v57 = vld [vmem:[%s6417_s0 + $0xa90] sm:$0xff]  ;;  %2897 = vst [vmem:[%s6418_s1 + $0xa48] sm:$0xff] %v2385_v48  ;;  %v2388_v58 = vmul.f32 1.4142135, %v1876_v56 }
 0x187   :  { %v1877_v59 = vsel %vm853_vm13, %v341_v37, %v1365_v51  ;;  %v1366_v60 = vmul.f32 0.2, %v342_v43  ;;  %vm855_vm15 = vcmp.ge.f32.partialorder %v343_v47, 0.0  ;;  %v347_v61 = vld [vmem:[%s6417_s0 + $0xa98] sm:$0xff]  ;;  %2898 = vst [vmem:[%s6418_s1 + $0xa50] sm:$0xff] %v2386_v54  ;;  %vm856_vm0 = vcmp.ge.f32.partialorder %v344_v52, 0.0 }
 0x188   :  { %2899 = vst [vmem:[%s6418_s1 + $0xa58] sm:$0xff] %v2387_v55  ;;  %v2389_v62 = vmul.f32 1.4142135, %v1877_v59  ;;  %v1367_v63 = vmul.f32 0.2, %v343_v47  ;;  %vm857_vm1 = vcmp.ge.f32.partialorder %v345_v53, 0.0 }
 0x189   :  { %2900 = vst [vmem:[%s6418_s1 + $0xa60] sm:$0xff] %v2388_v58  ;;  %v1878_v0 = vsel %vm854_vm14, %v342_v43, %v1366_v60  ;;  %v1368_v1 = vmul.f32 0.2, %v344_v52  ;;  %v1369_v2 = vmul.f32 0.2, %v345_v53  ;;  %vm858_vm2 = vcmp.ge.f32.partialorder %v346_v57, 0.0 }
 0x18a   :  { %v348_v3 = vld [vmem:[%s6417_s0 + $0xaa0] sm:$0xff]  ;;  %2901 = vst [vmem:[%s6418_s1 + $0xa68] sm:$0xff] %v2389_v62  ;;  %v2390_v4 = vmul.f32 1.4142135, %v1878_v0  ;;  %v1879_v5 = vsel %vm855_vm15, %v343_v47, %v1367_v63  ;;  %v1370_v6 = vmul.f32 0.2, %v346_v57 }
 0x18b   :  { %vm859_vm3 = vcmp.ge.f32.partialorder %v347_v61, 0.0  ;;  %v349_v7 = vld [vmem:[%s6417_s0 + $0xaa8] sm:$0xff]  ;;  %v2391_v8 = vmul.f32 1.4142135, %v1879_v5  ;;  %v1880_v9 = vsel %vm856_vm0, %v344_v52, %v1368_v1  ;;  %v1881_v10 = vsel %vm857_vm1, %v345_v53, %v1369_v2  ;;  %v350_v12 = vld [vmem:[%s6417_s0 + $0xab0] sm:$0xff]  ;;  %v351_v13 = vld [vmem:[%s6417_s0 + $0xab8] sm:$0xff] }
 0x18c   :  { %v1371_v11 = vmul.f32 0.2, %v347_v61  ;;  %2902 = vst [vmem:[%s6418_s1 + $0xa70] sm:$0xff] %v2390_v4  ;;  %v2392_v14 = vmul.f32 1.4142135, %v1880_v9  ;;  %v1882_v16 = vsel %vm858_vm2, %v346_v57, %v1370_v6  ;;  %vm860_vm4 = vcmp.ge.f32.partialorder %v348_v3, 0.0 }
 0x18d   :  { %v2393_v15 = vmul.f32 1.4142135, %v1881_v10  ;;  %v352_v17 = vld [vmem:[%s6417_s0 + $0xac0] sm:$0xff]  ;;  %2903 = vst [vmem:[%s6418_s1 + $0xa78] sm:$0xff] %v2391_v8  ;;  %v2394_v18 = vmul.f32 1.4142135, %v1882_v16 }
 0x18e   :  { %v1883_v19 = vsel %vm859_vm3, %v347_v61, %v1371_v11  ;;  %v1372_v20 = vmul.f32 0.2, %v348_v3  ;;  %vm861_vm5 = vcmp.ge.f32.partialorder %v349_v7, 0.0  ;;  %v353_v21 = vld [vmem:[%s6417_s0 + $0xac8] sm:$0xff]  ;;  %2904 = vst [vmem:[%s6418_s1 + $0xa80] sm:$0xff] %v2392_v14  ;;  %vm862_vm6 = vcmp.ge.f32.partialorder %v350_v12, 0.0 }
 0x18f   :  { %2905 = vst [vmem:[%s6418_s1 + $0xa88] sm:$0xff] %v2393_v15  ;;  %v2395_v22 = vmul.f32 1.4142135, %v1883_v19  ;;  %v1373_v23 = vmul.f32 0.2, %v349_v7  ;;  %vm863_vm7 = vcmp.ge.f32.partialorder %v351_v13, 0.0 }
 0x190   :  { %2906 = vst [vmem:[%s6418_s1 + $0xa90] sm:$0xff] %v2394_v18  ;;  %v1884_v24 = vsel %vm860_vm4, %v348_v3, %v1372_v20  ;;  %v1374_v25 = vmul.f32 0.2, %v350_v12  ;;  %v1375_v26 = vmul.f32 0.2, %v351_v13  ;;  %vm864_vm8 = vcmp.ge.f32.partialorder %v352_v17, 0.0 }
 0x191   :  { %v354_v27 = vld [vmem:[%s6417_s0 + $0xad0] sm:$0xff]  ;;  %2907 = vst [vmem:[%s6418_s1 + $0xa98] sm:$0xff] %v2395_v22  ;;  %v2396_v28 = vmul.f32 1.4142135, %v1884_v24  ;;  %v1885_v29 = vsel %vm861_vm5, %v349_v7, %v1373_v23  ;;  %v1376_v30 = vmul.f32 0.2, %v352_v17 }
 0x192   :  { %vm865_vm9 = vcmp.ge.f32.partialorder %v353_v21, 0.0  ;;  %v355_v31 = vld [vmem:[%s6417_s0 + $0xad8] sm:$0xff]  ;;  %v2397_v32 = vmul.f32 1.4142135, %v1885_v29  ;;  %v1886_v33 = vsel %vm862_vm6, %v350_v12, %v1374_v25  ;;  %v1887_v34 = vsel %vm863_vm7, %v351_v13, %v1375_v26  ;;  %v356_v36 = vld [vmem:[%s6417_s0 + $0xae0] sm:$0xff]  ;;  %v357_v37 = vld [vmem:[%s6417_s0 + $0xae8] sm:$0xff] }
 0x193   :  { %v1377_v35 = vmul.f32 0.2, %v353_v21  ;;  %2908 = vst [vmem:[%s6418_s1 + $0xaa0] sm:$0xff] %v2396_v28  ;;  %v2398_v38 = vmul.f32 1.4142135, %v1886_v33  ;;  %v1888_v40 = vsel %vm864_vm8, %v352_v17, %v1376_v30  ;;  %vm866_vm10 = vcmp.ge.f32.partialorder %v354_v27, 0.0 }
 0x194   :  { %v2399_v39 = vmul.f32 1.4142135, %v1887_v34  ;;  %v358_v41 = vld [vmem:[%s6417_s0 + $0xaf0] sm:$0xff]  ;;  %2909 = vst [vmem:[%s6418_s1 + $0xaa8] sm:$0xff] %v2397_v32  ;;  %v2400_v42 = vmul.f32 1.4142135, %v1888_v40 }
 0x195   :  { %v1889_v43 = vsel %vm865_vm9, %v353_v21, %v1377_v35  ;;  %v1378_v44 = vmul.f32 0.2, %v354_v27  ;;  %vm867_vm11 = vcmp.ge.f32.partialorder %v355_v31, 0.0  ;;  %v359_v45 = vld [vmem:[%s6417_s0 + $0xaf8] sm:$0xff]  ;;  %2910 = vst [vmem:[%s6418_s1 + $0xab0] sm:$0xff] %v2398_v38  ;;  %vm868_vm12 = vcmp.ge.f32.partialorder %v356_v36, 0.0 }
 0x196   :  { %2911 = vst [vmem:[%s6418_s1 + $0xab8] sm:$0xff] %v2399_v39  ;;  %v2401_v46 = vmul.f32 1.4142135, %v1889_v43  ;;  %v1379_v47 = vmul.f32 0.2, %v355_v31  ;;  %vm869_vm13 = vcmp.ge.f32.partialorder %v357_v37, 0.0 }
 0x197   :  { %2912 = vst [vmem:[%s6418_s1 + $0xac0] sm:$0xff] %v2400_v42  ;;  %v1890_v48 = vsel %vm866_vm10, %v354_v27, %v1378_v44  ;;  %v1380_v49 = vmul.f32 0.2, %v356_v36  ;;  %v1381_v50 = vmul.f32 0.2, %v357_v37  ;;  %vm870_vm14 = vcmp.ge.f32.partialorder %v358_v41, 0.0 }
 0x198   :  { %v360_v51 = vld [vmem:[%s6417_s0 + $0xb00] sm:$0xff]  ;;  %2913 = vst [vmem:[%s6418_s1 + $0xac8] sm:$0xff] %v2401_v46  ;;  %v2402_v52 = vmul.f32 1.4142135, %v1890_v48  ;;  %v1891_v53 = vsel %vm867_vm11, %v355_v31, %v1379_v47  ;;  %v1382_v54 = vmul.f32 0.2, %v358_v41 }
 0x199   :  { %vm871_vm15 = vcmp.ge.f32.partialorder %v359_v45, 0.0  ;;  %v361_v55 = vld [vmem:[%s6417_s0 + $0xb08] sm:$0xff]  ;;  %v2403_v56 = vmul.f32 1.4142135, %v1891_v53  ;;  %v1892_v57 = vsel %vm868_vm12, %v356_v36, %v1380_v49  ;;  %v1893_v58 = vsel %vm869_vm13, %v357_v37, %v1381_v50  ;;  %v362_v60 = vld [vmem:[%s6417_s0 + $0xb10] sm:$0xff]  ;;  %v363_v61 = vld [vmem:[%s6417_s0 + $0xb18] sm:$0xff] }
 0x19a   :  { %v1383_v59 = vmul.f32 0.2, %v359_v45  ;;  %2914 = vst [vmem:[%s6418_s1 + $0xad0] sm:$0xff] %v2402_v52  ;;  %v2404_v62 = vmul.f32 1.4142135, %v1892_v57  ;;  %v1894_v0 = vsel %vm870_vm14, %v358_v41, %v1382_v54  ;;  %vm872_vm0 = vcmp.ge.f32.partialorder %v360_v51, 0.0 }
 0x19b   :  { %v2405_v63 = vmul.f32 1.4142135, %v1893_v58  ;;  %v364_v1 = vld [vmem:[%s6417_s0 + $0xb20] sm:$0xff]  ;;  %2915 = vst [vmem:[%s6418_s1 + $0xad8] sm:$0xff] %v2403_v56  ;;  %v2406_v2 = vmul.f32 1.4142135, %v1894_v0 }
 0x19c   :  { %v1895_v3 = vsel %vm871_vm15, %v359_v45, %v1383_v59  ;;  %v1384_v4 = vmul.f32 0.2, %v360_v51  ;;  %vm873_vm1 = vcmp.ge.f32.partialorder %v361_v55, 0.0  ;;  %v365_v5 = vld [vmem:[%s6417_s0 + $0xb28] sm:$0xff]  ;;  %2916 = vst [vmem:[%s6418_s1 + $0xae0] sm:$0xff] %v2404_v62  ;;  %vm874_vm2 = vcmp.ge.f32.partialorder %v362_v60, 0.0 }
 0x19d   :  { %2917 = vst [vmem:[%s6418_s1 + $0xae8] sm:$0xff] %v2405_v63  ;;  %v2407_v6 = vmul.f32 1.4142135, %v1895_v3  ;;  %v1385_v7 = vmul.f32 0.2, %v361_v55  ;;  %vm875_vm3 = vcmp.ge.f32.partialorder %v363_v61, 0.0 }
 0x19e   :  { %2918 = vst [vmem:[%s6418_s1 + $0xaf0] sm:$0xff] %v2406_v2  ;;  %v1896_v8 = vsel %vm872_vm0, %v360_v51, %v1384_v4  ;;  %v1386_v9 = vmul.f32 0.2, %v362_v60  ;;  %v1387_v10 = vmul.f32 0.2, %v363_v61  ;;  %vm876_vm4 = vcmp.ge.f32.partialorder %v364_v1, 0.0 }
 0x19f   :  { %v366_v11 = vld [vmem:[%s6417_s0 + $0xb30] sm:$0xff]  ;;  %2919 = vst [vmem:[%s6418_s1 + $0xaf8] sm:$0xff] %v2407_v6  ;;  %v2408_v12 = vmul.f32 1.4142135, %v1896_v8  ;;  %v1897_v13 = vsel %vm873_vm1, %v361_v55, %v1385_v7  ;;  %v1388_v14 = vmul.f32 0.2, %v364_v1 }
 0x1a0   :  { %vm877_vm5 = vcmp.ge.f32.partialorder %v365_v5, 0.0  ;;  %v367_v15 = vld [vmem:[%s6417_s0 + $0xb38] sm:$0xff]  ;;  %v2409_v16 = vmul.f32 1.4142135, %v1897_v13  ;;  %v1898_v17 = vsel %vm874_vm2, %v362_v60, %v1386_v9  ;;  %v1899_v18 = vsel %vm875_vm3, %v363_v61, %v1387_v10  ;;  %v368_v20 = vld [vmem:[%s6417_s0 + $0xb40] sm:$0xff]  ;;  %v369_v21 = vld [vmem:[%s6417_s0 + $0xb48] sm:$0xff] }
 0x1a1   :  { %v1389_v19 = vmul.f32 0.2, %v365_v5  ;;  %2920 = vst [vmem:[%s6418_s1 + $0xb00] sm:$0xff] %v2408_v12  ;;  %v2410_v22 = vmul.f32 1.4142135, %v1898_v17  ;;  %v1900_v24 = vsel %vm876_vm4, %v364_v1, %v1388_v14  ;;  %vm878_vm6 = vcmp.ge.f32.partialorder %v366_v11, 0.0 }
 0x1a2   :  { %v2411_v23 = vmul.f32 1.4142135, %v1899_v18  ;;  %v370_v25 = vld [vmem:[%s6417_s0 + $0xb50] sm:$0xff]  ;;  %2921 = vst [vmem:[%s6418_s1 + $0xb08] sm:$0xff] %v2409_v16  ;;  %v2412_v26 = vmul.f32 1.4142135, %v1900_v24 }
 0x1a3   :  { %v1901_v27 = vsel %vm877_vm5, %v365_v5, %v1389_v19  ;;  %v1390_v28 = vmul.f32 0.2, %v366_v11  ;;  %vm879_vm7 = vcmp.ge.f32.partialorder %v367_v15, 0.0  ;;  %v371_v29 = vld [vmem:[%s6417_s0 + $0xb58] sm:$0xff]  ;;  %2922 = vst [vmem:[%s6418_s1 + $0xb10] sm:$0xff] %v2410_v22  ;;  %vm880_vm8 = vcmp.ge.f32.partialorder %v368_v20, 0.0 }
 0x1a4   :  { %2923 = vst [vmem:[%s6418_s1 + $0xb18] sm:$0xff] %v2411_v23  ;;  %v2413_v30 = vmul.f32 1.4142135, %v1901_v27  ;;  %v1391_v31 = vmul.f32 0.2, %v367_v15  ;;  %vm881_vm9 = vcmp.ge.f32.partialorder %v369_v21, 0.0 }
 0x1a5   :  { %2924 = vst [vmem:[%s6418_s1 + $0xb20] sm:$0xff] %v2412_v26  ;;  %v1902_v32 = vsel %vm878_vm6, %v366_v11, %v1390_v28  ;;  %v1392_v33 = vmul.f32 0.2, %v368_v20  ;;  %v1393_v34 = vmul.f32 0.2, %v369_v21  ;;  %vm882_vm10 = vcmp.ge.f32.partialorder %v370_v25, 0.0 }
 0x1a6   :  { %v372_v35 = vld [vmem:[%s6417_s0 + $0xb60] sm:$0xff]  ;;  %2925 = vst [vmem:[%s6418_s1 + $0xb28] sm:$0xff] %v2413_v30  ;;  %v2414_v36 = vmul.f32 1.4142135, %v1902_v32  ;;  %v1903_v37 = vsel %vm879_vm7, %v367_v15, %v1391_v31  ;;  %v1394_v38 = vmul.f32 0.2, %v370_v25 }
 0x1a7   :  { %vm883_vm11 = vcmp.ge.f32.partialorder %v371_v29, 0.0  ;;  %v373_v39 = vld [vmem:[%s6417_s0 + $0xb68] sm:$0xff]  ;;  %v2415_v40 = vmul.f32 1.4142135, %v1903_v37  ;;  %v1904_v41 = vsel %vm880_vm8, %v368_v20, %v1392_v33  ;;  %v1905_v42 = vsel %vm881_vm9, %v369_v21, %v1393_v34  ;;  %v374_v44 = vld [vmem:[%s6417_s0 + $0xb70] sm:$0xff]  ;;  %v375_v45 = vld [vmem:[%s6417_s0 + $0xb78] sm:$0xff] }
 0x1a8   :  { %v1395_v43 = vmul.f32 0.2, %v371_v29  ;;  %2926 = vst [vmem:[%s6418_s1 + $0xb30] sm:$0xff] %v2414_v36  ;;  %v2416_v46 = vmul.f32 1.4142135, %v1904_v41  ;;  %v1906_v48 = vsel %vm882_vm10, %v370_v25, %v1394_v38  ;;  %vm884_vm12 = vcmp.ge.f32.partialorder %v372_v35, 0.0 }
 0x1a9   :  { %v2417_v47 = vmul.f32 1.4142135, %v1905_v42  ;;  %v376_v49 = vld [vmem:[%s6417_s0 + $0xb80] sm:$0xff]  ;;  %2927 = vst [vmem:[%s6418_s1 + $0xb38] sm:$0xff] %v2415_v40  ;;  %v2418_v50 = vmul.f32 1.4142135, %v1906_v48 }
 0x1aa   :  { %v1907_v51 = vsel %vm883_vm11, %v371_v29, %v1395_v43  ;;  %v1396_v52 = vmul.f32 0.2, %v372_v35  ;;  %vm885_vm13 = vcmp.ge.f32.partialorder %v373_v39, 0.0  ;;  %v377_v53 = vld [vmem:[%s6417_s0 + $0xb88] sm:$0xff]  ;;  %2928 = vst [vmem:[%s6418_s1 + $0xb40] sm:$0xff] %v2416_v46  ;;  %vm886_vm14 = vcmp.ge.f32.partialorder %v374_v44, 0.0 }
 0x1ab   :  { %2929 = vst [vmem:[%s6418_s1 + $0xb48] sm:$0xff] %v2417_v47  ;;  %v2419_v54 = vmul.f32 1.4142135, %v1907_v51  ;;  %v1397_v55 = vmul.f32 0.2, %v373_v39  ;;  %vm887_vm15 = vcmp.ge.f32.partialorder %v375_v45, 0.0 }
 0x1ac   :  { %2930 = vst [vmem:[%s6418_s1 + $0xb50] sm:$0xff] %v2418_v50  ;;  %v1908_v56 = vsel %vm884_vm12, %v372_v35, %v1396_v52  ;;  %v1398_v57 = vmul.f32 0.2, %v374_v44  ;;  %v1399_v58 = vmul.f32 0.2, %v375_v45  ;;  %vm888_vm0 = vcmp.ge.f32.partialorder %v376_v49, 0.0 }
 0x1ad   :  { %v378_v59 = vld [vmem:[%s6417_s0 + $0xb90] sm:$0xff]  ;;  %2931 = vst [vmem:[%s6418_s1 + $0xb58] sm:$0xff] %v2419_v54  ;;  %v2420_v60 = vmul.f32 1.4142135, %v1908_v56  ;;  %v1909_v61 = vsel %vm885_vm13, %v373_v39, %v1397_v55  ;;  %v1400_v62 = vmul.f32 0.2, %v376_v49 }
 0x1ae   :  { %vm889_vm1 = vcmp.ge.f32.partialorder %v377_v53, 0.0  ;;  %v379_v63 = vld [vmem:[%s6417_s0 + $0xb98] sm:$0xff]  ;;  %v2421_v0 = vmul.f32 1.4142135, %v1909_v61  ;;  %v1910_v1 = vsel %vm886_vm14, %v374_v44, %v1398_v57  ;;  %v1911_v2 = vsel %vm887_vm15, %v375_v45, %v1399_v58  ;;  %v380_v4 = vld [vmem:[%s6417_s0 + $0xba0] sm:$0xff]  ;;  %v381_v5 = vld [vmem:[%s6417_s0 + $0xba8] sm:$0xff] }
 0x1af   :  { %v1401_v3 = vmul.f32 0.2, %v377_v53  ;;  %2932 = vst [vmem:[%s6418_s1 + $0xb60] sm:$0xff] %v2420_v60  ;;  %v2422_v6 = vmul.f32 1.4142135, %v1910_v1  ;;  %v1912_v8 = vsel %vm888_vm0, %v376_v49, %v1400_v62  ;;  %vm890_vm2 = vcmp.ge.f32.partialorder %v378_v59, 0.0 }
 0x1b0   :  { %v2423_v7 = vmul.f32 1.4142135, %v1911_v2  ;;  %v382_v9 = vld [vmem:[%s6417_s0 + $0xbb0] sm:$0xff]  ;;  %2933 = vst [vmem:[%s6418_s1 + $0xb68] sm:$0xff] %v2421_v0  ;;  %v2424_v10 = vmul.f32 1.4142135, %v1912_v8 }
 0x1b1   :  { %v1913_v11 = vsel %vm889_vm1, %v377_v53, %v1401_v3  ;;  %v1402_v12 = vmul.f32 0.2, %v378_v59  ;;  %vm891_vm3 = vcmp.ge.f32.partialorder %v379_v63, 0.0  ;;  %v383_v13 = vld [vmem:[%s6417_s0 + $0xbb8] sm:$0xff]  ;;  %2934 = vst [vmem:[%s6418_s1 + $0xb70] sm:$0xff] %v2422_v6  ;;  %vm892_vm4 = vcmp.ge.f32.partialorder %v380_v4, 0.0 }
 0x1b2   :  { %2935 = vst [vmem:[%s6418_s1 + $0xb78] sm:$0xff] %v2423_v7  ;;  %v2425_v14 = vmul.f32 1.4142135, %v1913_v11  ;;  %v1403_v15 = vmul.f32 0.2, %v379_v63  ;;  %vm893_vm5 = vcmp.ge.f32.partialorder %v381_v5, 0.0 }
 0x1b3   :  { %2936 = vst [vmem:[%s6418_s1 + $0xb80] sm:$0xff] %v2424_v10  ;;  %v1914_v16 = vsel %vm890_vm2, %v378_v59, %v1402_v12  ;;  %v1404_v17 = vmul.f32 0.2, %v380_v4  ;;  %v1405_v18 = vmul.f32 0.2, %v381_v5  ;;  %vm894_vm6 = vcmp.ge.f32.partialorder %v382_v9, 0.0 }
 0x1b4   :  { %v384_v19 = vld [vmem:[%s6417_s0 + $0xbc0] sm:$0xff]  ;;  %2937 = vst [vmem:[%s6418_s1 + $0xb88] sm:$0xff] %v2425_v14  ;;  %v2426_v20 = vmul.f32 1.4142135, %v1914_v16  ;;  %v1915_v21 = vsel %vm891_vm3, %v379_v63, %v1403_v15  ;;  %v1406_v22 = vmul.f32 0.2, %v382_v9 }
 0x1b5   :  { %vm895_vm7 = vcmp.ge.f32.partialorder %v383_v13, 0.0  ;;  %v385_v23 = vld [vmem:[%s6417_s0 + $0xbc8] sm:$0xff]  ;;  %v2427_v24 = vmul.f32 1.4142135, %v1915_v21  ;;  %v1916_v25 = vsel %vm892_vm4, %v380_v4, %v1404_v17  ;;  %v1917_v26 = vsel %vm893_vm5, %v381_v5, %v1405_v18  ;;  %v386_v28 = vld [vmem:[%s6417_s0 + $0xbd0] sm:$0xff]  ;;  %v387_v29 = vld [vmem:[%s6417_s0 + $0xbd8] sm:$0xff] }
 0x1b6   :  { %v1407_v27 = vmul.f32 0.2, %v383_v13  ;;  %2938 = vst [vmem:[%s6418_s1 + $0xb90] sm:$0xff] %v2426_v20  ;;  %v2428_v30 = vmul.f32 1.4142135, %v1916_v25  ;;  %v1918_v32 = vsel %vm894_vm6, %v382_v9, %v1406_v22  ;;  %vm896_vm8 = vcmp.ge.f32.partialorder %v384_v19, 0.0 }
 0x1b7   :  { %v2429_v31 = vmul.f32 1.4142135, %v1917_v26  ;;  %v388_v33 = vld [vmem:[%s6417_s0 + $0xbe0] sm:$0xff]  ;;  %2939 = vst [vmem:[%s6418_s1 + $0xb98] sm:$0xff] %v2427_v24  ;;  %v2430_v34 = vmul.f32 1.4142135, %v1918_v32 }
 0x1b8   :  { %v1919_v35 = vsel %vm895_vm7, %v383_v13, %v1407_v27  ;;  %v1408_v36 = vmul.f32 0.2, %v384_v19  ;;  %vm897_vm9 = vcmp.ge.f32.partialorder %v385_v23, 0.0  ;;  %v389_v37 = vld [vmem:[%s6417_s0 + $0xbe8] sm:$0xff]  ;;  %2940 = vst [vmem:[%s6418_s1 + $0xba0] sm:$0xff] %v2428_v30  ;;  %vm898_vm10 = vcmp.ge.f32.partialorder %v386_v28, 0.0 }
 0x1b9   :  { %2941 = vst [vmem:[%s6418_s1 + $0xba8] sm:$0xff] %v2429_v31  ;;  %v2431_v38 = vmul.f32 1.4142135, %v1919_v35  ;;  %v1409_v39 = vmul.f32 0.2, %v385_v23  ;;  %vm899_vm11 = vcmp.ge.f32.partialorder %v387_v29, 0.0 }
 0x1ba   :  { %2942 = vst [vmem:[%s6418_s1 + $0xbb0] sm:$0xff] %v2430_v34  ;;  %v1920_v40 = vsel %vm896_vm8, %v384_v19, %v1408_v36  ;;  %v1410_v41 = vmul.f32 0.2, %v386_v28  ;;  %v1411_v42 = vmul.f32 0.2, %v387_v29  ;;  %vm900_vm12 = vcmp.ge.f32.partialorder %v388_v33, 0.0 }
 0x1bb   :  { %v390_v43 = vld [vmem:[%s6417_s0 + $0xbf0] sm:$0xff]  ;;  %2943 = vst [vmem:[%s6418_s1 + $0xbb8] sm:$0xff] %v2431_v38  ;;  %v2432_v44 = vmul.f32 1.4142135, %v1920_v40  ;;  %v1921_v45 = vsel %vm897_vm9, %v385_v23, %v1409_v39  ;;  %v1412_v46 = vmul.f32 0.2, %v388_v33 }
 0x1bc   :  { %vm901_vm13 = vcmp.ge.f32.partialorder %v389_v37, 0.0  ;;  %v391_v47 = vld [vmem:[%s6417_s0 + $0xbf8] sm:$0xff]  ;;  %v2433_v48 = vmul.f32 1.4142135, %v1921_v45  ;;  %v1922_v49 = vsel %vm898_vm10, %v386_v28, %v1410_v41  ;;  %v1923_v50 = vsel %vm899_vm11, %v387_v29, %v1411_v42  ;;  %v392_v52 = vld [vmem:[%s6417_s0 + $0xc00] sm:$0xff]  ;;  %v393_v53 = vld [vmem:[%s6417_s0 + $0xc08] sm:$0xff] }
 0x1bd   :  { %v1413_v51 = vmul.f32 0.2, %v389_v37  ;;  %2944 = vst [vmem:[%s6418_s1 + $0xbc0] sm:$0xff] %v2432_v44  ;;  %v2434_v54 = vmul.f32 1.4142135, %v1922_v49  ;;  %v1924_v56 = vsel %vm900_vm12, %v388_v33, %v1412_v46  ;;  %vm902_vm14 = vcmp.ge.f32.partialorder %v390_v43, 0.0 }
 0x1be   :  { %v2435_v55 = vmul.f32 1.4142135, %v1923_v50  ;;  %v394_v57 = vld [vmem:[%s6417_s0 + $0xc10] sm:$0xff]  ;;  %2945 = vst [vmem:[%s6418_s1 + $0xbc8] sm:$0xff] %v2433_v48  ;;  %v2436_v58 = vmul.f32 1.4142135, %v1924_v56 }
 0x1bf   :  { %v1925_v59 = vsel %vm901_vm13, %v389_v37, %v1413_v51  ;;  %v1414_v60 = vmul.f32 0.2, %v390_v43  ;;  %vm903_vm15 = vcmp.ge.f32.partialorder %v391_v47, 0.0  ;;  %v395_v61 = vld [vmem:[%s6417_s0 + $0xc18] sm:$0xff]  ;;  %2946 = vst [vmem:[%s6418_s1 + $0xbd0] sm:$0xff] %v2434_v54  ;;  %vm904_vm0 = vcmp.ge.f32.partialorder %v392_v52, 0.0 }
 0x1c0   :  { %2947 = vst [vmem:[%s6418_s1 + $0xbd8] sm:$0xff] %v2435_v55  ;;  %v2437_v62 = vmul.f32 1.4142135, %v1925_v59  ;;  %v1415_v63 = vmul.f32 0.2, %v391_v47  ;;  %vm905_vm1 = vcmp.ge.f32.partialorder %v393_v53, 0.0 }
 0x1c1   :  { %2948 = vst [vmem:[%s6418_s1 + $0xbe0] sm:$0xff] %v2436_v58  ;;  %v1926_v0 = vsel %vm902_vm14, %v390_v43, %v1414_v60  ;;  %v1416_v1 = vmul.f32 0.2, %v392_v52  ;;  %v1417_v2 = vmul.f32 0.2, %v393_v53  ;;  %vm906_vm2 = vcmp.ge.f32.partialorder %v394_v57, 0.0 }
 0x1c2   :  { %v396_v3 = vld [vmem:[%s6417_s0 + $0xc20] sm:$0xff]  ;;  %2949 = vst [vmem:[%s6418_s1 + $0xbe8] sm:$0xff] %v2437_v62  ;;  %v2438_v4 = vmul.f32 1.4142135, %v1926_v0  ;;  %v1927_v5 = vsel %vm903_vm15, %v391_v47, %v1415_v63  ;;  %v1418_v6 = vmul.f32 0.2, %v394_v57 }
 0x1c3   :  { %vm907_vm3 = vcmp.ge.f32.partialorder %v395_v61, 0.0  ;;  %v397_v7 = vld [vmem:[%s6417_s0 + $0xc28] sm:$0xff]  ;;  %v2439_v8 = vmul.f32 1.4142135, %v1927_v5  ;;  %v1928_v9 = vsel %vm904_vm0, %v392_v52, %v1416_v1  ;;  %v1929_v10 = vsel %vm905_vm1, %v393_v53, %v1417_v2  ;;  %v398_v12 = vld [vmem:[%s6417_s0 + $0xc30] sm:$0xff]  ;;  %v399_v13 = vld [vmem:[%s6417_s0 + $0xc38] sm:$0xff] }
 0x1c4   :  { %v1419_v11 = vmul.f32 0.2, %v395_v61  ;;  %2950 = vst [vmem:[%s6418_s1 + $0xbf0] sm:$0xff] %v2438_v4  ;;  %v2440_v14 = vmul.f32 1.4142135, %v1928_v9  ;;  %v1930_v16 = vsel %vm906_vm2, %v394_v57, %v1418_v6  ;;  %vm908_vm4 = vcmp.ge.f32.partialorder %v396_v3, 0.0 }
 0x1c5   :  { %v2441_v15 = vmul.f32 1.4142135, %v1929_v10  ;;  %v400_v17 = vld [vmem:[%s6417_s0 + $0xc40] sm:$0xff]  ;;  %2951 = vst [vmem:[%s6418_s1 + $0xbf8] sm:$0xff] %v2439_v8  ;;  %v2442_v18 = vmul.f32 1.4142135, %v1930_v16 }
 0x1c6   :  { %v1931_v19 = vsel %vm907_vm3, %v395_v61, %v1419_v11  ;;  %v1420_v20 = vmul.f32 0.2, %v396_v3  ;;  %vm909_vm5 = vcmp.ge.f32.partialorder %v397_v7, 0.0  ;;  %v401_v21 = vld [vmem:[%s6417_s0 + $0xc48] sm:$0xff]  ;;  %2952 = vst [vmem:[%s6418_s1 + $0xc00] sm:$0xff] %v2440_v14  ;;  %vm910_vm6 = vcmp.ge.f32.partialorder %v398_v12, 0.0 }
 0x1c7   :  { %2953 = vst [vmem:[%s6418_s1 + $0xc08] sm:$0xff] %v2441_v15  ;;  %v2443_v22 = vmul.f32 1.4142135, %v1931_v19  ;;  %v1421_v23 = vmul.f32 0.2, %v397_v7  ;;  %vm911_vm7 = vcmp.ge.f32.partialorder %v399_v13, 0.0 }
 0x1c8   :  { %2954 = vst [vmem:[%s6418_s1 + $0xc10] sm:$0xff] %v2442_v18  ;;  %v1932_v24 = vsel %vm908_vm4, %v396_v3, %v1420_v20  ;;  %v1422_v25 = vmul.f32 0.2, %v398_v12  ;;  %v1423_v26 = vmul.f32 0.2, %v399_v13  ;;  %vm912_vm8 = vcmp.ge.f32.partialorder %v400_v17, 0.0 }
 0x1c9   :  { %v402_v27 = vld [vmem:[%s6417_s0 + $0xc50] sm:$0xff]  ;;  %2955 = vst [vmem:[%s6418_s1 + $0xc18] sm:$0xff] %v2443_v22  ;;  %v2444_v28 = vmul.f32 1.4142135, %v1932_v24  ;;  %v1933_v29 = vsel %vm909_vm5, %v397_v7, %v1421_v23  ;;  %v1424_v30 = vmul.f32 0.2, %v400_v17 }
 0x1ca   :  { %vm913_vm9 = vcmp.ge.f32.partialorder %v401_v21, 0.0  ;;  %v403_v31 = vld [vmem:[%s6417_s0 + $0xc58] sm:$0xff]  ;;  %v2445_v32 = vmul.f32 1.4142135, %v1933_v29  ;;  %v1934_v33 = vsel %vm910_vm6, %v398_v12, %v1422_v25  ;;  %v1935_v34 = vsel %vm911_vm7, %v399_v13, %v1423_v26  ;;  %v404_v36 = vld [vmem:[%s6417_s0 + $0xc60] sm:$0xff]  ;;  %v405_v37 = vld [vmem:[%s6417_s0 + $0xc68] sm:$0xff] }
 0x1cb   :  { %v1425_v35 = vmul.f32 0.2, %v401_v21  ;;  %2956 = vst [vmem:[%s6418_s1 + $0xc20] sm:$0xff] %v2444_v28  ;;  %v2446_v38 = vmul.f32 1.4142135, %v1934_v33  ;;  %v1936_v40 = vsel %vm912_vm8, %v400_v17, %v1424_v30  ;;  %vm914_vm10 = vcmp.ge.f32.partialorder %v402_v27, 0.0 }
 0x1cc   :  { %v2447_v39 = vmul.f32 1.4142135, %v1935_v34  ;;  %v406_v41 = vld [vmem:[%s6417_s0 + $0xc70] sm:$0xff]  ;;  %2957 = vst [vmem:[%s6418_s1 + $0xc28] sm:$0xff] %v2445_v32  ;;  %v2448_v42 = vmul.f32 1.4142135, %v1936_v40 }
 0x1cd   :  { %v1937_v43 = vsel %vm913_vm9, %v401_v21, %v1425_v35  ;;  %v1426_v44 = vmul.f32 0.2, %v402_v27  ;;  %vm915_vm11 = vcmp.ge.f32.partialorder %v403_v31, 0.0  ;;  %v407_v45 = vld [vmem:[%s6417_s0 + $0xc78] sm:$0xff]  ;;  %2958 = vst [vmem:[%s6418_s1 + $0xc30] sm:$0xff] %v2446_v38  ;;  %vm916_vm12 = vcmp.ge.f32.partialorder %v404_v36, 0.0 }
 0x1ce   :  { %2959 = vst [vmem:[%s6418_s1 + $0xc38] sm:$0xff] %v2447_v39  ;;  %v2449_v46 = vmul.f32 1.4142135, %v1937_v43  ;;  %v1427_v47 = vmul.f32 0.2, %v403_v31  ;;  %vm917_vm13 = vcmp.ge.f32.partialorder %v405_v37, 0.0 }
 0x1cf   :  { %2960 = vst [vmem:[%s6418_s1 + $0xc40] sm:$0xff] %v2448_v42  ;;  %v1938_v48 = vsel %vm914_vm10, %v402_v27, %v1426_v44  ;;  %v1428_v49 = vmul.f32 0.2, %v404_v36  ;;  %v1429_v50 = vmul.f32 0.2, %v405_v37  ;;  %vm918_vm14 = vcmp.ge.f32.partialorder %v406_v41, 0.0 }
 0x1d0   :  { %v408_v51 = vld [vmem:[%s6417_s0 + $0xc80] sm:$0xff]  ;;  %2961 = vst [vmem:[%s6418_s1 + $0xc48] sm:$0xff] %v2449_v46  ;;  %v2450_v52 = vmul.f32 1.4142135, %v1938_v48  ;;  %v1939_v53 = vsel %vm915_vm11, %v403_v31, %v1427_v47  ;;  %v1430_v54 = vmul.f32 0.2, %v406_v41 }
 0x1d1   :  { %vm919_vm15 = vcmp.ge.f32.partialorder %v407_v45, 0.0  ;;  %v409_v55 = vld [vmem:[%s6417_s0 + $0xc88] sm:$0xff]  ;;  %v2451_v56 = vmul.f32 1.4142135, %v1939_v53  ;;  %v1940_v57 = vsel %vm916_vm12, %v404_v36, %v1428_v49  ;;  %v1941_v58 = vsel %vm917_vm13, %v405_v37, %v1429_v50  ;;  %v410_v60 = vld [vmem:[%s6417_s0 + $0xc90] sm:$0xff]  ;;  %v411_v61 = vld [vmem:[%s6417_s0 + $0xc98] sm:$0xff] }
 0x1d2   :  { %v1431_v59 = vmul.f32 0.2, %v407_v45  ;;  %2962 = vst [vmem:[%s6418_s1 + $0xc50] sm:$0xff] %v2450_v52  ;;  %v2452_v62 = vmul.f32 1.4142135, %v1940_v57  ;;  %v1942_v0 = vsel %vm918_vm14, %v406_v41, %v1430_v54  ;;  %vm920_vm0 = vcmp.ge.f32.partialorder %v408_v51, 0.0 }
 0x1d3   :  { %v2453_v63 = vmul.f32 1.4142135, %v1941_v58  ;;  %v412_v1 = vld [vmem:[%s6417_s0 + $0xca0] sm:$0xff]  ;;  %2963 = vst [vmem:[%s6418_s1 + $0xc58] sm:$0xff] %v2451_v56  ;;  %v2454_v2 = vmul.f32 1.4142135, %v1942_v0 }
 0x1d4   :  { %v1943_v3 = vsel %vm919_vm15, %v407_v45, %v1431_v59  ;;  %v1432_v4 = vmul.f32 0.2, %v408_v51  ;;  %vm921_vm1 = vcmp.ge.f32.partialorder %v409_v55, 0.0  ;;  %v413_v5 = vld [vmem:[%s6417_s0 + $0xca8] sm:$0xff]  ;;  %2964 = vst [vmem:[%s6418_s1 + $0xc60] sm:$0xff] %v2452_v62  ;;  %vm922_vm2 = vcmp.ge.f32.partialorder %v410_v60, 0.0 }
 0x1d5   :  { %2965 = vst [vmem:[%s6418_s1 + $0xc68] sm:$0xff] %v2453_v63  ;;  %v2455_v6 = vmul.f32 1.4142135, %v1943_v3  ;;  %v1433_v7 = vmul.f32 0.2, %v409_v55  ;;  %vm923_vm3 = vcmp.ge.f32.partialorder %v411_v61, 0.0 }
 0x1d6   :  { %2966 = vst [vmem:[%s6418_s1 + $0xc70] sm:$0xff] %v2454_v2  ;;  %v1944_v8 = vsel %vm920_vm0, %v408_v51, %v1432_v4  ;;  %v1434_v9 = vmul.f32 0.2, %v410_v60  ;;  %v1435_v10 = vmul.f32 0.2, %v411_v61  ;;  %vm924_vm4 = vcmp.ge.f32.partialorder %v412_v1, 0.0 }
 0x1d7   :  { %v414_v11 = vld [vmem:[%s6417_s0 + $0xcb0] sm:$0xff]  ;;  %2967 = vst [vmem:[%s6418_s1 + $0xc78] sm:$0xff] %v2455_v6  ;;  %v2456_v12 = vmul.f32 1.4142135, %v1944_v8  ;;  %v1945_v13 = vsel %vm921_vm1, %v409_v55, %v1433_v7  ;;  %v1436_v14 = vmul.f32 0.2, %v412_v1 }
 0x1d8   :  { %vm925_vm5 = vcmp.ge.f32.partialorder %v413_v5, 0.0  ;;  %v415_v15 = vld [vmem:[%s6417_s0 + $0xcb8] sm:$0xff]  ;;  %v2457_v16 = vmul.f32 1.4142135, %v1945_v13  ;;  %v1946_v17 = vsel %vm922_vm2, %v410_v60, %v1434_v9  ;;  %v1947_v18 = vsel %vm923_vm3, %v411_v61, %v1435_v10  ;;  %v416_v20 = vld [vmem:[%s6417_s0 + $0xcc0] sm:$0xff]  ;;  %v417_v21 = vld [vmem:[%s6417_s0 + $0xcc8] sm:$0xff] }
 0x1d9   :  { %v1437_v19 = vmul.f32 0.2, %v413_v5  ;;  %2968 = vst [vmem:[%s6418_s1 + $0xc80] sm:$0xff] %v2456_v12  ;;  %v2458_v22 = vmul.f32 1.4142135, %v1946_v17  ;;  %v1948_v24 = vsel %vm924_vm4, %v412_v1, %v1436_v14  ;;  %vm926_vm6 = vcmp.ge.f32.partialorder %v414_v11, 0.0 }
 0x1da   :  { %v2459_v23 = vmul.f32 1.4142135, %v1947_v18  ;;  %v418_v25 = vld [vmem:[%s6417_s0 + $0xcd0] sm:$0xff]  ;;  %2969 = vst [vmem:[%s6418_s1 + $0xc88] sm:$0xff] %v2457_v16  ;;  %v2460_v26 = vmul.f32 1.4142135, %v1948_v24 }
 0x1db   :  { %v1949_v27 = vsel %vm925_vm5, %v413_v5, %v1437_v19  ;;  %v1438_v28 = vmul.f32 0.2, %v414_v11  ;;  %vm927_vm7 = vcmp.ge.f32.partialorder %v415_v15, 0.0  ;;  %v419_v29 = vld [vmem:[%s6417_s0 + $0xcd8] sm:$0xff]  ;;  %2970 = vst [vmem:[%s6418_s1 + $0xc90] sm:$0xff] %v2458_v22  ;;  %vm928_vm8 = vcmp.ge.f32.partialorder %v416_v20, 0.0 }
 0x1dc   :  { %2971 = vst [vmem:[%s6418_s1 + $0xc98] sm:$0xff] %v2459_v23  ;;  %v2461_v30 = vmul.f32 1.4142135, %v1949_v27  ;;  %v1439_v31 = vmul.f32 0.2, %v415_v15  ;;  %vm929_vm9 = vcmp.ge.f32.partialorder %v417_v21, 0.0 }
 0x1dd   :  { %2972 = vst [vmem:[%s6418_s1 + $0xca0] sm:$0xff] %v2460_v26  ;;  %v1950_v32 = vsel %vm926_vm6, %v414_v11, %v1438_v28  ;;  %v1440_v33 = vmul.f32 0.2, %v416_v20  ;;  %v1441_v34 = vmul.f32 0.2, %v417_v21  ;;  %vm930_vm10 = vcmp.ge.f32.partialorder %v418_v25, 0.0 }
 0x1de   :  { %v420_v35 = vld [vmem:[%s6417_s0 + $0xce0] sm:$0xff]  ;;  %2973 = vst [vmem:[%s6418_s1 + $0xca8] sm:$0xff] %v2461_v30  ;;  %v2462_v36 = vmul.f32 1.4142135, %v1950_v32  ;;  %v1951_v37 = vsel %vm927_vm7, %v415_v15, %v1439_v31  ;;  %v1442_v38 = vmul.f32 0.2, %v418_v25 }
 0x1df   :  { %vm931_vm11 = vcmp.ge.f32.partialorder %v419_v29, 0.0  ;;  %v421_v39 = vld [vmem:[%s6417_s0 + $0xce8] sm:$0xff]  ;;  %v2463_v40 = vmul.f32 1.4142135, %v1951_v37  ;;  %v1952_v41 = vsel %vm928_vm8, %v416_v20, %v1440_v33  ;;  %v1953_v42 = vsel %vm929_vm9, %v417_v21, %v1441_v34  ;;  %v422_v44 = vld [vmem:[%s6417_s0 + $0xcf0] sm:$0xff]  ;;  %v423_v45 = vld [vmem:[%s6417_s0 + $0xcf8] sm:$0xff] }
 0x1e0   :  { %v1443_v43 = vmul.f32 0.2, %v419_v29  ;;  %2974 = vst [vmem:[%s6418_s1 + $0xcb0] sm:$0xff] %v2462_v36  ;;  %v2464_v46 = vmul.f32 1.4142135, %v1952_v41  ;;  %v1954_v48 = vsel %vm930_vm10, %v418_v25, %v1442_v38  ;;  %vm932_vm12 = vcmp.ge.f32.partialorder %v420_v35, 0.0 }
 0x1e1   :  { %v2465_v47 = vmul.f32 1.4142135, %v1953_v42  ;;  %v424_v49 = vld [vmem:[%s6417_s0 + $0xd00] sm:$0xff]  ;;  %2975 = vst [vmem:[%s6418_s1 + $0xcb8] sm:$0xff] %v2463_v40  ;;  %v2466_v50 = vmul.f32 1.4142135, %v1954_v48 }
 0x1e2   :  { %v1955_v51 = vsel %vm931_vm11, %v419_v29, %v1443_v43  ;;  %v1444_v52 = vmul.f32 0.2, %v420_v35  ;;  %vm933_vm13 = vcmp.ge.f32.partialorder %v421_v39, 0.0  ;;  %v425_v53 = vld [vmem:[%s6417_s0 + $0xd08] sm:$0xff]  ;;  %2976 = vst [vmem:[%s6418_s1 + $0xcc0] sm:$0xff] %v2464_v46  ;;  %vm934_vm14 = vcmp.ge.f32.partialorder %v422_v44, 0.0 }
 0x1e3   :  { %2977 = vst [vmem:[%s6418_s1 + $0xcc8] sm:$0xff] %v2465_v47  ;;  %v2467_v54 = vmul.f32 1.4142135, %v1955_v51  ;;  %v1445_v55 = vmul.f32 0.2, %v421_v39  ;;  %vm935_vm15 = vcmp.ge.f32.partialorder %v423_v45, 0.0 }
 0x1e4   :  { %2978 = vst [vmem:[%s6418_s1 + $0xcd0] sm:$0xff] %v2466_v50  ;;  %v1956_v56 = vsel %vm932_vm12, %v420_v35, %v1444_v52  ;;  %v1446_v57 = vmul.f32 0.2, %v422_v44  ;;  %v1447_v58 = vmul.f32 0.2, %v423_v45  ;;  %vm936_vm0 = vcmp.ge.f32.partialorder %v424_v49, 0.0 }
 0x1e5   :  { %v426_v59 = vld [vmem:[%s6417_s0 + $0xd10] sm:$0xff]  ;;  %2979 = vst [vmem:[%s6418_s1 + $0xcd8] sm:$0xff] %v2467_v54  ;;  %v2468_v60 = vmul.f32 1.4142135, %v1956_v56  ;;  %v1957_v61 = vsel %vm933_vm13, %v421_v39, %v1445_v55  ;;  %v1448_v62 = vmul.f32 0.2, %v424_v49 }
 0x1e6   :  { %vm937_vm1 = vcmp.ge.f32.partialorder %v425_v53, 0.0  ;;  %v427_v63 = vld [vmem:[%s6417_s0 + $0xd18] sm:$0xff]  ;;  %v2469_v0 = vmul.f32 1.4142135, %v1957_v61  ;;  %v1958_v1 = vsel %vm934_vm14, %v422_v44, %v1446_v57  ;;  %v1959_v2 = vsel %vm935_vm15, %v423_v45, %v1447_v58  ;;  %v428_v4 = vld [vmem:[%s6417_s0 + $0xd20] sm:$0xff]  ;;  %v429_v5 = vld [vmem:[%s6417_s0 + $0xd28] sm:$0xff] }
 0x1e7   :  { %v1449_v3 = vmul.f32 0.2, %v425_v53  ;;  %2980 = vst [vmem:[%s6418_s1 + $0xce0] sm:$0xff] %v2468_v60  ;;  %v2470_v6 = vmul.f32 1.4142135, %v1958_v1  ;;  %v1960_v8 = vsel %vm936_vm0, %v424_v49, %v1448_v62  ;;  %vm938_vm2 = vcmp.ge.f32.partialorder %v426_v59, 0.0 }
 0x1e8   :  { %v2471_v7 = vmul.f32 1.4142135, %v1959_v2  ;;  %v430_v9 = vld [vmem:[%s6417_s0 + $0xd30] sm:$0xff]  ;;  %2981 = vst [vmem:[%s6418_s1 + $0xce8] sm:$0xff] %v2469_v0  ;;  %v2472_v10 = vmul.f32 1.4142135, %v1960_v8 }
 0x1e9   :  { %v1961_v11 = vsel %vm937_vm1, %v425_v53, %v1449_v3  ;;  %v1450_v12 = vmul.f32 0.2, %v426_v59  ;;  %vm939_vm3 = vcmp.ge.f32.partialorder %v427_v63, 0.0  ;;  %v431_v13 = vld [vmem:[%s6417_s0 + $0xd38] sm:$0xff]  ;;  %2982 = vst [vmem:[%s6418_s1 + $0xcf0] sm:$0xff] %v2470_v6  ;;  %vm940_vm4 = vcmp.ge.f32.partialorder %v428_v4, 0.0 }
 0x1ea   :  { %2983 = vst [vmem:[%s6418_s1 + $0xcf8] sm:$0xff] %v2471_v7  ;;  %v2473_v14 = vmul.f32 1.4142135, %v1961_v11  ;;  %v1451_v15 = vmul.f32 0.2, %v427_v63  ;;  %vm941_vm5 = vcmp.ge.f32.partialorder %v429_v5, 0.0 }
 0x1eb   :  { %2984 = vst [vmem:[%s6418_s1 + $0xd00] sm:$0xff] %v2472_v10  ;;  %v1962_v16 = vsel %vm938_vm2, %v426_v59, %v1450_v12  ;;  %v1452_v17 = vmul.f32 0.2, %v428_v4  ;;  %v1453_v18 = vmul.f32 0.2, %v429_v5  ;;  %vm942_vm6 = vcmp.ge.f32.partialorder %v430_v9, 0.0 }
 0x1ec   :  { %v432_v19 = vld [vmem:[%s6417_s0 + $0xd40] sm:$0xff]  ;;  %2985 = vst [vmem:[%s6418_s1 + $0xd08] sm:$0xff] %v2473_v14  ;;  %v2474_v20 = vmul.f32 1.4142135, %v1962_v16  ;;  %v1963_v21 = vsel %vm939_vm3, %v427_v63, %v1451_v15  ;;  %v1454_v22 = vmul.f32 0.2, %v430_v9 }
 0x1ed   :  { %vm943_vm7 = vcmp.ge.f32.partialorder %v431_v13, 0.0  ;;  %v433_v23 = vld [vmem:[%s6417_s0 + $0xd48] sm:$0xff]  ;;  %v2475_v24 = vmul.f32 1.4142135, %v1963_v21  ;;  %v1964_v25 = vsel %vm940_vm4, %v428_v4, %v1452_v17  ;;  %v1965_v26 = vsel %vm941_vm5, %v429_v5, %v1453_v18  ;;  %v434_v28 = vld [vmem:[%s6417_s0 + $0xd50] sm:$0xff]  ;;  %v435_v29 = vld [vmem:[%s6417_s0 + $0xd58] sm:$0xff] }
 0x1ee   :  { %v1455_v27 = vmul.f32 0.2, %v431_v13  ;;  %2986 = vst [vmem:[%s6418_s1 + $0xd10] sm:$0xff] %v2474_v20  ;;  %v2476_v30 = vmul.f32 1.4142135, %v1964_v25  ;;  %v1966_v32 = vsel %vm942_vm6, %v430_v9, %v1454_v22  ;;  %vm944_vm8 = vcmp.ge.f32.partialorder %v432_v19, 0.0 }
 0x1ef   :  { %v2477_v31 = vmul.f32 1.4142135, %v1965_v26  ;;  %v436_v33 = vld [vmem:[%s6417_s0 + $0xd60] sm:$0xff]  ;;  %2987 = vst [vmem:[%s6418_s1 + $0xd18] sm:$0xff] %v2475_v24  ;;  %v2478_v34 = vmul.f32 1.4142135, %v1966_v32 }
 0x1f0   :  { %v1967_v35 = vsel %vm943_vm7, %v431_v13, %v1455_v27  ;;  %v1456_v36 = vmul.f32 0.2, %v432_v19  ;;  %vm945_vm9 = vcmp.ge.f32.partialorder %v433_v23, 0.0  ;;  %v437_v37 = vld [vmem:[%s6417_s0 + $0xd68] sm:$0xff]  ;;  %2988 = vst [vmem:[%s6418_s1 + $0xd20] sm:$0xff] %v2476_v30  ;;  %vm946_vm10 = vcmp.ge.f32.partialorder %v434_v28, 0.0 }
 0x1f1   :  { %2989 = vst [vmem:[%s6418_s1 + $0xd28] sm:$0xff] %v2477_v31  ;;  %v2479_v38 = vmul.f32 1.4142135, %v1967_v35  ;;  %v1457_v39 = vmul.f32 0.2, %v433_v23  ;;  %vm947_vm11 = vcmp.ge.f32.partialorder %v435_v29, 0.0 }
 0x1f2   :  { %2990 = vst [vmem:[%s6418_s1 + $0xd30] sm:$0xff] %v2478_v34  ;;  %v1968_v40 = vsel %vm944_vm8, %v432_v19, %v1456_v36  ;;  %v1458_v41 = vmul.f32 0.2, %v434_v28  ;;  %v1459_v42 = vmul.f32 0.2, %v435_v29  ;;  %vm948_vm12 = vcmp.ge.f32.partialorder %v436_v33, 0.0 }
 0x1f3   :  { %v438_v43 = vld [vmem:[%s6417_s0 + $0xd70] sm:$0xff]  ;;  %2991 = vst [vmem:[%s6418_s1 + $0xd38] sm:$0xff] %v2479_v38  ;;  %v2480_v44 = vmul.f32 1.4142135, %v1968_v40  ;;  %v1969_v45 = vsel %vm945_vm9, %v433_v23, %v1457_v39  ;;  %v1460_v46 = vmul.f32 0.2, %v436_v33 }
 0x1f4   :  { %vm949_vm13 = vcmp.ge.f32.partialorder %v437_v37, 0.0  ;;  %v439_v47 = vld [vmem:[%s6417_s0 + $0xd78] sm:$0xff]  ;;  %v2481_v48 = vmul.f32 1.4142135, %v1969_v45  ;;  %v1970_v49 = vsel %vm946_vm10, %v434_v28, %v1458_v41  ;;  %v1971_v50 = vsel %vm947_vm11, %v435_v29, %v1459_v42  ;;  %v440_v52 = vld [vmem:[%s6417_s0 + $0xd80] sm:$0xff]  ;;  %v441_v53 = vld [vmem:[%s6417_s0 + $0xd88] sm:$0xff] }
 0x1f5   :  { %v1461_v51 = vmul.f32 0.2, %v437_v37  ;;  %2992 = vst [vmem:[%s6418_s1 + $0xd40] sm:$0xff] %v2480_v44  ;;  %v2482_v54 = vmul.f32 1.4142135, %v1970_v49  ;;  %v1972_v56 = vsel %vm948_vm12, %v436_v33, %v1460_v46  ;;  %vm950_vm14 = vcmp.ge.f32.partialorder %v438_v43, 0.0 }
 0x1f6   :  { %v2483_v55 = vmul.f32 1.4142135, %v1971_v50  ;;  %v442_v57 = vld [vmem:[%s6417_s0 + $0xd90] sm:$0xff]  ;;  %2993 = vst [vmem:[%s6418_s1 + $0xd48] sm:$0xff] %v2481_v48  ;;  %v2484_v58 = vmul.f32 1.4142135, %v1972_v56 }
 0x1f7   :  { %v1973_v59 = vsel %vm949_vm13, %v437_v37, %v1461_v51  ;;  %v1462_v60 = vmul.f32 0.2, %v438_v43  ;;  %vm951_vm15 = vcmp.ge.f32.partialorder %v439_v47, 0.0  ;;  %v443_v61 = vld [vmem:[%s6417_s0 + $0xd98] sm:$0xff]  ;;  %2994 = vst [vmem:[%s6418_s1 + $0xd50] sm:$0xff] %v2482_v54  ;;  %vm952_vm0 = vcmp.ge.f32.partialorder %v440_v52, 0.0 }
 0x1f8   :  { %2995 = vst [vmem:[%s6418_s1 + $0xd58] sm:$0xff] %v2483_v55  ;;  %v2485_v62 = vmul.f32 1.4142135, %v1973_v59  ;;  %v1463_v63 = vmul.f32 0.2, %v439_v47  ;;  %vm953_vm1 = vcmp.ge.f32.partialorder %v441_v53, 0.0 }
 0x1f9   :  { %2996 = vst [vmem:[%s6418_s1 + $0xd60] sm:$0xff] %v2484_v58  ;;  %v1974_v0 = vsel %vm950_vm14, %v438_v43, %v1462_v60  ;;  %v1464_v1 = vmul.f32 0.2, %v440_v52  ;;  %v1465_v2 = vmul.f32 0.2, %v441_v53  ;;  %vm954_vm2 = vcmp.ge.f32.partialorder %v442_v57, 0.0 }
 0x1fa   :  { %v444_v3 = vld [vmem:[%s6417_s0 + $0xda0] sm:$0xff]  ;;  %2997 = vst [vmem:[%s6418_s1 + $0xd68] sm:$0xff] %v2485_v62  ;;  %v2486_v4 = vmul.f32 1.4142135, %v1974_v0  ;;  %v1975_v5 = vsel %vm951_vm15, %v439_v47, %v1463_v63  ;;  %v1466_v6 = vmul.f32 0.2, %v442_v57 }
 0x1fb   :  { %vm955_vm3 = vcmp.ge.f32.partialorder %v443_v61, 0.0  ;;  %v445_v7 = vld [vmem:[%s6417_s0 + $0xda8] sm:$0xff]  ;;  %v2487_v8 = vmul.f32 1.4142135, %v1975_v5  ;;  %v1976_v9 = vsel %vm952_vm0, %v440_v52, %v1464_v1  ;;  %v1977_v10 = vsel %vm953_vm1, %v441_v53, %v1465_v2  ;;  %v446_v12 = vld [vmem:[%s6417_s0 + $0xdb0] sm:$0xff]  ;;  %v447_v13 = vld [vmem:[%s6417_s0 + $0xdb8] sm:$0xff] }
 0x1fc   :  { %v1467_v11 = vmul.f32 0.2, %v443_v61  ;;  %2998 = vst [vmem:[%s6418_s1 + $0xd70] sm:$0xff] %v2486_v4  ;;  %v2488_v14 = vmul.f32 1.4142135, %v1976_v9  ;;  %v1978_v16 = vsel %vm954_vm2, %v442_v57, %v1466_v6  ;;  %vm956_vm4 = vcmp.ge.f32.partialorder %v444_v3, 0.0 }
 0x1fd   :  { %v2489_v15 = vmul.f32 1.4142135, %v1977_v10  ;;  %v448_v17 = vld [vmem:[%s6417_s0 + $0xdc0] sm:$0xff]  ;;  %2999 = vst [vmem:[%s6418_s1 + $0xd78] sm:$0xff] %v2487_v8  ;;  %v2490_v18 = vmul.f32 1.4142135, %v1978_v16 }
 0x1fe   :  { %v1979_v19 = vsel %vm955_vm3, %v443_v61, %v1467_v11  ;;  %v1468_v20 = vmul.f32 0.2, %v444_v3  ;;  %vm957_vm5 = vcmp.ge.f32.partialorder %v445_v7, 0.0  ;;  %v449_v21 = vld [vmem:[%s6417_s0 + $0xdc8] sm:$0xff]  ;;  %3000 = vst [vmem:[%s6418_s1 + $0xd80] sm:$0xff] %v2488_v14  ;;  %vm958_vm6 = vcmp.ge.f32.partialorder %v446_v12, 0.0 }
 0x1ff   :  { %3001 = vst [vmem:[%s6418_s1 + $0xd88] sm:$0xff] %v2489_v15  ;;  %v2491_v22 = vmul.f32 1.4142135, %v1979_v19  ;;  %v1469_v23 = vmul.f32 0.2, %v445_v7  ;;  %vm959_vm7 = vcmp.ge.f32.partialorder %v447_v13, 0.0 }
 0x200   :  { %3002 = vst [vmem:[%s6418_s1 + $0xd90] sm:$0xff] %v2490_v18  ;;  %v1980_v24 = vsel %vm956_vm4, %v444_v3, %v1468_v20  ;;  %v1470_v25 = vmul.f32 0.2, %v446_v12  ;;  %v1471_v26 = vmul.f32 0.2, %v447_v13  ;;  %vm960_vm8 = vcmp.ge.f32.partialorder %v448_v17, 0.0 }
 0x201   :  { %v450_v27 = vld [vmem:[%s6417_s0 + $0xdd0] sm:$0xff]  ;;  %3003 = vst [vmem:[%s6418_s1 + $0xd98] sm:$0xff] %v2491_v22  ;;  %v2492_v28 = vmul.f32 1.4142135, %v1980_v24  ;;  %v1981_v29 = vsel %vm957_vm5, %v445_v7, %v1469_v23  ;;  %v1472_v30 = vmul.f32 0.2, %v448_v17 }
 0x202   :  { %vm961_vm9 = vcmp.ge.f32.partialorder %v449_v21, 0.0  ;;  %v451_v31 = vld [vmem:[%s6417_s0 + $0xdd8] sm:$0xff]  ;;  %v2493_v32 = vmul.f32 1.4142135, %v1981_v29  ;;  %v1982_v33 = vsel %vm958_vm6, %v446_v12, %v1470_v25  ;;  %v1983_v34 = vsel %vm959_vm7, %v447_v13, %v1471_v26  ;;  %v452_v36 = vld [vmem:[%s6417_s0 + $0xde0] sm:$0xff]  ;;  %v453_v37 = vld [vmem:[%s6417_s0 + $0xde8] sm:$0xff] }
 0x203   :  { %v1473_v35 = vmul.f32 0.2, %v449_v21  ;;  %3004 = vst [vmem:[%s6418_s1 + $0xda0] sm:$0xff] %v2492_v28  ;;  %v2494_v38 = vmul.f32 1.4142135, %v1982_v33  ;;  %v1984_v40 = vsel %vm960_vm8, %v448_v17, %v1472_v30  ;;  %vm962_vm10 = vcmp.ge.f32.partialorder %v450_v27, 0.0 }
 0x204   :  { %v2495_v39 = vmul.f32 1.4142135, %v1983_v34  ;;  %v454_v41 = vld [vmem:[%s6417_s0 + $0xdf0] sm:$0xff]  ;;  %3005 = vst [vmem:[%s6418_s1 + $0xda8] sm:$0xff] %v2493_v32  ;;  %v2496_v42 = vmul.f32 1.4142135, %v1984_v40 }
 0x205   :  { %v1985_v43 = vsel %vm961_vm9, %v449_v21, %v1473_v35  ;;  %v1474_v44 = vmul.f32 0.2, %v450_v27  ;;  %vm963_vm11 = vcmp.ge.f32.partialorder %v451_v31, 0.0  ;;  %v455_v45 = vld [vmem:[%s6417_s0 + $0xdf8] sm:$0xff]  ;;  %3006 = vst [vmem:[%s6418_s1 + $0xdb0] sm:$0xff] %v2494_v38  ;;  %vm964_vm12 = vcmp.ge.f32.partialorder %v452_v36, 0.0 }
 0x206   :  { %3007 = vst [vmem:[%s6418_s1 + $0xdb8] sm:$0xff] %v2495_v39  ;;  %v2497_v46 = vmul.f32 1.4142135, %v1985_v43  ;;  %v1475_v47 = vmul.f32 0.2, %v451_v31  ;;  %vm965_vm13 = vcmp.ge.f32.partialorder %v453_v37, 0.0 }
 0x207   :  { %3008 = vst [vmem:[%s6418_s1 + $0xdc0] sm:$0xff] %v2496_v42  ;;  %v1986_v48 = vsel %vm962_vm10, %v450_v27, %v1474_v44  ;;  %v1476_v49 = vmul.f32 0.2, %v452_v36  ;;  %v1477_v50 = vmul.f32 0.2, %v453_v37  ;;  %vm966_vm14 = vcmp.ge.f32.partialorder %v454_v41, 0.0 }
 0x208   :  { %v456_v51 = vld [vmem:[%s6417_s0 + $0xe00] sm:$0xff]  ;;  %3009 = vst [vmem:[%s6418_s1 + $0xdc8] sm:$0xff] %v2497_v46  ;;  %v2498_v52 = vmul.f32 1.4142135, %v1986_v48  ;;  %v1987_v53 = vsel %vm963_vm11, %v451_v31, %v1475_v47  ;;  %v1478_v54 = vmul.f32 0.2, %v454_v41 }
 0x209   :  { %vm967_vm15 = vcmp.ge.f32.partialorder %v455_v45, 0.0  ;;  %v457_v55 = vld [vmem:[%s6417_s0 + $0xe08] sm:$0xff]  ;;  %v2499_v56 = vmul.f32 1.4142135, %v1987_v53  ;;  %v1988_v57 = vsel %vm964_vm12, %v452_v36, %v1476_v49  ;;  %v1989_v58 = vsel %vm965_vm13, %v453_v37, %v1477_v50  ;;  %v458_v60 = vld [vmem:[%s6417_s0 + $0xe10] sm:$0xff]  ;;  %v459_v61 = vld [vmem:[%s6417_s0 + $0xe18] sm:$0xff] }
 0x20a   :  { %v1479_v59 = vmul.f32 0.2, %v455_v45  ;;  %3010 = vst [vmem:[%s6418_s1 + $0xdd0] sm:$0xff] %v2498_v52  ;;  %v2500_v62 = vmul.f32 1.4142135, %v1988_v57  ;;  %v1990_v0 = vsel %vm966_vm14, %v454_v41, %v1478_v54  ;;  %vm968_vm0 = vcmp.ge.f32.partialorder %v456_v51, 0.0 }
 0x20b   :  { %v2501_v63 = vmul.f32 1.4142135, %v1989_v58  ;;  %v460_v1 = vld [vmem:[%s6417_s0 + $0xe20] sm:$0xff]  ;;  %3011 = vst [vmem:[%s6418_s1 + $0xdd8] sm:$0xff] %v2499_v56  ;;  %v2502_v2 = vmul.f32 1.4142135, %v1990_v0 }
 0x20c   :  { %v1991_v3 = vsel %vm967_vm15, %v455_v45, %v1479_v59  ;;  %v1480_v4 = vmul.f32 0.2, %v456_v51  ;;  %vm969_vm1 = vcmp.ge.f32.partialorder %v457_v55, 0.0  ;;  %v461_v5 = vld [vmem:[%s6417_s0 + $0xe28] sm:$0xff]  ;;  %3012 = vst [vmem:[%s6418_s1 + $0xde0] sm:$0xff] %v2500_v62  ;;  %vm970_vm2 = vcmp.ge.f32.partialorder %v458_v60, 0.0 }
 0x20d   :  { %3013 = vst [vmem:[%s6418_s1 + $0xde8] sm:$0xff] %v2501_v63  ;;  %v2503_v6 = vmul.f32 1.4142135, %v1991_v3  ;;  %v1481_v7 = vmul.f32 0.2, %v457_v55  ;;  %vm971_vm3 = vcmp.ge.f32.partialorder %v459_v61, 0.0 }
 0x20e   :  { %3014 = vst [vmem:[%s6418_s1 + $0xdf0] sm:$0xff] %v2502_v2  ;;  %v1992_v8 = vsel %vm968_vm0, %v456_v51, %v1480_v4  ;;  %v1482_v9 = vmul.f32 0.2, %v458_v60  ;;  %v1483_v10 = vmul.f32 0.2, %v459_v61  ;;  %vm972_vm4 = vcmp.ge.f32.partialorder %v460_v1, 0.0 }
 0x20f   :  { %v462_v11 = vld [vmem:[%s6417_s0 + $0xe30] sm:$0xff]  ;;  %3015 = vst [vmem:[%s6418_s1 + $0xdf8] sm:$0xff] %v2503_v6  ;;  %v2504_v12 = vmul.f32 1.4142135, %v1992_v8  ;;  %v1993_v13 = vsel %vm969_vm1, %v457_v55, %v1481_v7  ;;  %v1484_v14 = vmul.f32 0.2, %v460_v1 }
 0x210   :  { %vm973_vm5 = vcmp.ge.f32.partialorder %v461_v5, 0.0  ;;  %v463_v15 = vld [vmem:[%s6417_s0 + $0xe38] sm:$0xff]  ;;  %v2505_v16 = vmul.f32 1.4142135, %v1993_v13  ;;  %v1994_v17 = vsel %vm970_vm2, %v458_v60, %v1482_v9  ;;  %v1995_v18 = vsel %vm971_vm3, %v459_v61, %v1483_v10  ;;  %v464_v20 = vld [vmem:[%s6417_s0 + $0xe40] sm:$0xff]  ;;  %v465_v21 = vld [vmem:[%s6417_s0 + $0xe48] sm:$0xff] }
 0x211   :  { %v1485_v19 = vmul.f32 0.2, %v461_v5  ;;  %3016 = vst [vmem:[%s6418_s1 + $0xe00] sm:$0xff] %v2504_v12  ;;  %v2506_v22 = vmul.f32 1.4142135, %v1994_v17  ;;  %v1996_v24 = vsel %vm972_vm4, %v460_v1, %v1484_v14  ;;  %vm974_vm6 = vcmp.ge.f32.partialorder %v462_v11, 0.0 }
 0x212   :  { %v2507_v23 = vmul.f32 1.4142135, %v1995_v18  ;;  %v466_v25 = vld [vmem:[%s6417_s0 + $0xe50] sm:$0xff]  ;;  %3017 = vst [vmem:[%s6418_s1 + $0xe08] sm:$0xff] %v2505_v16  ;;  %v2508_v26 = vmul.f32 1.4142135, %v1996_v24 }
 0x213   :  { %v1997_v27 = vsel %vm973_vm5, %v461_v5, %v1485_v19  ;;  %v1486_v28 = vmul.f32 0.2, %v462_v11  ;;  %vm975_vm7 = vcmp.ge.f32.partialorder %v463_v15, 0.0  ;;  %v467_v29 = vld [vmem:[%s6417_s0 + $0xe58] sm:$0xff]  ;;  %3018 = vst [vmem:[%s6418_s1 + $0xe10] sm:$0xff] %v2506_v22  ;;  %vm976_vm8 = vcmp.ge.f32.partialorder %v464_v20, 0.0 }
 0x214   :  { %3019 = vst [vmem:[%s6418_s1 + $0xe18] sm:$0xff] %v2507_v23  ;;  %v2509_v30 = vmul.f32 1.4142135, %v1997_v27  ;;  %v1487_v31 = vmul.f32 0.2, %v463_v15  ;;  %vm977_vm9 = vcmp.ge.f32.partialorder %v465_v21, 0.0 }
 0x215   :  { %3020 = vst [vmem:[%s6418_s1 + $0xe20] sm:$0xff] %v2508_v26  ;;  %v1998_v32 = vsel %vm974_vm6, %v462_v11, %v1486_v28  ;;  %v1488_v33 = vmul.f32 0.2, %v464_v20  ;;  %v1489_v34 = vmul.f32 0.2, %v465_v21  ;;  %vm978_vm10 = vcmp.ge.f32.partialorder %v466_v25, 0.0 }
 0x216   :  { %v468_v35 = vld [vmem:[%s6417_s0 + $0xe60] sm:$0xff]  ;;  %3021 = vst [vmem:[%s6418_s1 + $0xe28] sm:$0xff] %v2509_v30  ;;  %v2510_v36 = vmul.f32 1.4142135, %v1998_v32  ;;  %v1999_v37 = vsel %vm975_vm7, %v463_v15, %v1487_v31  ;;  %v1490_v38 = vmul.f32 0.2, %v466_v25 }
 0x217   :  { %vm979_vm11 = vcmp.ge.f32.partialorder %v467_v29, 0.0  ;;  %v469_v39 = vld [vmem:[%s6417_s0 + $0xe68] sm:$0xff]  ;;  %v2511_v40 = vmul.f32 1.4142135, %v1999_v37  ;;  %v2000_v41 = vsel %vm976_vm8, %v464_v20, %v1488_v33  ;;  %v2001_v42 = vsel %vm977_vm9, %v465_v21, %v1489_v34  ;;  %v470_v44 = vld [vmem:[%s6417_s0 + $0xe70] sm:$0xff]  ;;  %v471_v45 = vld [vmem:[%s6417_s0 + $0xe78] sm:$0xff] }
 0x218   :  { %v1491_v43 = vmul.f32 0.2, %v467_v29  ;;  %3022 = vst [vmem:[%s6418_s1 + $0xe30] sm:$0xff] %v2510_v36  ;;  %v2512_v46 = vmul.f32 1.4142135, %v2000_v41  ;;  %v2002_v48 = vsel %vm978_vm10, %v466_v25, %v1490_v38  ;;  %vm980_vm12 = vcmp.ge.f32.partialorder %v468_v35, 0.0 }
 0x219   :  { %v2513_v47 = vmul.f32 1.4142135, %v2001_v42  ;;  %v472_v49 = vld [vmem:[%s6417_s0 + $0xe80] sm:$0xff]  ;;  %3023 = vst [vmem:[%s6418_s1 + $0xe38] sm:$0xff] %v2511_v40  ;;  %v2514_v50 = vmul.f32 1.4142135, %v2002_v48 }
 0x21a   :  { %v2003_v51 = vsel %vm979_vm11, %v467_v29, %v1491_v43  ;;  %v1492_v52 = vmul.f32 0.2, %v468_v35  ;;  %vm981_vm13 = vcmp.ge.f32.partialorder %v469_v39, 0.0  ;;  %v473_v53 = vld [vmem:[%s6417_s0 + $0xe88] sm:$0xff]  ;;  %3024 = vst [vmem:[%s6418_s1 + $0xe40] sm:$0xff] %v2512_v46  ;;  %vm982_vm14 = vcmp.ge.f32.partialorder %v470_v44, 0.0 }
 0x21b   :  { %3025 = vst [vmem:[%s6418_s1 + $0xe48] sm:$0xff] %v2513_v47  ;;  %v2515_v54 = vmul.f32 1.4142135, %v2003_v51  ;;  %v1493_v55 = vmul.f32 0.2, %v469_v39  ;;  %vm983_vm15 = vcmp.ge.f32.partialorder %v471_v45, 0.0 }
 0x21c   :  { %3026 = vst [vmem:[%s6418_s1 + $0xe50] sm:$0xff] %v2514_v50  ;;  %v2004_v56 = vsel %vm980_vm12, %v468_v35, %v1492_v52  ;;  %v1494_v57 = vmul.f32 0.2, %v470_v44  ;;  %v1495_v58 = vmul.f32 0.2, %v471_v45  ;;  %vm984_vm0 = vcmp.ge.f32.partialorder %v472_v49, 0.0 }
 0x21d   :  { %v474_v59 = vld [vmem:[%s6417_s0 + $0xe90] sm:$0xff]  ;;  %3027 = vst [vmem:[%s6418_s1 + $0xe58] sm:$0xff] %v2515_v54  ;;  %v2516_v60 = vmul.f32 1.4142135, %v2004_v56  ;;  %v2005_v61 = vsel %vm981_vm13, %v469_v39, %v1493_v55  ;;  %v1496_v62 = vmul.f32 0.2, %v472_v49 }
 0x21e   :  { %vm985_vm1 = vcmp.ge.f32.partialorder %v473_v53, 0.0  ;;  %v475_v63 = vld [vmem:[%s6417_s0 + $0xe98] sm:$0xff]  ;;  %v2517_v0 = vmul.f32 1.4142135, %v2005_v61  ;;  %v2006_v1 = vsel %vm982_vm14, %v470_v44, %v1494_v57  ;;  %v2007_v2 = vsel %vm983_vm15, %v471_v45, %v1495_v58  ;;  %v476_v4 = vld [vmem:[%s6417_s0 + $0xea0] sm:$0xff]  ;;  %v477_v5 = vld [vmem:[%s6417_s0 + $0xea8] sm:$0xff] }
 0x21f   :  { %v1497_v3 = vmul.f32 0.2, %v473_v53  ;;  %3028 = vst [vmem:[%s6418_s1 + $0xe60] sm:$0xff] %v2516_v60  ;;  %v2518_v6 = vmul.f32 1.4142135, %v2006_v1  ;;  %v2008_v8 = vsel %vm984_vm0, %v472_v49, %v1496_v62  ;;  %vm986_vm2 = vcmp.ge.f32.partialorder %v474_v59, 0.0 }
 0x220   :  { %v2519_v7 = vmul.f32 1.4142135, %v2007_v2  ;;  %v478_v9 = vld [vmem:[%s6417_s0 + $0xeb0] sm:$0xff]  ;;  %3029 = vst [vmem:[%s6418_s1 + $0xe68] sm:$0xff] %v2517_v0  ;;  %v2520_v10 = vmul.f32 1.4142135, %v2008_v8 }
 0x221   :  { %v2009_v11 = vsel %vm985_vm1, %v473_v53, %v1497_v3  ;;  %v1498_v12 = vmul.f32 0.2, %v474_v59  ;;  %vm987_vm3 = vcmp.ge.f32.partialorder %v475_v63, 0.0  ;;  %v479_v13 = vld [vmem:[%s6417_s0 + $0xeb8] sm:$0xff]  ;;  %3030 = vst [vmem:[%s6418_s1 + $0xe70] sm:$0xff] %v2518_v6  ;;  %vm988_vm4 = vcmp.ge.f32.partialorder %v476_v4, 0.0 }
 0x222   :  { %3031 = vst [vmem:[%s6418_s1 + $0xe78] sm:$0xff] %v2519_v7  ;;  %v2521_v14 = vmul.f32 1.4142135, %v2009_v11  ;;  %v1499_v15 = vmul.f32 0.2, %v475_v63  ;;  %vm989_vm5 = vcmp.ge.f32.partialorder %v477_v5, 0.0 }
 0x223   :  { %3032 = vst [vmem:[%s6418_s1 + $0xe80] sm:$0xff] %v2520_v10  ;;  %v2010_v16 = vsel %vm986_vm2, %v474_v59, %v1498_v12  ;;  %v1500_v17 = vmul.f32 0.2, %v476_v4  ;;  %v1501_v18 = vmul.f32 0.2, %v477_v5  ;;  %vm990_vm6 = vcmp.ge.f32.partialorder %v478_v9, 0.0 }
 0x224   :  { %v480_v19 = vld [vmem:[%s6417_s0 + $0xec0] sm:$0xff]  ;;  %3033 = vst [vmem:[%s6418_s1 + $0xe88] sm:$0xff] %v2521_v14  ;;  %v2522_v20 = vmul.f32 1.4142135, %v2010_v16  ;;  %v2011_v21 = vsel %vm987_vm3, %v475_v63, %v1499_v15  ;;  %v1502_v22 = vmul.f32 0.2, %v478_v9 }
 0x225   :  { %vm991_vm7 = vcmp.ge.f32.partialorder %v479_v13, 0.0  ;;  %v481_v23 = vld [vmem:[%s6417_s0 + $0xec8] sm:$0xff]  ;;  %v2523_v24 = vmul.f32 1.4142135, %v2011_v21  ;;  %v2012_v25 = vsel %vm988_vm4, %v476_v4, %v1500_v17  ;;  %v2013_v26 = vsel %vm989_vm5, %v477_v5, %v1501_v18  ;;  %v482_v28 = vld [vmem:[%s6417_s0 + $0xed0] sm:$0xff]  ;;  %v483_v29 = vld [vmem:[%s6417_s0 + $0xed8] sm:$0xff] }
 0x226   :  { %v1503_v27 = vmul.f32 0.2, %v479_v13  ;;  %3034 = vst [vmem:[%s6418_s1 + $0xe90] sm:$0xff] %v2522_v20  ;;  %v2524_v30 = vmul.f32 1.4142135, %v2012_v25  ;;  %v2014_v32 = vsel %vm990_vm6, %v478_v9, %v1502_v22  ;;  %vm992_vm8 = vcmp.ge.f32.partialorder %v480_v19, 0.0 }
 0x227   :  { %v2525_v31 = vmul.f32 1.4142135, %v2013_v26  ;;  %v484_v33 = vld [vmem:[%s6417_s0 + $0xee0] sm:$0xff]  ;;  %3035 = vst [vmem:[%s6418_s1 + $0xe98] sm:$0xff] %v2523_v24  ;;  %v2526_v34 = vmul.f32 1.4142135, %v2014_v32 }
 0x228   :  { %v2015_v35 = vsel %vm991_vm7, %v479_v13, %v1503_v27  ;;  %v1504_v36 = vmul.f32 0.2, %v480_v19  ;;  %vm993_vm9 = vcmp.ge.f32.partialorder %v481_v23, 0.0  ;;  %v485_v37 = vld [vmem:[%s6417_s0 + $0xee8] sm:$0xff]  ;;  %3036 = vst [vmem:[%s6418_s1 + $0xea0] sm:$0xff] %v2524_v30  ;;  %vm994_vm10 = vcmp.ge.f32.partialorder %v482_v28, 0.0 }
 0x229   :  { %3037 = vst [vmem:[%s6418_s1 + $0xea8] sm:$0xff] %v2525_v31  ;;  %v2527_v38 = vmul.f32 1.4142135, %v2015_v35  ;;  %v1505_v39 = vmul.f32 0.2, %v481_v23  ;;  %vm995_vm11 = vcmp.ge.f32.partialorder %v483_v29, 0.0 }
 0x22a   :  { %3038 = vst [vmem:[%s6418_s1 + $0xeb0] sm:$0xff] %v2526_v34  ;;  %v2016_v40 = vsel %vm992_vm8, %v480_v19, %v1504_v36  ;;  %v1506_v41 = vmul.f32 0.2, %v482_v28  ;;  %v1507_v42 = vmul.f32 0.2, %v483_v29  ;;  %vm996_vm12 = vcmp.ge.f32.partialorder %v484_v33, 0.0 }
 0x22b   :  { %v486_v43 = vld [vmem:[%s6417_s0 + $0xef0] sm:$0xff]  ;;  %3039 = vst [vmem:[%s6418_s1 + $0xeb8] sm:$0xff] %v2527_v38  ;;  %v2528_v44 = vmul.f32 1.4142135, %v2016_v40  ;;  %v2017_v45 = vsel %vm993_vm9, %v481_v23, %v1505_v39  ;;  %v1508_v46 = vmul.f32 0.2, %v484_v33 }
 0x22c   :  { %vm997_vm13 = vcmp.ge.f32.partialorder %v485_v37, 0.0  ;;  %v487_v47 = vld [vmem:[%s6417_s0 + $0xef8] sm:$0xff]  ;;  %v2529_v48 = vmul.f32 1.4142135, %v2017_v45  ;;  %v2018_v49 = vsel %vm994_vm10, %v482_v28, %v1506_v41  ;;  %v2019_v50 = vsel %vm995_vm11, %v483_v29, %v1507_v42  ;;  %v488_v52 = vld [vmem:[%s6417_s0 + $0xf00] sm:$0xff]  ;;  %v489_v53 = vld [vmem:[%s6417_s0 + $0xf08] sm:$0xff] }
 0x22d   :  { %v1509_v51 = vmul.f32 0.2, %v485_v37  ;;  %3040 = vst [vmem:[%s6418_s1 + $0xec0] sm:$0xff] %v2528_v44  ;;  %v2530_v54 = vmul.f32 1.4142135, %v2018_v49  ;;  %v2020_v56 = vsel %vm996_vm12, %v484_v33, %v1508_v46  ;;  %vm998_vm14 = vcmp.ge.f32.partialorder %v486_v43, 0.0 }
 0x22e   :  { %v2531_v55 = vmul.f32 1.4142135, %v2019_v50  ;;  %v490_v57 = vld [vmem:[%s6417_s0 + $0xf10] sm:$0xff]  ;;  %3041 = vst [vmem:[%s6418_s1 + $0xec8] sm:$0xff] %v2529_v48  ;;  %v2532_v58 = vmul.f32 1.4142135, %v2020_v56 }
 0x22f   :  { %v2021_v59 = vsel %vm997_vm13, %v485_v37, %v1509_v51  ;;  %v1510_v60 = vmul.f32 0.2, %v486_v43  ;;  %vm999_vm15 = vcmp.ge.f32.partialorder %v487_v47, 0.0  ;;  %v491_v61 = vld [vmem:[%s6417_s0 + $0xf18] sm:$0xff]  ;;  %3042 = vst [vmem:[%s6418_s1 + $0xed0] sm:$0xff] %v2530_v54  ;;  %vm1000_vm0 = vcmp.ge.f32.partialorder %v488_v52, 0.0 }
 0x230   :  { %3043 = vst [vmem:[%s6418_s1 + $0xed8] sm:$0xff] %v2531_v55  ;;  %v2533_v62 = vmul.f32 1.4142135, %v2021_v59  ;;  %v1511_v63 = vmul.f32 0.2, %v487_v47  ;;  %vm1001_vm1 = vcmp.ge.f32.partialorder %v489_v53, 0.0 }
 0x231   :  { %3044 = vst [vmem:[%s6418_s1 + $0xee0] sm:$0xff] %v2532_v58  ;;  %v2022_v0 = vsel %vm998_vm14, %v486_v43, %v1510_v60  ;;  %v1512_v1 = vmul.f32 0.2, %v488_v52  ;;  %v1513_v2 = vmul.f32 0.2, %v489_v53  ;;  %vm1002_vm2 = vcmp.ge.f32.partialorder %v490_v57, 0.0 }
 0x232   :  { %v492_v3 = vld [vmem:[%s6417_s0 + $0xf20] sm:$0xff]  ;;  %3045 = vst [vmem:[%s6418_s1 + $0xee8] sm:$0xff] %v2533_v62  ;;  %v2534_v4 = vmul.f32 1.4142135, %v2022_v0  ;;  %v2023_v5 = vsel %vm999_vm15, %v487_v47, %v1511_v63  ;;  %v1514_v6 = vmul.f32 0.2, %v490_v57 }
 0x233   :  { %vm1003_vm3 = vcmp.ge.f32.partialorder %v491_v61, 0.0  ;;  %v493_v7 = vld [vmem:[%s6417_s0 + $0xf28] sm:$0xff]  ;;  %v2535_v8 = vmul.f32 1.4142135, %v2023_v5  ;;  %v2024_v9 = vsel %vm1000_vm0, %v488_v52, %v1512_v1  ;;  %v2025_v10 = vsel %vm1001_vm1, %v489_v53, %v1513_v2  ;;  %v494_v12 = vld [vmem:[%s6417_s0 + $0xf30] sm:$0xff]  ;;  %v495_v13 = vld [vmem:[%s6417_s0 + $0xf38] sm:$0xff] }
 0x234   :  { %v1515_v11 = vmul.f32 0.2, %v491_v61  ;;  %3046 = vst [vmem:[%s6418_s1 + $0xef0] sm:$0xff] %v2534_v4  ;;  %v2536_v14 = vmul.f32 1.4142135, %v2024_v9  ;;  %v2026_v16 = vsel %vm1002_vm2, %v490_v57, %v1514_v6  ;;  %vm1004_vm4 = vcmp.ge.f32.partialorder %v492_v3, 0.0 }
 0x235   :  { %v2537_v15 = vmul.f32 1.4142135, %v2025_v10  ;;  %v496_v17 = vld [vmem:[%s6417_s0 + $0xf40] sm:$0xff]  ;;  %3047 = vst [vmem:[%s6418_s1 + $0xef8] sm:$0xff] %v2535_v8  ;;  %v2538_v18 = vmul.f32 1.4142135, %v2026_v16 }
 0x236   :  { %v2027_v19 = vsel %vm1003_vm3, %v491_v61, %v1515_v11  ;;  %v1516_v20 = vmul.f32 0.2, %v492_v3  ;;  %vm1005_vm5 = vcmp.ge.f32.partialorder %v493_v7, 0.0  ;;  %v497_v21 = vld [vmem:[%s6417_s0 + $0xf48] sm:$0xff]  ;;  %3048 = vst [vmem:[%s6418_s1 + $0xf00] sm:$0xff] %v2536_v14  ;;  %vm1006_vm6 = vcmp.ge.f32.partialorder %v494_v12, 0.0 }
 0x237   :  { %3049 = vst [vmem:[%s6418_s1 + $0xf08] sm:$0xff] %v2537_v15  ;;  %v2539_v22 = vmul.f32 1.4142135, %v2027_v19  ;;  %v1517_v23 = vmul.f32 0.2, %v493_v7  ;;  %vm1007_vm7 = vcmp.ge.f32.partialorder %v495_v13, 0.0 }
 0x238   :  { %3050 = vst [vmem:[%s6418_s1 + $0xf10] sm:$0xff] %v2538_v18  ;;  %v2028_v24 = vsel %vm1004_vm4, %v492_v3, %v1516_v20  ;;  %v1518_v25 = vmul.f32 0.2, %v494_v12  ;;  %v1519_v26 = vmul.f32 0.2, %v495_v13  ;;  %vm1008_vm8 = vcmp.ge.f32.partialorder %v496_v17, 0.0 }
 0x239   :  { %v498_v27 = vld [vmem:[%s6417_s0 + $0xf50] sm:$0xff]  ;;  %3051 = vst [vmem:[%s6418_s1 + $0xf18] sm:$0xff] %v2539_v22  ;;  %v2540_v28 = vmul.f32 1.4142135, %v2028_v24  ;;  %v2029_v29 = vsel %vm1005_vm5, %v493_v7, %v1517_v23  ;;  %v1520_v30 = vmul.f32 0.2, %v496_v17 }
 0x23a   :  { %vm1009_vm9 = vcmp.ge.f32.partialorder %v497_v21, 0.0  ;;  %v499_v31 = vld [vmem:[%s6417_s0 + $0xf58] sm:$0xff]  ;;  %v2541_v32 = vmul.f32 1.4142135, %v2029_v29  ;;  %v2030_v33 = vsel %vm1006_vm6, %v494_v12, %v1518_v25  ;;  %v2031_v34 = vsel %vm1007_vm7, %v495_v13, %v1519_v26  ;;  %v500_v36 = vld [vmem:[%s6417_s0 + $0xf60] sm:$0xff]  ;;  %v501_v37 = vld [vmem:[%s6417_s0 + $0xf68] sm:$0xff] }
 0x23b   :  { %v1521_v35 = vmul.f32 0.2, %v497_v21  ;;  %3052 = vst [vmem:[%s6418_s1 + $0xf20] sm:$0xff] %v2540_v28  ;;  %v2542_v38 = vmul.f32 1.4142135, %v2030_v33  ;;  %v2032_v40 = vsel %vm1008_vm8, %v496_v17, %v1520_v30  ;;  %vm1010_vm10 = vcmp.ge.f32.partialorder %v498_v27, 0.0 }
 0x23c   :  { %v2543_v39 = vmul.f32 1.4142135, %v2031_v34  ;;  %v502_v41 = vld [vmem:[%s6417_s0 + $0xf70] sm:$0xff]  ;;  %3053 = vst [vmem:[%s6418_s1 + $0xf28] sm:$0xff] %v2541_v32  ;;  %v2544_v42 = vmul.f32 1.4142135, %v2032_v40 }
 0x23d   :  { %v2033_v43 = vsel %vm1009_vm9, %v497_v21, %v1521_v35  ;;  %v1522_v44 = vmul.f32 0.2, %v498_v27  ;;  %vm1011_vm11 = vcmp.ge.f32.partialorder %v499_v31, 0.0  ;;  %v503_v45 = vld [vmem:[%s6417_s0 + $0xf78] sm:$0xff]  ;;  %3054 = vst [vmem:[%s6418_s1 + $0xf30] sm:$0xff] %v2542_v38  ;;  %vm1012_vm12 = vcmp.ge.f32.partialorder %v500_v36, 0.0 }
 0x23e   :  { %3055 = vst [vmem:[%s6418_s1 + $0xf38] sm:$0xff] %v2543_v39  ;;  %v2545_v46 = vmul.f32 1.4142135, %v2033_v43  ;;  %v1523_v47 = vmul.f32 0.2, %v499_v31  ;;  %vm1013_vm13 = vcmp.ge.f32.partialorder %v501_v37, 0.0 }
 0x23f   :  { %3056 = vst [vmem:[%s6418_s1 + $0xf40] sm:$0xff] %v2544_v42  ;;  %v2034_v48 = vsel %vm1010_vm10, %v498_v27, %v1522_v44  ;;  %v1524_v49 = vmul.f32 0.2, %v500_v36  ;;  %v1525_v50 = vmul.f32 0.2, %v501_v37  ;;  %vm1014_vm14 = vcmp.ge.f32.partialorder %v502_v41, 0.0 }
 0x240   :  { %v504_v51 = vld [vmem:[%s6417_s0 + $0xf80] sm:$0xff]  ;;  %3057 = vst [vmem:[%s6418_s1 + $0xf48] sm:$0xff] %v2545_v46  ;;  %v2546_v52 = vmul.f32 1.4142135, %v2034_v48  ;;  %v2035_v53 = vsel %vm1011_vm11, %v499_v31, %v1523_v47  ;;  %v1526_v54 = vmul.f32 0.2, %v502_v41 }
 0x241   :  { %vm1015_vm15 = vcmp.ge.f32.partialorder %v503_v45, 0.0  ;;  %v505_v55 = vld [vmem:[%s6417_s0 + $0xf88] sm:$0xff]  ;;  %v2547_v56 = vmul.f32 1.4142135, %v2035_v53  ;;  %v2036_v57 = vsel %vm1012_vm12, %v500_v36, %v1524_v49  ;;  %v2037_v58 = vsel %vm1013_vm13, %v501_v37, %v1525_v50  ;;  %v506_v60 = vld [vmem:[%s6417_s0 + $0xf90] sm:$0xff]  ;;  %v507_v61 = vld [vmem:[%s6417_s0 + $0xf98] sm:$0xff] }
 0x242   :  { %v1527_v59 = vmul.f32 0.2, %v503_v45  ;;  %3058 = vst [vmem:[%s6418_s1 + $0xf50] sm:$0xff] %v2546_v52  ;;  %v2548_v62 = vmul.f32 1.4142135, %v2036_v57  ;;  %v2038_v0 = vsel %vm1014_vm14, %v502_v41, %v1526_v54  ;;  %vm1016_vm0 = vcmp.ge.f32.partialorder %v504_v51, 0.0 }
 0x243   :  { %v2549_v63 = vmul.f32 1.4142135, %v2037_v58  ;;  %v508_v1 = vld [vmem:[%s6417_s0 + $0xfa0] sm:$0xff]  ;;  %3059 = vst [vmem:[%s6418_s1 + $0xf58] sm:$0xff] %v2547_v56  ;;  %v2550_v2 = vmul.f32 1.4142135, %v2038_v0 }
 0x244   :  { %v2039_v3 = vsel %vm1015_vm15, %v503_v45, %v1527_v59  ;;  %v1528_v4 = vmul.f32 0.2, %v504_v51  ;;  %vm1017_vm1 = vcmp.ge.f32.partialorder %v505_v55, 0.0  ;;  %v509_v5 = vld [vmem:[%s6417_s0 + $0xfa8] sm:$0xff]  ;;  %3060 = vst [vmem:[%s6418_s1 + $0xf60] sm:$0xff] %v2548_v62  ;;  %vm1018_vm2 = vcmp.ge.f32.partialorder %v506_v60, 0.0 }
 0x245   :  { %3061 = vst [vmem:[%s6418_s1 + $0xf68] sm:$0xff] %v2549_v63  ;;  %v2551_v6 = vmul.f32 1.4142135, %v2039_v3  ;;  %v1529_v7 = vmul.f32 0.2, %v505_v55  ;;  %vm1019_vm3 = vcmp.ge.f32.partialorder %v507_v61, 0.0 }
 0x246   :  { %3062 = vst [vmem:[%s6418_s1 + $0xf70] sm:$0xff] %v2550_v2  ;;  %v2040_v8 = vsel %vm1016_vm0, %v504_v51, %v1528_v4  ;;  %v1530_v9 = vmul.f32 0.2, %v506_v60  ;;  %v1531_v10 = vmul.f32 0.2, %v507_v61  ;;  %vm1020_vm4 = vcmp.ge.f32.partialorder %v508_v1, 0.0 }
 0x247   :  { %v510_v11 = vld [vmem:[%s6417_s0 + $0xfb0] sm:$0xff]  ;;  %3063 = vst [vmem:[%s6418_s1 + $0xf78] sm:$0xff] %v2551_v6  ;;  %v2552_v12 = vmul.f32 1.4142135, %v2040_v8  ;;  %v2041_v13 = vsel %vm1017_vm1, %v505_v55, %v1529_v7  ;;  %v1532_v14 = vmul.f32 0.2, %v508_v1 }
 0x248   :  { %vm1021_vm5 = vcmp.ge.f32.partialorder %v509_v5, 0.0  ;;  %v511_v15 = vld [vmem:[%s6417_s0 + $0xfb8] sm:$0xff]  ;;  %v2553_v16 = vmul.f32 1.4142135, %v2041_v13  ;;  %v2042_v17 = vsel %vm1018_vm2, %v506_v60, %v1530_v9  ;;  %v2043_v18 = vsel %vm1019_vm3, %v507_v61, %v1531_v10  ;;  %v512_v20 = vld [vmem:[%s6417_s0 + $0xfc0] sm:$0xff]  ;;  %v513_v21 = vld [vmem:[%s6417_s0 + $0xfc8] sm:$0xff] }
 0x249   :  { %v1533_v19 = vmul.f32 0.2, %v509_v5  ;;  %3064 = vst [vmem:[%s6418_s1 + $0xf80] sm:$0xff] %v2552_v12  ;;  %v2554_v22 = vmul.f32 1.4142135, %v2042_v17  ;;  %v2044_v24 = vsel %vm1020_vm4, %v508_v1, %v1532_v14  ;;  %vm1022_vm6 = vcmp.ge.f32.partialorder %v510_v11, 0.0 }
 0x24a   :  { %v2555_v23 = vmul.f32 1.4142135, %v2043_v18  ;;  %v514_v25 = vld [vmem:[%s6417_s0 + $0xfd0] sm:$0xff]  ;;  %3065 = vst [vmem:[%s6418_s1 + $0xf88] sm:$0xff] %v2553_v16  ;;  %v2556_v26 = vmul.f32 1.4142135, %v2044_v24 }
 0x24b   :  { %v2045_v27 = vsel %vm1021_vm5, %v509_v5, %v1533_v19  ;;  %v1534_v28 = vmul.f32 0.2, %v510_v11  ;;  %vm1023_vm7 = vcmp.ge.f32.partialorder %v511_v15, 0.0  ;;  %v515_v29 = vld [vmem:[%s6417_s0 + $0xfd8] sm:$0xff]  ;;  %3066 = vst [vmem:[%s6418_s1 + $0xf90] sm:$0xff] %v2554_v22  ;;  %vm1024_vm8 = vcmp.ge.f32.partialorder %v512_v20, 0.0 }
 0x24c   :  { %3067 = vst [vmem:[%s6418_s1 + $0xf98] sm:$0xff] %v2555_v23  ;;  %v2557_v30 = vmul.f32 1.4142135, %v2045_v27  ;;  %v1535_v31 = vmul.f32 0.2, %v511_v15  ;;  %vm1025_vm9 = vcmp.ge.f32.partialorder %v513_v21, 0.0 }
 0x24d   :  { %3068 = vst [vmem:[%s6418_s1 + $0xfa0] sm:$0xff] %v2556_v26  ;;  %v2046_v32 = vsel %vm1022_vm6, %v510_v11, %v1534_v28  ;;  %v1536_v33 = vmul.f32 0.2, %v512_v20  ;;  %v1537_v34 = vmul.f32 0.2, %v513_v21  ;;  %vm1026_vm10 = vcmp.ge.f32.partialorder %v514_v25, 0.0 }
 0x24e   :  { %v516_v35 = vld [vmem:[%s6417_s0 + $0xfe0] sm:$0xff]  ;;  %3069 = vst [vmem:[%s6418_s1 + $0xfa8] sm:$0xff] %v2557_v30  ;;  %v2558_v36 = vmul.f32 1.4142135, %v2046_v32  ;;  %v2047_v37 = vsel %vm1023_vm7, %v511_v15, %v1535_v31  ;;  %v1538_v38 = vmul.f32 0.2, %v514_v25 }
 0x24f   :  { %vm1027_vm11 = vcmp.ge.f32.partialorder %v515_v29, 0.0  ;;  %v517_v39 = vld [vmem:[%s6417_s0 + $0xfe8] sm:$0xff]  ;;  %v2559_v40 = vmul.f32 1.4142135, %v2047_v37  ;;  %v2048_v41 = vsel %vm1024_vm8, %v512_v20, %v1536_v33  ;;  %v2049_v42 = vsel %vm1025_vm9, %v513_v21, %v1537_v34  ;;  %v518_v44 = vld [vmem:[%s6417_s0 + $0xff0] sm:$0xff]  ;;  %v519_v45 = vld [vmem:[%s6417_s0 + $0xff8] sm:$0xff] }
 0x250   :  { %v1539_v43 = vmul.f32 0.2, %v515_v29  ;;  %3070 = vst [vmem:[%s6418_s1 + $0xfb0] sm:$0xff] %v2558_v36  ;;  %v2560_v46 = vmul.f32 1.4142135, %v2048_v41  ;;  %v2050_v48 = vsel %vm1026_vm10, %v514_v25, %v1538_v38  ;;  %vm1028_vm12 = vcmp.ge.f32.partialorder %v516_v35, 0.0 }
 0x251   :  { %v2561_v47 = vmul.f32 1.4142135, %v2049_v42  ;;  %3071 = vst [vmem:[%s6418_s1 + $0xfb8] sm:$0xff] %v2559_v40  ;;  %v2562_v49 = vmul.f32 1.4142135, %v2050_v48  ;;  %vm1029_vm13 = vcmp.ge.f32.partialorder %v517_v39, 0.0 }
 0x252   :  { %v2051_v50 = vsel %vm1027_vm11, %v515_v29, %v1539_v43  ;;  %v1540_v51 = vmul.f32 0.2, %v516_v35  ;;  %3072 = vst [vmem:[%s6418_s1 + $0xfc0] sm:$0xff] %v2560_v46  ;;  %v1541_v53 = vmul.f32 0.2, %v517_v39  ;;  %vm1030_vm14 = vcmp.ge.f32.partialorder %v518_v44, 0.0 }
 0x253   :  { %3073 = vst [vmem:[%s6418_s1 + $0xfc8] sm:$0xff] %v2561_v47  ;;  %v2563_v52 = vmul.f32 1.4142135, %v2051_v50  ;;  %vm1031_vm15 = vcmp.ge.f32.partialorder %v519_v45, 0.0  ;;  %3074 = vst [vmem:[%s6418_s1 + $0xfd0] sm:$0xff] %v2562_v49 }
 0x254   :  { %v2052_v54 = vsel %vm1028_vm12, %v516_v35, %v1540_v51  ;;  %v1542_v55 = vmul.f32 0.2, %v518_v44  ;;  %v1543_v56 = vmul.f32 0.2, %v519_v45  ;;  %v2053_v58 = vsel %vm1029_vm13, %v517_v39, %v1541_v53 }
 0x255   :  { %3075 = vst [vmem:[%s6418_s1 + $0xfd8] sm:$0xff] %v2563_v52  ;;  %v2564_v57 = vmul.f32 1.4142135, %v2052_v54  ;;  %v2565_v59 = vmul.f32 1.4142135, %v2053_v58 }
 0x256   :  { %v2054_v60 = vsel %vm1030_vm14, %v518_v44, %v1542_v55  ;;  %v2055_v61 = vsel %vm1031_vm15, %v519_v45, %v1543_v56 }
 0x257   :  { %3076 = vst [vmem:[%s6418_s1 + $0xfe0] sm:$0xff] %v2564_v57  ;;  %v2566_v62 = vmul.f32 1.4142135, %v2054_v60  ;;  %v2567_v63 = vmul.f32 1.4142135, %v2055_v61  ;;  %3077 = vst [vmem:[%s6418_s1 + $0xfe8] sm:$0xff] %v2565_v59 }
 0x259   :  { %3078 = vst [vmem:[%s6418_s1 + $0xff0] sm:$0xff] %v2566_v62  ;;  %3079 = vst [vmem:[%s6418_s1 + $0xff8] sm:$0xff] %v2567_v63 }

</bundles_post_ra>
